<compile_context>
chip_gen: v6e
topology: v6e:2x2x1
jax: 0.10.0
libtpu: 0.0.40
codegen_flags: <defaults>
</compile_context>

<pallas_src>
import functools

import jax
import jax.numpy as jnp
from jax.experimental import pallas as pl
from jax.experimental.pallas import tpu as pltpu


# ----------------------------------------------------------------------------
# Architecture constants (conv_type="type_1")
# ----------------------------------------------------------------------------
CONV_KERNELS = [8, 4, 3]
CONV_CHANNELS = [32, 64, 64]
CONV_STRIDES = [4, 2, 1]
MLP_HIDDEN = [512, 256]
BATCH_TILE = 8          # samples per grid step (tune up for real batches)


# ----------------------------------------------------------------------------
# Fused Pallas kernel: conv stack + MLP + tanh action rescale (one batch tile)
# ----------------------------------------------------------------------------
def _determ_policy_fused_kernel(
    patches_ref, w1_ref, b1_ref, w2_ref, b2_ref, w3_ref, b3_ref,
    w4_ref, b4_ref, w5_ref, b5_ref, w6_ref, b6_ref, hi_ref, lo_ref,
    o_ref, x1_ref,
    *, BT, OH1, OW1, C1, K2, S2, OH2, OW2, C2, K3, S3, OH3, OW3, C3):
    f32 = jnp.float32
    bf16 = jnp.bfloat16

    # --- conv1: one MXU matmul per output column `ow`, written straight into the
    #     lane-dense x1 scratch [OH1*BT, OW1*C1] (row = oh*BT + n, col = ow*C1+c).
    #     Patch rows are (ow, oh, n)-ordered so no in-kernel transpose is needed.
    w1 = w1_ref[...]                                            # [K1*K1*Cin, C1] bf16
    b1b = jnp.broadcast_to(b1_ref[...], (OH1 * BT, C1))         # hoisted broadcast
    for ow in range(OW1):
        lhs = patches_ref[pl.ds(ow * OH1 * BT, OH1 * BT), :]    # [OH1*BT, K1*K1*Cin]
        y = jnp.dot(lhs, w1, preferred_element_type=f32) + b1b
        x1_ref[:, pl.ds(ow * C1, C1)] = jnp.maximum(y, 0.0)

    # --- conv2: kw fused into the matmul K dimension (K = K2*C1). Per output
    #     position: K2 matmuls on contiguous [BT, K2*C1] slices of x1, f32 acc
    #     initialized with the bias (no per-position re-broadcast).
    b2b = jnp.broadcast_to(b2_ref[...], (BT, C2))
    x2 = []                                  # per-position [BT, C2] bf16, (oh2, ow2) order
    for oh2 in range(OH2):
        for ow2 in range(OW2):
            acc = b2b
            for kh in range(K2):
                lhs = x1_ref[pl.ds((oh2 * S2 + kh) * BT, BT),
                             pl.ds(ow2 * S2 * C1, K2 * C1)].astype(bf16)   # [BT, K2*C1]
                rhs = w2_ref[pl.ds(kh * K2 * C1, K2 * C1), :]              # [K2*C1, C2]
                acc = acc + jnp.dot(lhs, rhs, preferred_element_type=f32)
            x2.append(jnp.maximum(acc, 0.0).astype(bf16))

    # --- conv3: accumulate per-kernel-position matmuls over the vreg-resident
    #     conv2 activations (no lane concatenation).
    b3b = jnp.broadcast_to(b3_ref[...], (BT, C3))
    feats = []                               # per conv3 position [BT, C3] bf16
    for oh3 in range(OH3):
        for ow3 in range(OW3):
            acc = b3b
            for kh in range(K3):
                for kw in range(K3):
                    p2 = (oh3 * S3 + kh) * OW2 + (ow3 * S3 + kw)
                    rhs = w3_ref[pl.ds((kh * K3 + kw) * C2, C2), :]        # [C2, C3]
                    acc = acc + jnp.dot(x2[p2], rhs, preferred_element_type=f32)
            feats.append(jnp.maximum(acc, 0.0).astype(bf16))

    # --- MLP: first layer accumulated over conv3 positions (W4 rows were
    #     permuted at init to absorb PyTorch's NCHW flatten), then 512->256->act.
    h = jnp.broadcast_to(b4_ref[...], (BT, b4_ref.shape[-1]))
    for p, f in enumerate(feats):
        h = h + jnp.dot(f, w4_ref[pl.ds(p * C3, C3), :], preferred_element_type=f32)
    h = jnp.maximum(h, 0.0)
    h = jnp.maximum(
        jnp.dot(h.astype(bf16), w5_ref[...], preferred_element_type=f32) + b5_ref[...],
        0.0)
    f = jnp.dot(h.astype(bf16), w6_ref[...], preferred_element_type=f32) + b6_ref[...]

    # --- tanh action rescale (f32) ---
    hi = hi_ref[...]
    lo = lo_ref[...]
    o_ref[...] = ((hi - lo) * 0.5 * jnp.tanh(f) + (hi + lo) * 0.5).astype(o_ref.dtype)


# ----------------------------------------------------------------------------
# Glue: conv1 im2col, rows ordered (batch_tile, ow, oh, n_in_tile), cols (kh,kw,c)
# ----------------------------------------------------------------------------
def _im2col_conv1(obs, k, s, bt):
    N, H, W, C = obs.shape
    OH = (H - k) // s + 1
    OW = (W - k) // s + 1
    T = N // bt
    idx_h = (jnp.arange(OH) * s)[:, None] + jnp.arange(k)[None, :]   # [OH, kh]
    idx_w = (jnp.arange(OW) * s)[:, None] + jnp.arange(k)[None, :]   # [OW, kw]
    p = obs[:, idx_h]                # [N, OH, kh, W, C]
    p = p[:, :, :, idx_w]            # [N, OH, kh, OW, kw, C]
    p = p.reshape(T, bt, OH, k, OW, k, C)
    p = p.transpose(0, 4, 2, 1, 3, 5, 6)      # [T, OW, OH, bt, kh, kw, C]
    return p.reshape(T * OW * OH * bt, k * k * C), OH, OW


# ----------------------------------------------------------------------------
# Parameters
# ----------------------------------------------------------------------------
def init_params(key, obs_dim, act_dim):
    H, W, Cin = obs_dim
    conv = []
    cin = Cin
    h, w = H, W
    for k, cout, s in zip(CONV_KERNELS, CONV_CHANNELS, CONV_STRIDES):
        key, k1, k2 = jax.random.split(key, 3)
        fan_in = k * k * cin
        wgt = jax.random.normal(k1, (k, k, cin, cout), jnp.float32) / jnp.sqrt(fan_in)
        bias = 0.01 * jax.random.normal(k2, (cout,), jnp.float32)
        conv.append((wgt.reshape(fan_in, cout).astype(jnp.bfloat16),
                     bias.reshape(1, cout)))
        cin = cout
        h = (h - k) // s + 1
        w = (w - k) // s + 1
    conv_num_dims = cin * h * w

    sizes = [conv_num_dims] + MLP_HIDDEN + [act_dim]
    mlp = []
    for j in range(len(sizes) - 1):
        key, k1, k2 = jax.random.split(key, 3)
        wgt = jax.random.normal(k1, (sizes[j], sizes[j + 1]), jnp.float32) / jnp.sqrt(sizes[j])
        bias = 0.01 * jax.random.normal(k2, (sizes[j + 1],), jnp.float32)
        if j == 0:
            # Fold PyTorch's NCHW flatten (img.view(N, -1)) into W4's row order:
            # the kernel produces NHWC-flattened features, so permute rows.
            C3, H3, W3 = cin, h, w
            nchw_idx = jnp.arange(C3 * H3 * W3).reshape(C3, H3, W3)
            perm = nchw_idx.transpose(1, 2, 0).reshape(-1)   # nhwc pos -> nchw row
            wgt = wgt[perm]
        mlp.append((wgt.astype(jnp.bfloat16), bias.reshape(1, sizes[j + 1])))
    return {"conv": conv, "mlp": mlp}, conv_num_dims


# ----------------------------------------------------------------------------
# Forward: one fused pallas_call with a "parallel" batch grid axis
# ----------------------------------------------------------------------------
def determ_policy_forward(params, obs, act_high, act_low, *, batch_tile=BATCH_TILE):
    """obs: [N, H, W, C] float32 (NHWC, i.e. the PyTorch input before .permute)."""
    N, H, W, Cin = obs.shape
    assert N % batch_tile == 0, "batch must be a multiple of the batch tile"
    K1, K2, K3 = CONV_KERNELS
    S1, S2, S3 = CONV_STRIDES
    C1, C2, C3 = CONV_CHANNELS

    patches, OH1, OW1 = _im2col_conv1(obs, K1, S1, batch_tile)
    patches = patches.astype(jnp.bfloat16)
    OH2 = (OH1 - K2) // S2 + 1
    OW2 = (OW1 - K2) // S2 + 1
    OH3 = (OH2 - K3) // S3 + 1
    OW3 = (OW2 - K3) // S3 + 1

    act_dim = act_high.shape[-1]
    hi = act_high.reshape(1, act_dim).astype(jnp.float32)
    lo = act_low.reshape(1, act_dim).astype(jnp.float32)

    (w1, b1), (w2, b2), (w3, b3) = params["conv"]
    (w4, b4), (w5, b5), (w6, b6) = params["mlp"]
    weight_args = (w1, b1, w2, b2, w3, b3, w4, b4, w5, b5, w6, b6, hi, lo)

    tile_rows = OW1 * OH1 * batch_tile
    kernel = functools.partial(
        _determ_policy_fused_kernel,
        BT=batch_tile, OH1=OH1, OW1=OW1, C1=C1, K2=K2, S2=S2, OH2=OH2, OW2=OW2,
        C2=C2, K3=K3, S3=S3, OH3=OH3, OW3=OW3, C3=C3)

    return pl.pallas_call(
        kernel,
        out_shape=jax.ShapeDtypeStruct((N, act_dim), jnp.float32),
        grid=(N // batch_tile,),
        in_specs=(
            # patches tile over batch; per-tile rows are (ow, oh, n_in_tile)-ordered
            [pl.BlockSpec((tile_rows, K1 * K1 * Cin), lambda i: (i, 0))]
            # weights / biases / limits: constant index_map -> DMA'd once, VMEM-resident
            + [pl.BlockSpec(a.shape, lambda i: (0, 0)) for a in weight_args]),
        out_specs=pl.BlockSpec((batch_tile, act_dim), lambda i: (i, 0)),
        scratch_shapes=[pltpu.VMEM((OH1 * batch_tile, OW1 * C1), jnp.float32)],
        compiler_params=pltpu.CompilerParams(
            dimension_semantics=("parallel",),
            vmem_limit_bytes=32 * 1024 * 1024),
    )(patches, *weight_args)


# ----------------------------------------------------------------------------
# Pure-JAX reference (f32 math, same bf16-stored weights) for validation
# ----------------------------------------------------------------------------
def reference_forward(params, obs, hi, lo):
    x = obs
    for (wgt, bias), k, s in zip(params["conv"], CONV_KERNELS, CONV_STRIDES):
        cout = wgt.shape[1]
        cin = wgt.shape[0] // (k * k)
        w4d = wgt.astype(jnp.float32).reshape(k, k, cin, cout)
        x = jax.lax.conv_general_dilated(
            x, w4d, (s, s), "VALID", dimension_numbers=("NHWC", "HWIO", "NHWC"))
        x = jnp.maximum(x + bias.reshape(1, 1, 1, -1), 0.0)
    feat = x.reshape(x.shape[0], -1)           # NHWC flatten (W4 rows were permuted to match)
    (w4, b4), (w5, b5), (w6, b6) = params["mlp"]
    h = jnp.maximum(feat @ w4.astype(jnp.float32) + b4, 0.0)
    h = jnp.maximum(h @ w5.astype(jnp.float32) + b5, 0.0)
    f = h @ w6.astype(jnp.float32) + b6
    return (hi - lo) * 0.5 * jnp.tanh(f) + (hi + lo) * 0.5


if __name__ == "__main__":
    # Shapes consistent with conv_type="type_1": spatial must survive kernels
    # (8,4,3) with strides (4,2,1) -> 36x36 works (conv feature dim = 64*1*1).
    batch = 16                      # 2 batch tiles of 8 -> grid=(2,)
    obs_dim = (36, 36, 4)           # (H, W, C)
    act_dim = 3

    key = jax.random.PRNGKey(0)
    key, k_obs = jax.random.split(key)
    obs = jax.random.normal(k_obs, (batch,) + obs_dim, jnp.float32)

    act_high = jnp.array([1.0, 2.0, 0.5], jnp.float32)
    act_low = -act_high

    params, conv_num_dims = init_params(key, obs_dim, act_dim)

    forward = jax.jit(determ_policy_forward)
    action = jax.block_until_ready(forward(params, obs, act_high, act_low))

    ref = reference_forward(params, obs, act_high.reshape(1, -1), act_low.reshape(1, -1))

    assert action.shape == (batch, act_dim)
    assert bool(jnp.all(jnp.isfinite(action)))
    # action must lie inside [act_low, act_high]
    assert bool(jnp.all(action <= act_high + 1e-5))
    assert bool(jnp.all(action >= act_low - 1e-5))
    # numerics vs f32 reference (bf16 MXU inputs -> loose tolerance)
    assert bool(jnp.max(jnp.abs(action - ref)) < 5e-2)
    print("KERNEL_OK")
</pallas_src>

<mosaic_0001>
module attributes {stable_mosaic.version = 11 : i64} {
  func.func @_determ_policy_fused_kernel(%arg0: i32, %arg1: memref<512x256xbf16, #tpu.memory_space<vmem>>, %arg2: memref<256x32xbf16, #tpu.memory_space<vmem>>, %arg3: memref<1x32xf32, #tpu.memory_space<vmem>>, %arg4: memref<512x64xbf16, #tpu.memory_space<vmem>>, %arg5: memref<1x64xf32, #tpu.memory_space<vmem>>, %arg6: memref<576x64xbf16, #tpu.memory_space<vmem>>, %arg7: memref<1x64xf32, #tpu.memory_space<vmem>>, %arg8: memref<64x512xbf16, #tpu.memory_space<vmem>>, %arg9: memref<1x512xf32, #tpu.memory_space<vmem>>, %arg10: memref<512x256xbf16, #tpu.memory_space<vmem>>, %arg11: memref<1x256xf32, #tpu.memory_space<vmem>>, %arg12: memref<256x3xbf16, #tpu.memory_space<vmem>>, %arg13: memref<1x3xf32, #tpu.memory_space<vmem>>, %arg14: memref<1x3xf32, #tpu.memory_space<vmem>>, %arg15: memref<1x3xf32, #tpu.memory_space<vmem>>, %arg16: memref<8x3xf32, #tpu.memory_space<vmem>>, %arg17: memref<64x256xf32, #tpu.memory_space<vmem>>) attributes {dimension_semantics = [#tpu.dimension_semantics<parallel>], iteration_bounds = array<i64: 2>, scalar_prefetch = 0 : i64, scratch_operands = 1 : i64, tpu.core_type = #tpu.core_type<tc>, window_params = [{transform_indices = @transform_0, window_bounds = array<i64: 512, 256>}, {pipeline_mode = #tpu.pipeline_mode<synchronous>, transform_indices = @transform_1, window_bounds = array<i64: 256, 32>}, {pipeline_mode = #tpu.pipeline_mode<synchronous>, transform_indices = @transform_2, window_bounds = array<i64: 1, 32>}, {pipeline_mode = #tpu.pipeline_mode<synchronous>, transform_indices = @transform_3, window_bounds = array<i64: 512, 64>}, {pipeline_mode = #tpu.pipeline_mode<synchronous>, transform_indices = @transform_4, window_bounds = array<i64: 1, 64>}, {pipeline_mode = #tpu.pipeline_mode<synchronous>, transform_indices = @transform_5, window_bounds = array<i64: 576, 64>}, {pipeline_mode = #tpu.pipeline_mode<synchronous>, transform_indices = @transform_6, window_bounds = array<i64: 1, 64>}, {pipeline_mode = #tpu.pipeline_mode<synchronous>, transform_indices = @transform_7, window_bounds = array<i64: 64, 512>}, {pipeline_mode = #tpu.pipeline_mode<synchronous>, transform_indices = @transform_8, window_bounds = array<i64: 1, 512>}, {pipeline_mode = #tpu.pipeline_mode<synchronous>, transform_indices = @transform_9, window_bounds = array<i64: 512, 256>}, {pipeline_mode = #tpu.pipeline_mode<synchronous>, transform_indices = @transform_10, window_bounds = array<i64: 1, 256>}, {pipeline_mode = #tpu.pipeline_mode<synchronous>, transform_indices = @transform_11, window_bounds = array<i64: 256, 3>}, {pipeline_mode = #tpu.pipeline_mode<synchronous>, transform_indices = @transform_12, window_bounds = array<i64: 1, 3>}, {pipeline_mode = #tpu.pipeline_mode<synchronous>, transform_indices = @transform_13, window_bounds = array<i64: 1, 3>}, {pipeline_mode = #tpu.pipeline_mode<synchronous>, transform_indices = @transform_14, window_bounds = array<i64: 1, 3>}, {transform_indices = @transform_15, window_bounds = array<i64: 8, 3>}]} {
    %c0 = arith.constant 0 : index
    %c0_0 = arith.constant 0 : index
    %0 = vector.load %arg2[%c0, %c0_0] : memref<256x32xbf16, #tpu.memory_space<vmem>>, vector<256x32xbf16>
    %c0_1 = arith.constant 0 : index
    %c0_2 = arith.constant 0 : index
    %1 = vector.load %arg3[%c0_1, %c0_2] : memref<1x32xf32, #tpu.memory_space<vmem>>, vector<1x32xf32>
    %2 = vector.shape_cast %1 : vector<1x32xf32> to vector<1x32xf32>
    %3 = vector.broadcast %2 : vector<1x32xf32> to vector<64x32xf32>
    %c0_3 = arith.constant 0 : index
    %c0_4 = arith.constant 0 : index
    %4 = vector.load %arg1[%c0_3, %c0_4] : memref<512x256xbf16, #tpu.memory_space<vmem>>, vector<64x256xbf16>
    %cst = arith.constant dense<0.000000e+00> : vector<64x32xf32>
    %5 = tpu.matmul %4, %0, %cst {dimension_numbers = #tpu.dot_dimension_numbers<[1], [0], [0], [1], [0, 0, 1, 1], [], []>} : vector<64x256xbf16>, vector<256x32xbf16>, vector<64x32xf32> -> vector<64x32xf32>
    %6 = arith.addf %5, %3 : vector<64x32xf32>
    %cst_5 = arith.constant 0.000000e+00 : f32
    %7 = vector.broadcast %cst_5 : f32 to vector<64x32xf32>
    %8 = arith.maximumf %6, %7 : vector<64x32xf32>
    %c0_6 = arith.constant 0 : index
    %c0_7 = arith.constant 0 : index
    %9 = vector.load %arg17[%c0_6, %c0_7] : memref<64x256xf32, #tpu.memory_space<vmem>>, vector<64x32xf32>
    tpu.vector_store %arg17[%c0_6, %c0_7], %8 {strides = array<i32>} : memref<64x256xf32, #tpu.memory_space<vmem>>, vector<64x32xf32>,
    %c64 = arith.constant 64 : index
    %c0_8 = arith.constant 0 : index
    %10 = vector.load %arg1[%c64, %c0_8] : memref<512x256xbf16, #tpu.memory_space<vmem>>, vector<64x256xbf16>
    %cst_9 = arith.constant dense<0.000000e+00> : vector<64x32xf32>
    %11 = tpu.matmul %10, %0, %cst_9 {dimension_numbers = #tpu.dot_dimension_numbers<[1], [0], [0], [1], [0, 0, 1, 1], [], []>} : vector<64x256xbf16>, vector<256x32xbf16>, vector<64x32xf32> -> vector<64x32xf32>
    %12 = arith.addf %11, %3 : vector<64x32xf32>
    %cst_10 = arith.constant 0.000000e+00 : f32
    %13 = vector.broadcast %cst_10 : f32 to vector<64x32xf32>
    %14 = arith.maximumf %12, %13 : vector<64x32xf32>
    %c0_11 = arith.constant 0 : index
    %c32 = arith.constant 32 : index
    %15 = vector.load %arg17[%c0_11, %c32] : memref<64x256xf32, #tpu.memory_space<vmem>>, vector<64x32xf32>
    tpu.vector_store %arg17[%c0_11, %c32], %14 {strides = array<i32>} : memref<64x256xf32, #tpu.memory_space<vmem>>, vector<64x32xf32>,
    %c128 = arith.constant 128 : index
    %c0_12 = arith.constant 0 : index
    %16 = vector.load %arg1[%c128, %c0_12] : memref<512x256xbf16, #tpu.memory_space<vmem>>, vector<64x256xbf16>
    %cst_13 = arith.constant dense<0.000000e+00> : vector<64x32xf32>
    %17 = tpu.matmul %16, %0, %cst_13 {dimension_numbers = #tpu.dot_dimension_numbers<[1], [0], [0], [1], [0, 0, 1, 1], [], []>} : vector<64x256xbf16>, vector<256x32xbf16>, vector<64x32xf32> -> vector<64x32xf32>
    %18 = arith.addf %17, %3 : vector<64x32xf32>
    %cst_14 = arith.constant 0.000000e+00 : f32
    %19 = vector.broadcast %cst_14 : f32 to vector<64x32xf32>
    %20 = arith.maximumf %18, %19 : vector<64x32xf32>
    %c0_15 = arith.constant 0 : index
    %c64_16 = arith.constant 64 : index
    %21 = vector.load %arg17[%c0_15, %c64_16] : memref<64x256xf32, #tpu.memory_space<vmem>>, vector<64x32xf32>
    tpu.vector_store %arg17[%c0_15, %c64_16], %20 {strides = array<i32>} : memref<64x256xf32, #tpu.memory_space<vmem>>, vector<64x32xf32>,
    %c192 = arith.constant 192 : index
    %c0_17 = arith.constant 0 : index
    %22 = vector.load %arg1[%c192, %c0_17] : memref<512x256xbf16, #tpu.memory_space<vmem>>, vector<64x256xbf16>
    %cst_18 = arith.constant dense<0.000000e+00> : vector<64x32xf32>
    %23 = tpu.matmul %22, %0, %cst_18 {dimension_numbers = #tpu.dot_dimension_numbers<[1], [0], [0], [1], [0, 0, 1, 1], [], []>} : vector<64x256xbf16>, vector<256x32xbf16>, vector<64x32xf32> -> vector<64x32xf32>
    %24 = arith.addf %23, %3 : vector<64x32xf32>
    %cst_19 = arith.constant 0.000000e+00 : f32
    %25 = vector.broadcast %cst_19 : f32 to vector<64x32xf32>
    %26 = arith.maximumf %24, %25 : vector<64x32xf32>
    %c0_20 = arith.constant 0 : index
    %c96 = arith.constant 96 : index
    %27 = vector.load %arg17[%c0_20, %c96] : memref<64x256xf32, #tpu.memory_space<vmem>>, vector<64x32xf32>
    tpu.vector_store %arg17[%c0_20, %c96], %26 {strides = array<i32>} : memref<64x256xf32, #tpu.memory_space<vmem>>, vector<64x32xf32>,
    %c256 = arith.constant 256 : index
    %c0_21 = arith.constant 0 : index
    %28 = vector.load %arg1[%c256, %c0_21] : memref<512x256xbf16, #tpu.memory_space<vmem>>, vector<64x256xbf16>
    %cst_22 = arith.constant dense<0.000000e+00> : vector<64x32xf32>
    %29 = tpu.matmul %28, %0, %cst_22 {dimension_numbers = #tpu.dot_dimension_numbers<[1], [0], [0], [1], [0, 0, 1, 1], [], []>} : vector<64x256xbf16>, vector<256x32xbf16>, vector<64x32xf32> -> vector<64x32xf32>
    %30 = arith.addf %29, %3 : vector<64x32xf32>
    %cst_23 = arith.constant 0.000000e+00 : f32
    %31 = vector.broadcast %cst_23 : f32 to vector<64x32xf32>
    %32 = arith.maximumf %30, %31 : vector<64x32xf32>
    %c0_24 = arith.constant 0 : index
    %c128_25 = arith.constant 128 : index
    %33 = vector.load %arg17[%c0_24, %c128_25] : memref<64x256xf32, #tpu.memory_space<vmem>>, vector<64x32xf32>
    tpu.vector_store %arg17[%c0_24, %c128_25], %32 {strides = array<i32>} : memref<64x256xf32, #tpu.memory_space<vmem>>, vector<64x32xf32>,
    %c320 = arith.constant 320 : index
    %c0_26 = arith.constant 0 : index
    %34 = vector.load %arg1[%c320, %c0_26] : memref<512x256xbf16, #tpu.memory_space<vmem>>, vector<64x256xbf16>
    %cst_27 = arith.constant dense<0.000000e+00> : vector<64x32xf32>
    %35 = tpu.matmul %34, %0, %cst_27 {dimension_numbers = #tpu.dot_dimension_numbers<[1], [0], [0], [1], [0, 0, 1, 1], [], []>} : vector<64x256xbf16>, vector<256x32xbf16>, vector<64x32xf32> -> vector<64x32xf32>
    %36 = arith.addf %35, %3 : vector<64x32xf32>
    %cst_28 = arith.constant 0.000000e+00 : f32
    %37 = vector.broadcast %cst_28 : f32 to vector<64x32xf32>
    %38 = arith.maximumf %36, %37 : vector<64x32xf32>
    %c0_29 = arith.constant 0 : index
    %c160 = arith.constant 160 : index
    %39 = vector.load %arg17[%c0_29, %c160] : memref<64x256xf32, #tpu.memory_space<vmem>>, vector<64x32xf32>
    tpu.vector_store %arg17[%c0_29, %c160], %38 {strides = array<i32>} : memref<64x256xf32, #tpu.memory_space<vmem>>, vector<64x32xf32>,
    %c384 = arith.constant 384 : index
    %c0_30 = arith.constant 0 : index
    %40 = vector.load %arg1[%c384, %c0_30] : memref<512x256xbf16, #tpu.memory_space<vmem>>, vector<64x256xbf16>
    %cst_31 = arith.constant dense<0.000000e+00> : vector<64x32xf32>
    %41 = tpu.matmul %40, %0, %cst_31 {dimension_numbers = #tpu.dot_dimension_numbers<[1], [0], [0], [1], [0, 0, 1, 1], [], []>} : vector<64x256xbf16>, vector<256x32xbf16>, vector<64x32xf32> -> vector<64x32xf32>
    %42 = arith.addf %41, %3 : vector<64x32xf32>
    %cst_32 = arith.constant 0.000000e+00 : f32
    %43 = vector.broadcast %cst_32 : f32 to vector<64x32xf32>
    %44 = arith.maximumf %42, %43 : vector<64x32xf32>
    %c0_33 = arith.constant 0 : index
    %c192_34 = arith.constant 192 : index
    %45 = vector.load %arg17[%c0_33, %c192_34] : memref<64x256xf32, #tpu.memory_space<vmem>>, vector<64x32xf32>
    tpu.vector_store %arg17[%c0_33, %c192_34], %44 {strides = array<i32>} : memref<64x256xf32, #tpu.memory_space<vmem>>, vector<64x32xf32>,
    %c448 = arith.constant 448 : index
    %c0_35 = arith.constant 0 : index
    %46 = vector.load %arg1[%c448, %c0_35] : memref<512x256xbf16, #tpu.memory_space<vmem>>, vector<64x256xbf16>
    %cst_36 = arith.constant dense<0.000000e+00> : vector<64x32xf32>
    %47 = tpu.matmul %46, %0, %cst_36 {dimension_numbers = #tpu.dot_dimension_numbers<[1], [0], [0], [1], [0, 0, 1, 1], [], []>} : vector<64x256xbf16>, vector<256x32xbf16>, vector<64x32xf32> -> vector<64x32xf32>
    %48 = arith.addf %47, %3 : vector<64x32xf32>
    %cst_37 = arith.constant 0.000000e+00 : f32
    %49 = vector.broadcast %cst_37 : f32 to vector<64x32xf32>
    %50 = arith.maximumf %48, %49 : vector<64x32xf32>
    %c0_38 = arith.constant 0 : index
    %c224 = arith.constant 224 : index
    %51 = vector.load %arg17[%c0_38, %c224] : memref<64x256xf32, #tpu.memory_space<vmem>>, vector<64x32xf32>
    tpu.vector_store %arg17[%c0_38, %c224], %50 {strides = array<i32>} : memref<64x256xf32, #tpu.memory_space<vmem>>, vector<64x32xf32>,
    %c0_39 = arith.constant 0 : index
    %c0_40 = arith.constant 0 : index
    %52 = vector.load %arg5[%c0_39, %c0_40] : memref<1x64xf32, #tpu.memory_space<vmem>>, vector<1x64xf32>
    %53 = vector.shape_cast %52 : vector<1x64xf32> to vector<1x64xf32>
    %54 = vector.broadcast %53 : vector<1x64xf32> to vector<8x64xf32>
    %c0_41 = arith.constant 0 : index
    %c0_42 = arith.constant 0 : index
    %55 = vector.load %arg17[%c0_41, %c0_42] : memref<64x256xf32, #tpu.memory_space<vmem>>, vector<8x128xf32>
    %56 = arith.truncf %55 : vector<8x128xf32> to vector<8x128xbf16>
    %c0_43 = arith.constant 0 : index
    %c0_44 = arith.constant 0 : index
    %57 = vector.load %arg4[%c0_43, %c0_44] : memref<512x64xbf16, #tpu.memory_space<vmem>>, vector<128x64xbf16>
    %cst_45 = arith.constant dense<0.000000e+00> : vector<8x64xf32>
    %58 = tpu.matmul %56, %57, %cst_45 {dimension_numbers = #tpu.dot_dimension_numbers<[1], [0], [0], [1], [0, 0, 1, 1], [], []>} : vector<8x128xbf16>, vector<128x64xbf16>, vector<8x64xf32> -> vector<8x64xf32>
    %59 = arith.addf %54, %58 : vector<8x64xf32>
    %c8 = arith.constant 8 : index
    %c0_46 = arith.constant 0 : index
    %60 = vector.load %arg17[%c8, %c0_46] : memref<64x256xf32, #tpu.memory_space<vmem>>, vector<8x128xf32>
    %61 = arith.truncf %60 : vector<8x128xf32> to vector<8x128xbf16>
    %c128_47 = arith.constant 128 : index
    %c0_48 = arith.constant 0 : index
    %62 = vector.load %arg4[%c128_47, %c0_48] : memref<512x64xbf16, #tpu.memory_space<vmem>>, vector<128x64xbf16>
    %cst_49 = arith.constant dense<0.000000e+00> : vector<8x64xf32>
    %63 = tpu.matmul %61, %62, %cst_49 {dimension_numbers = #tpu.dot_dimension_numbers<[1], [0], [0], [1], [0, 0, 1, 1], [], []>} : vector<8x128xbf16>, vector<128x64xbf16>, vector<8x64xf32> -> vector<8x64xf32>
    %64 = arith.addf %59, %63 : vector<8x64xf32>
    %c16 = arith.constant 16 : index
    %c0_50 = arith.constant 0 : index
    %65 = vector.load %arg17[%c16, %c0_50] : memref<64x256xf32, #tpu.memory_space<vmem>>, vector<8x128xf32>
    %66 = arith.truncf %65 : vector<8x128xf32> to vector<8x128xbf16>
    %c256_51 = arith.constant 256 : index
    %c0_52 = arith.constant 0 : index
    %67 = vector.load %arg4[%c256_51, %c0_52] : memref<512x64xbf16, #tpu.memory_space<vmem>>, vector<128x64xbf16>
    %cst_53 = arith.constant dense<0.000000e+00> : vector<8x64xf32>
    %68 = tpu.matmul %66, %67, %cst_53 {dimension_numbers = #tpu.dot_dimension_numbers<[1], [0], [0], [1], [0, 0, 1, 1], [], []>} : vector<8x128xbf16>, vector<128x64xbf16>, vector<8x64xf32> -> vector<8x64xf32>
    %69 = arith.addf %64, %68 : vector<8x64xf32>
    %c24 = arith.constant 24 : index
    %c0_54 = arith.constant 0 : index
    %70 = vector.load %arg17[%c24, %c0_54] : memref<64x256xf32, #tpu.memory_space<vmem>>, vector<8x128xf32>
    %71 = arith.truncf %70 : vector<8x128xf32> to vector<8x128xbf16>
    %c384_55 = arith.constant 384 : index
    %c0_56 = arith.constant 0 : index
    %72 = vector.load %arg4[%c384_55, %c0_56] : memref<512x64xbf16, #tpu.memory_space<vmem>>, vector<128x64xbf16>
    %cst_57 = arith.constant dense<0.000000e+00> : vector<8x64xf32>
    %73 = tpu.matmul %71, %72, %cst_57 {dimension_numbers = #tpu.dot_dimension_numbers<[1], [0], [0], [1], [0, 0, 1, 1], [], []>} : vector<8x128xbf16>, vector<128x64xbf16>, vector<8x64xf32> -> vector<8x64xf32>
    %74 = arith.addf %69, %73 : vector<8x64xf32>
    %cst_58 = arith.constant 0.000000e+00 : f32
    %75 = vector.broadcast %cst_58 : f32 to vector<8x64xf32>
    %76 = arith.maximumf %74, %75 : vector<8x64xf32>
    %77 = arith.truncf %76 : vector<8x64xf32> to vector<8x64xbf16>
    %c0_59 = arith.constant 0 : index
    %c64_60 = arith.constant 64 : index
    %78 = vector.load %arg17[%c0_59, %c64_60] : memref<64x256xf32, #tpu.memory_space<vmem>>, vector<8x128xf32>
    %79 = arith.truncf %78 : vector<8x128xf32> to vector<8x128xbf16>
    %c0_61 = arith.constant 0 : index
    %c0_62 = arith.constant 0 : index
    %80 = vector.load %arg4[%c0_61, %c0_62] : memref<512x64xbf16, #tpu.memory_space<vmem>>, vector<128x64xbf16>
    %cst_63 = arith.constant dense<0.000000e+00> : vector<8x64xf32>
    %81 = tpu.matmul %79, %80, %cst_63 {dimension_numbers = #tpu.dot_dimension_numbers<[1], [0], [0], [1], [0, 0, 1, 1], [], []>} : vector<8x128xbf16>, vector<128x64xbf16>, vector<8x64xf32> -> vector<8x64xf32>
    %82 = arith.addf %54, %81 : vector<8x64xf32>
    %c8_64 = arith.constant 8 : index
    %c64_65 = arith.constant 64 : index
    %83 = vector.load %arg17[%c8_64, %c64_65] : memref<64x256xf32, #tpu.memory_space<vmem>>, vector<8x128xf32>
    %84 = arith.truncf %83 : vector<8x128xf32> to vector<8x128xbf16>
    %c128_66 = arith.constant 128 : index
    %c0_67 = arith.constant 0 : index
    %85 = vector.load %arg4[%c128_66, %c0_67] : memref<512x64xbf16, #tpu.memory_space<vmem>>, vector<128x64xbf16>
    %cst_68 = arith.constant dense<0.000000e+00> : vector<8x64xf32>
    %86 = tpu.matmul %84, %85, %cst_68 {dimension_numbers = #tpu.dot_dimension_numbers<[1], [0], [0], [1], [0, 0, 1, 1], [], []>} : vector<8x128xbf16>, vector<128x64xbf16>, vector<8x64xf32> -> vector<8x64xf32>
    %87 = arith.addf %82, %86 : vector<8x64xf32>
    %c16_69 = arith.constant 16 : index
    %c64_70 = arith.constant 64 : index
    %88 = vector.load %arg17[%c16_69, %c64_70] : memref<64x256xf32, #tpu.memory_space<vmem>>, vector<8x128xf32>
    %89 = arith.truncf %88 : vector<8x128xf32> to vector<8x128xbf16>
    %c256_71 = arith.constant 256 : index
    %c0_72 = arith.constant 0 : index
    %90 = vector.load %arg4[%c256_71, %c0_72] : memref<512x64xbf16, #tpu.memory_space<vmem>>, vector<128x64xbf16>
    %cst_73 = arith.constant dense<0.000000e+00> : vector<8x64xf32>
    %91 = tpu.matmul %89, %90, %cst_73 {dimension_numbers = #tpu.dot_dimension_numbers<[1], [0], [0], [1], [0, 0, 1, 1], [], []>} : vector<8x128xbf16>, vector<128x64xbf16>, vector<8x64xf32> -> vector<8x64xf32>
    %92 = arith.addf %87, %91 : vector<8x64xf32>
    %c24_74 = arith.constant 24 : index
    %c64_75 = arith.constant 64 : index
    %93 = vector.load %arg17[%c24_74, %c64_75] : memref<64x256xf32, #tpu.memory_space<vmem>>, vector<8x128xf32>
    %94 = arith.truncf %93 : vector<8x128xf32> to vector<8x128xbf16>
    %c384_76 = arith.constant 384 : index
    %c0_77 = arith.constant 0 : index
    %95 = vector.load %arg4[%c384_76, %c0_77] : memref<512x64xbf16, #tpu.memory_space<vmem>>, vector<128x64xbf16>
    %cst_78 = arith.constant dense<0.000000e+00> : vector<8x64xf32>
    %96 = tpu.matmul %94, %95, %cst_78 {dimension_numbers = #tpu.dot_dimension_numbers<[1], [0], [0], [1], [0, 0, 1, 1], [], []>} : vector<8x128xbf16>, vector<128x64xbf16>, vector<8x64xf32> -> vector<8x64xf32>
    %97 = arith.addf %92, %96 : vector<8x64xf32>
    %cst_79 = arith.constant 0.000000e+00 : f32
    %98 = vector.broadcast %cst_79 : f32 to vector<8x64xf32>
    %99 = arith.maximumf %97, %98 : vector<8x64xf32>
    %100 = arith.truncf %99 : vector<8x64xf32> to vector<8x64xbf16>
    %c0_80 = arith.constant 0 : index
    %c128_81 = arith.constant 128 : index
    %101 = vector.load %arg17[%c0_80, %c128_81] : memref<64x256xf32, #tpu.memory_space<vmem>>, vector<8x128xf32>
    %102 = arith.truncf %101 : vector<8x128xf32> to vector<8x128xbf16>
    %c0_82 = arith.constant 0 : index
    %c0_83 = arith.constant 0 : index
    %103 = vector.load %arg4[%c0_82, %c0_83] : memref<512x64xbf16, #tpu.memory_space<vmem>>, vector<128x64xbf16>
    %cst_84 = arith.constant dense<0.000000e+00> : vector<8x64xf32>
    %104 = tpu.matmul %102, %103, %cst_84 {dimension_numbers = #tpu.dot_dimension_numbers<[1], [0], [0], [1], [0, 0, 1, 1], [], []>} : vector<8x128xbf16>, vector<128x64xbf16>, vector<8x64xf32> -> vector<8x64xf32>
    %105 = arith.addf %54, %104 : vector<8x64xf32>
    %c8_85 = arith.constant 8 : index
    %c128_86 = arith.constant 128 : index
    %106 = vector.load %arg17[%c8_85, %c128_86] : memref<64x256xf32, #tpu.memory_space<vmem>>, vector<8x128xf32>
    %107 = arith.truncf %106 : vector<8x128xf32> to vector<8x128xbf16>
    %c128_87 = arith.constant 128 : index
    %c0_88 = arith.constant 0 : index
    %108 = vector.load %arg4[%c128_87, %c0_88] : memref<512x64xbf16, #tpu.memory_space<vmem>>, vector<128x64xbf16>
    %cst_89 = arith.constant dense<0.000000e+00> : vector<8x64xf32>
    %109 = tpu.matmul %107, %108, %cst_89 {dimension_numbers = #tpu.dot_dimension_numbers<[1], [0], [0], [1], [0, 0, 1, 1], [], []>} : vector<8x128xbf16>, vector<128x64xbf16>, vector<8x64xf32> -> vector<8x64xf32>
    %110 = arith.addf %105, %109 : vector<8x64xf32>
    %c16_90 = arith.constant 16 : index
    %c128_91 = arith.constant 128 : index
    %111 = vector.load %arg17[%c16_90, %c128_91] : memref<64x256xf32, #tpu.memory_space<vmem>>, vector<8x128xf32>
    %112 = arith.truncf %111 : vector<8x128xf32> to vector<8x128xbf16>
    %c256_92 = arith.constant 256 : index
    %c0_93 = arith.constant 0 : index
    %113 = vector.load %arg4[%c256_92, %c0_93] : memref<512x64xbf16, #tpu.memory_space<vmem>>, vector<128x64xbf16>
    %cst_94 = arith.constant dense<0.000000e+00> : vector<8x64xf32>
    %114 = tpu.matmul %112, %113, %cst_94 {dimension_numbers = #tpu.dot_dimension_numbers<[1], [0], [0], [1], [0, 0, 1, 1], [], []>} : vector<8x128xbf16>, vector<128x64xbf16>, vector<8x64xf32> -> vector<8x64xf32>
    %115 = arith.addf %110, %114 : vector<8x64xf32>
    %c24_95 = arith.constant 24 : index
    %c128_96 = arith.constant 128 : index
    %116 = vector.load %arg17[%c24_95, %c128_96] : memref<64x256xf32, #tpu.memory_space<vmem>>, vector<8x128xf32>
    %117 = arith.truncf %116 : vector<8x128xf32> to vector<8x128xbf16>
    %c384_97 = arith.constant 384 : index
    %c0_98 = arith.constant 0 : index
    %118 = vector.load %arg4[%c384_97, %c0_98] : memref<512x64xbf16, #tpu.memory_space<vmem>>, vector<128x64xbf16>
    %cst_99 = arith.constant dense<0.000000e+00> : vector<8x64xf32>
    %119 = tpu.matmul %117, %118, %cst_99 {dimension_numbers = #tpu.dot_dimension_numbers<[1], [0], [0], [1], [0, 0, 1, 1], [], []>} : vector<8x128xbf16>, vector<128x64xbf16>, vector<8x64xf32> -> vector<8x64xf32>
    %120 = arith.addf %115, %119 : vector<8x64xf32>
    %cst_100 = arith.constant 0.000000e+00 : f32
    %121 = vector.broadcast %cst_100 : f32 to vector<8x64xf32>
    %122 = arith.maximumf %120, %121 : vector<8x64xf32>
    %123 = arith.truncf %122 : vector<8x64xf32> to vector<8x64xbf16>
    %c16_101 = arith.constant 16 : index
    %c0_102 = arith.constant 0 : index
    %124 = vector.load %arg17[%c16_101, %c0_102] : memref<64x256xf32, #tpu.memory_space<vmem>>, vector<8x128xf32>
    %125 = arith.truncf %124 : vector<8x128xf32> to vector<8x128xbf16>
    %c0_103 = arith.constant 0 : index
    %c0_104 = arith.constant 0 : index
    %126 = vector.load %arg4[%c0_103, %c0_104] : memref<512x64xbf16, #tpu.memory_space<vmem>>, vector<128x64xbf16>
    %cst_105 = arith.constant dense<0.000000e+00> : vector<8x64xf32>
    %127 = tpu.matmul %125, %126, %cst_105 {dimension_numbers = #tpu.dot_dimension_numbers<[1], [0], [0], [1], [0, 0, 1, 1], [], []>} : vector<8x128xbf16>, vector<128x64xbf16>, vector<8x64xf32> -> vector<8x64xf32>
    %128 = arith.addf %54, %127 : vector<8x64xf32>
    %c24_106 = arith.constant 24 : index
    %c0_107 = arith.constant 0 : index
    %129 = vector.load %arg17[%c24_106, %c0_107] : memref<64x256xf32, #tpu.memory_space<vmem>>, vector<8x128xf32>
    %130 = arith.truncf %129 : vector<8x128xf32> to vector<8x128xbf16>
    %c128_108 = arith.constant 128 : index
    %c0_109 = arith.constant 0 : index
    %131 = vector.load %arg4[%c128_108, %c0_109] : memref<512x64xbf16, #tpu.memory_space<vmem>>, vector<128x64xbf16>
    %cst_110 = arith.constant dense<0.000000e+00> : vector<8x64xf32>
    %132 = tpu.matmul %130, %131, %cst_110 {dimension_numbers = #tpu.dot_dimension_numbers<[1], [0], [0], [1], [0, 0, 1, 1], [], []>} : vector<8x128xbf16>, vector<128x64xbf16>, vector<8x64xf32> -> vector<8x64xf32>
    %133 = arith.addf %128, %132 : vector<8x64xf32>
    %c32_111 = arith.constant 32 : index
    %c0_112 = arith.constant 0 : index
    %134 = vector.load %arg17[%c32_111, %c0_112] : memref<64x256xf32, #tpu.memory_space<vmem>>, vector<8x128xf32>
    %135 = arith.truncf %134 : vector<8x128xf32> to vector<8x128xbf16>
    %c256_113 = arith.constant 256 : index
    %c0_114 = arith.constant 0 : index
    %136 = vector.load %arg4[%c256_113, %c0_114] : memref<512x64xbf16, #tpu.memory_space<vmem>>, vector<128x64xbf16>
    %cst_115 = arith.constant dense<0.000000e+00> : vector<8x64xf32>
    %137 = tpu.matmul %135, %136, %cst_115 {dimension_numbers = #tpu.dot_dimension_numbers<[1], [0], [0], [1], [0, 0, 1, 1], [], []>} : vector<8x128xbf16>, vector<128x64xbf16>, vector<8x64xf32> -> vector<8x64xf32>
    %138 = arith.addf %133, %137 : vector<8x64xf32>
    %c40 = arith.constant 40 : index
    %c0_116 = arith.constant 0 : index
    %139 = vector.load %arg17[%c40, %c0_116] : memref<64x256xf32, #tpu.memory_space<vmem>>, vector<8x128xf32>
    %140 = arith.truncf %139 : vector<8x128xf32> to vector<8x128xbf16>
    %c384_117 = arith.constant 384 : index
    %c0_118 = arith.constant 0 : index
    %141 = vector.load %arg4[%c384_117, %c0_118] : memref<512x64xbf16, #tpu.memory_space<vmem>>, vector<128x64xbf16>
    %cst_119 = arith.constant dense<0.000000e+00> : vector<8x64xf32>
    %142 = tpu.matmul %140, %141, %cst_119 {dimension_numbers = #tpu.dot_dimension_numbers<[1], [0], [0], [1], [0, 0, 1, 1], [], []>} : vector<8x128xbf16>, vector<128x64xbf16>, vector<8x64xf32> -> vector<8x64xf32>
    %143 = arith.addf %138, %142 : vector<8x64xf32>
    %cst_120 = arith.constant 0.000000e+00 : f32
    %144 = vector.broadcast %cst_120 : f32 to vector<8x64xf32>
    %145 = arith.maximumf %143, %144 : vector<8x64xf32>
    %146 = arith.truncf %145 : vector<8x64xf32> to vector<8x64xbf16>
    %c16_121 = arith.constant 16 : index
    %c64_122 = arith.constant 64 : index
    %147 = vector.load %arg17[%c16_121, %c64_122] : memref<64x256xf32, #tpu.memory_space<vmem>>, vector<8x128xf32>
    %148 = arith.truncf %147 : vector<8x128xf32> to vector<8x128xbf16>
    %c0_123 = arith.constant 0 : index
    %c0_124 = arith.constant 0 : index
    %149 = vector.load %arg4[%c0_123, %c0_124] : memref<512x64xbf16, #tpu.memory_space<vmem>>, vector<128x64xbf16>
    %cst_125 = arith.constant dense<0.000000e+00> : vector<8x64xf32>
    %150 = tpu.matmul %148, %149, %cst_125 {dimension_numbers = #tpu.dot_dimension_numbers<[1], [0], [0], [1], [0, 0, 1, 1], [], []>} : vector<8x128xbf16>, vector<128x64xbf16>, vector<8x64xf32> -> vector<8x64xf32>
    %151 = arith.addf %54, %150 : vector<8x64xf32>
    %c24_126 = arith.constant 24 : index
    %c64_127 = arith.constant 64 : index
    %152 = vector.load %arg17[%c24_126, %c64_127] : memref<64x256xf32, #tpu.memory_space<vmem>>, vector<8x128xf32>
    %153 = arith.truncf %152 : vector<8x128xf32> to vector<8x128xbf16>
    %c128_128 = arith.constant 128 : index
    %c0_129 = arith.constant 0 : index
    %154 = vector.load %arg4[%c128_128, %c0_129] : memref<512x64xbf16, #tpu.memory_space<vmem>>, vector<128x64xbf16>
    %cst_130 = arith.constant dense<0.000000e+00> : vector<8x64xf32>
    %155 = tpu.matmul %153, %154, %cst_130 {dimension_numbers = #tpu.dot_dimension_numbers<[1], [0], [0], [1], [0, 0, 1, 1], [], []>} : vector<8x128xbf16>, vector<128x64xbf16>, vector<8x64xf32> -> vector<8x64xf32>
    %156 = arith.addf %151, %155 : vector<8x64xf32>
    %c32_131 = arith.constant 32 : index
    %c64_132 = arith.constant 64 : index
    %157 = vector.load %arg17[%c32_131, %c64_132] : memref<64x256xf32, #tpu.memory_space<vmem>>, vector<8x128xf32>
    %158 = arith.truncf %157 : vector<8x128xf32> to vector<8x128xbf16>
    %c256_133 = arith.constant 256 : index
    %c0_134 = arith.constant 0 : index
    %159 = vector.load %arg4[%c256_133, %c0_134] : memref<512x64xbf16, #tpu.memory_space<vmem>>, vector<128x64xbf16>
    %cst_135 = arith.constant dense<0.000000e+00> : vector<8x64xf32>
    %160 = tpu.matmul %158, %159, %cst_135 {dimension_numbers = #tpu.dot_dimension_numbers<[1], [0], [0], [1], [0, 0, 1, 1], [], []>} : vector<8x128xbf16>, vector<128x64xbf16>, vector<8x64xf32> -> vector<8x64xf32>
    %161 = arith.addf %156, %160 : vector<8x64xf32>
    %c40_136 = arith.constant 40 : index
    %c64_137 = arith.constant 64 : index
    %162 = vector.load %arg17[%c40_136, %c64_137] : memref<64x256xf32, #tpu.memory_space<vmem>>, vector<8x128xf32>
    %163 = arith.truncf %162 : vector<8x128xf32> to vector<8x128xbf16>
    %c384_138 = arith.constant 384 : index
    %c0_139 = arith.constant 0 : index
    %164 = vector.load %arg4[%c384_138, %c0_139] : memref<512x64xbf16, #tpu.memory_space<vmem>>, vector<128x64xbf16>
    %cst_140 = arith.constant dense<0.000000e+00> : vector<8x64xf32>
    %165 = tpu.matmul %163, %164, %cst_140 {dimension_numbers = #tpu.dot_dimension_numbers<[1], [0], [0], [1], [0, 0, 1, 1], [], []>} : vector<8x128xbf16>, vector<128x64xbf16>, vector<8x64xf32> -> vector<8x64xf32>
    %166 = arith.addf %161, %165 : vector<8x64xf32>
    %cst_141 = arith.constant 0.000000e+00 : f32
    %167 = vector.broadcast %cst_141 : f32 to vector<8x64xf32>
    %168 = arith.maximumf %166, %167 : vector<8x64xf32>
    %169 = arith.truncf %168 : vector<8x64xf32> to vector<8x64xbf16>
    %c16_142 = arith.constant 16 : index
    %c128_143 = arith.constant 128 : index
    %170 = vector.load %arg17[%c16_142, %c128_143] : memref<64x256xf32, #tpu.memory_space<vmem>>, vector<8x128xf32>
    %171 = arith.truncf %170 : vector<8x128xf32> to vector<8x128xbf16>
    %c0_144 = arith.constant 0 : index
    %c0_145 = arith.constant 0 : index
    %172 = vector.load %arg4[%c0_144, %c0_145] : memref<512x64xbf16, #tpu.memory_space<vmem>>, vector<128x64xbf16>
    %cst_146 = arith.constant dense<0.000000e+00> : vector<8x64xf32>
    %173 = tpu.matmul %171, %172, %cst_146 {dimension_numbers = #tpu.dot_dimension_numbers<[1], [0], [0], [1], [0, 0, 1, 1], [], []>} : vector<8x128xbf16>, vector<128x64xbf16>, vector<8x64xf32> -> vector<8x64xf32>
    %174 = arith.addf %54, %173 : vector<8x64xf32>
    %c24_147 = arith.constant 24 : index
    %c128_148 = arith.constant 128 : index
    %175 = vector.load %arg17[%c24_147, %c128_148] : memref<64x256xf32, #tpu.memory_space<vmem>>, vector<8x128xf32>
    %176 = arith.truncf %175 : vector<8x128xf32> to vector<8x128xbf16>
    %c128_149 = arith.constant 128 : index
    %c0_150 = arith.constant 0 : index
    %177 = vector.load %arg4[%c128_149, %c0_150] : memref<512x64xbf16, #tpu.memory_space<vmem>>, vector<128x64xbf16>
    %cst_151 = arith.constant dense<0.000000e+00> : vector<8x64xf32>
    %178 = tpu.matmul %176, %177, %cst_151 {dimension_numbers = #tpu.dot_dimension_numbers<[1], [0], [0], [1], [0, 0, 1, 1], [], []>} : vector<8x128xbf16>, vector<128x64xbf16>, vector<8x64xf32> -> vector<8x64xf32>
    %179 = arith.addf %174, %178 : vector<8x64xf32>
    %c32_152 = arith.constant 32 : index
    %c128_153 = arith.constant 128 : index
    %180 = vector.load %arg17[%c32_152, %c128_153] : memref<64x256xf32, #tpu.memory_space<vmem>>, vector<8x128xf32>
    %181 = arith.truncf %180 : vector<8x128xf32> to vector<8x128xbf16>
    %c256_154 = arith.constant 256 : index
    %c0_155 = arith.constant 0 : index
    %182 = vector.load %arg4[%c256_154, %c0_155] : memref<512x64xbf16, #tpu.memory_space<vmem>>, vector<128x64xbf16>
    %cst_156 = arith.constant dense<0.000000e+00> : vector<8x64xf32>
    %183 = tpu.matmul %181, %182, %cst_156 {dimension_numbers = #tpu.dot_dimension_numbers<[1], [0], [0], [1], [0, 0, 1, 1], [], []>} : vector<8x128xbf16>, vector<128x64xbf16>, vector<8x64xf32> -> vector<8x64xf32>
    %184 = arith.addf %179, %183 : vector<8x64xf32>
    %c40_157 = arith.constant 40 : index
    %c128_158 = arith.constant 128 : index
    %185 = vector.load %arg17[%c40_157, %c128_158] : memref<64x256xf32, #tpu.memory_space<vmem>>, vector<8x128xf32>
    %186 = arith.truncf %185 : vector<8x128xf32> to vector<8x128xbf16>
    %c384_159 = arith.constant 384 : index
    %c0_160 = arith.constant 0 : index
    %187 = vector.load %arg4[%c384_159, %c0_160] : memref<512x64xbf16, #tpu.memory_space<vmem>>, vector<128x64xbf16>
    %cst_161 = arith.constant dense<0.000000e+00> : vector<8x64xf32>
    %188 = tpu.matmul %186, %187, %cst_161 {dimension_numbers = #tpu.dot_dimension_numbers<[1], [0], [0], [1], [0, 0, 1, 1], [], []>} : vector<8x128xbf16>, vector<128x64xbf16>, vector<8x64xf32> -> vector<8x64xf32>
    %189 = arith.addf %184, %188 : vector<8x64xf32>
    %cst_162 = arith.constant 0.000000e+00 : f32
    %190 = vector.broadcast %cst_162 : f32 to vector<8x64xf32>
    %191 = arith.maximumf %189, %190 : vector<8x64xf32>
    %192 = arith.truncf %191 : vector<8x64xf32> to vector<8x64xbf16>
    %c32_163 = arith.constant 32 : index
    %c0_164 = arith.constant 0 : index
    %193 = vector.load %arg17[%c32_163, %c0_164] : memref<64x256xf32, #tpu.memory_space<vmem>>, vector<8x128xf32>
    %194 = arith.truncf %193 : vector<8x128xf32> to vector<8x128xbf16>
    %c0_165 = arith.constant 0 : index
    %c0_166 = arith.constant 0 : index
    %195 = vector.load %arg4[%c0_165, %c0_166] : memref<512x64xbf16, #tpu.memory_space<vmem>>, vector<128x64xbf16>
    %cst_167 = arith.constant dense<0.000000e+00> : vector<8x64xf32>
    %196 = tpu.matmul %194, %195, %cst_167 {dimension_numbers = #tpu.dot_dimension_numbers<[1], [0], [0], [1], [0, 0, 1, 1], [], []>} : vector<8x128xbf16>, vector<128x64xbf16>, vector<8x64xf32> -> vector<8x64xf32>
    %197 = arith.addf %54, %196 : vector<8x64xf32>
    %c40_168 = arith.constant 40 : index
    %c0_169 = arith.constant 0 : index
    %198 = vector.load %arg17[%c40_168, %c0_169] : memref<64x256xf32, #tpu.memory_space<vmem>>, vector<8x128xf32>
    %199 = arith.truncf %198 : vector<8x128xf32> to vector<8x128xbf16>
    %c128_170 = arith.constant 128 : index
    %c0_171 = arith.constant 0 : index
    %200 = vector.load %arg4[%c128_170, %c0_171] : memref<512x64xbf16, #tpu.memory_space<vmem>>, vector<128x64xbf16>
    %cst_172 = arith.constant dense<0.000000e+00> : vector<8x64xf32>
    %201 = tpu.matmul %199, %200, %cst_172 {dimension_numbers = #tpu.dot_dimension_numbers<[1], [0], [0], [1], [0, 0, 1, 1], [], []>} : vector<8x128xbf16>, vector<128x64xbf16>, vector<8x64xf32> -> vector<8x64xf32>
    %202 = arith.addf %197, %201 : vector<8x64xf32>
    %c48 = arith.constant 48 : index
    %c0_173 = arith.constant 0 : index
    %203 = vector.load %arg17[%c48, %c0_173] : memref<64x256xf32, #tpu.memory_space<vmem>>, vector<8x128xf32>
    %204 = arith.truncf %203 : vector<8x128xf32> to vector<8x128xbf16>
    %c256_174 = arith.constant 256 : index
    %c0_175 = arith.constant 0 : index
    %205 = vector.load %arg4[%c256_174, %c0_175] : memref<512x64xbf16, #tpu.memory_space<vmem>>, vector<128x64xbf16>
    %cst_176 = arith.constant dense<0.000000e+00> : vector<8x64xf32>
    %206 = tpu.matmul %204, %205, %cst_176 {dimension_numbers = #tpu.dot_dimension_numbers<[1], [0], [0], [1], [0, 0, 1, 1], [], []>} : vector<8x128xbf16>, vector<128x64xbf16>, vector<8x64xf32> -> vector<8x64xf32>
    %207 = arith.addf %202, %206 : vector<8x64xf32>
    %c56 = arith.constant 56 : index
    %c0_177 = arith.constant 0 : index
    %208 = vector.load %arg17[%c56, %c0_177] : memref<64x256xf32, #tpu.memory_space<vmem>>, vector<8x128xf32>
    %209 = arith.truncf %208 : vector<8x128xf32> to vector<8x128xbf16>
    %c384_178 = arith.constant 384 : index
    %c0_179 = arith.constant 0 : index
    %210 = vector.load %arg4[%c384_178, %c0_179] : memref<512x64xbf16, #tpu.memory_space<vmem>>, vector<128x64xbf16>
    %cst_180 = arith.constant dense<0.000000e+00> : vector<8x64xf32>
    %211 = tpu.matmul %209, %210, %cst_180 {dimension_numbers = #tpu.dot_dimension_numbers<[1], [0], [0], [1], [0, 0, 1, 1], [], []>} : vector<8x128xbf16>, vector<128x64xbf16>, vector<8x64xf32> -> vector<8x64xf32>
    %212 = arith.addf %207, %211 : vector<8x64xf32>
    %cst_181 = arith.constant 0.000000e+00 : f32
    %213 = vector.broadcast %cst_181 : f32 to vector<8x64xf32>
    %214 = arith.maximumf %212, %213 : vector<8x64xf32>
    %215 = arith.truncf %214 : vector<8x64xf32> to vector<8x64xbf16>
    %c32_182 = arith.constant 32 : index
    %c64_183 = arith.constant 64 : index
    %216 = vector.load %arg17[%c32_182, %c64_183] : memref<64x256xf32, #tpu.memory_space<vmem>>, vector<8x128xf32>
    %217 = arith.truncf %216 : vector<8x128xf32> to vector<8x128xbf16>
    %c0_184 = arith.constant 0 : index
    %c0_185 = arith.constant 0 : index
    %218 = vector.load %arg4[%c0_184, %c0_185] : memref<512x64xbf16, #tpu.memory_space<vmem>>, vector<128x64xbf16>
    %cst_186 = arith.constant dense<0.000000e+00> : vector<8x64xf32>
    %219 = tpu.matmul %217, %218, %cst_186 {dimension_numbers = #tpu.dot_dimension_numbers<[1], [0], [0], [1], [0, 0, 1, 1], [], []>} : vector<8x128xbf16>, vector<128x64xbf16>, vector<8x64xf32> -> vector<8x64xf32>
    %220 = arith.addf %54, %219 : vector<8x64xf32>
    %c40_187 = arith.constant 40 : index
    %c64_188 = arith.constant 64 : index
    %221 = vector.load %arg17[%c40_187, %c64_188] : memref<64x256xf32, #tpu.memory_space<vmem>>, vector<8x128xf32>
    %222 = arith.truncf %221 : vector<8x128xf32> to vector<8x128xbf16>
    %c128_189 = arith.constant 128 : index
    %c0_190 = arith.constant 0 : index
    %223 = vector.load %arg4[%c128_189, %c0_190] : memref<512x64xbf16, #tpu.memory_space<vmem>>, vector<128x64xbf16>
    %cst_191 = arith.constant dense<0.000000e+00> : vector<8x64xf32>
    %224 = tpu.matmul %222, %223, %cst_191 {dimension_numbers = #tpu.dot_dimension_numbers<[1], [0], [0], [1], [0, 0, 1, 1], [], []>} : vector<8x128xbf16>, vector<128x64xbf16>, vector<8x64xf32> -> vector<8x64xf32>
    %225 = arith.addf %220, %224 : vector<8x64xf32>
    %c48_192 = arith.constant 48 : index
    %c64_193 = arith.constant 64 : index
    %226 = vector.load %arg17[%c48_192, %c64_193] : memref<64x256xf32, #tpu.memory_space<vmem>>, vector<8x128xf32>
    %227 = arith.truncf %226 : vector<8x128xf32> to vector<8x128xbf16>
    %c256_194 = arith.constant 256 : index
    %c0_195 = arith.constant 0 : index
    %228 = vector.load %arg4[%c256_194, %c0_195] : memref<512x64xbf16, #tpu.memory_space<vmem>>, vector<128x64xbf16>
    %cst_196 = arith.constant dense<0.000000e+00> : vector<8x64xf32>
    %229 = tpu.matmul %227, %228, %cst_196 {dimension_numbers = #tpu.dot_dimension_numbers<[1], [0], [0], [1], [0, 0, 1, 1], [], []>} : vector<8x128xbf16>, vector<128x64xbf16>, vector<8x64xf32> -> vector<8x64xf32>
    %230 = arith.addf %225, %229 : vector<8x64xf32>
    %c56_197 = arith.constant 56 : index
    %c64_198 = arith.constant 64 : index
    %231 = vector.load %arg17[%c56_197, %c64_198] : memref<64x256xf32, #tpu.memory_space<vmem>>, vector<8x128xf32>
    %232 = arith.truncf %231 : vector<8x128xf32> to vector<8x128xbf16>
    %c384_199 = arith.constant 384 : index
    %c0_200 = arith.constant 0 : index
    %233 = vector.load %arg4[%c384_199, %c0_200] : memref<512x64xbf16, #tpu.memory_space<vmem>>, vector<128x64xbf16>
    %cst_201 = arith.constant dense<0.000000e+00> : vector<8x64xf32>
    %234 = tpu.matmul %232, %233, %cst_201 {dimension_numbers = #tpu.dot_dimension_numbers<[1], [0], [0], [1], [0, 0, 1, 1], [], []>} : vector<8x128xbf16>, vector<128x64xbf16>, vector<8x64xf32> -> vector<8x64xf32>
    %235 = arith.addf %230, %234 : vector<8x64xf32>
    %cst_202 = arith.constant 0.000000e+00 : f32
    %236 = vector.broadcast %cst_202 : f32 to vector<8x64xf32>
    %237 = arith.maximumf %235, %236 : vector<8x64xf32>
    %238 = arith.truncf %237 : vector<8x64xf32> to vector<8x64xbf16>
    %c32_203 = arith.constant 32 : index
    %c128_204 = arith.constant 128 : index
    %239 = vector.load %arg17[%c32_203, %c128_204] : memref<64x256xf32, #tpu.memory_space<vmem>>, vector<8x128xf32>
    %240 = arith.truncf %239 : vector<8x128xf32> to vector<8x128xbf16>
    %c0_205 = arith.constant 0 : index
    %c0_206 = arith.constant 0 : index
    %241 = vector.load %arg4[%c0_205, %c0_206] : memref<512x64xbf16, #tpu.memory_space<vmem>>, vector<128x64xbf16>
    %cst_207 = arith.constant dense<0.000000e+00> : vector<8x64xf32>
    %242 = tpu.matmul %240, %241, %cst_207 {dimension_numbers = #tpu.dot_dimension_numbers<[1], [0], [0], [1], [0, 0, 1, 1], [], []>} : vector<8x128xbf16>, vector<128x64xbf16>, vector<8x64xf32> -> vector<8x64xf32>
    %243 = arith.addf %54, %242 : vector<8x64xf32>
    %c40_208 = arith.constant 40 : index
    %c128_209 = arith.constant 128 : index
    %244 = vector.load %arg17[%c40_208, %c128_209] : memref<64x256xf32, #tpu.memory_space<vmem>>, vector<8x128xf32>
    %245 = arith.truncf %244 : vector<8x128xf32> to vector<8x128xbf16>
    %c128_210 = arith.constant 128 : index
    %c0_211 = arith.constant 0 : index
    %246 = vector.load %arg4[%c128_210, %c0_211] : memref<512x64xbf16, #tpu.memory_space<vmem>>, vector<128x64xbf16>
    %cst_212 = arith.constant dense<0.000000e+00> : vector<8x64xf32>
    %247 = tpu.matmul %245, %246, %cst_212 {dimension_numbers = #tpu.dot_dimension_numbers<[1], [0], [0], [1], [0, 0, 1, 1], [], []>} : vector<8x128xbf16>, vector<128x64xbf16>, vector<8x64xf32> -> vector<8x64xf32>
    %248 = arith.addf %243, %247 : vector<8x64xf32>
    %c48_213 = arith.constant 48 : index
    %c128_214 = arith.constant 128 : index
    %249 = vector.load %arg17[%c48_213, %c128_214] : memref<64x256xf32, #tpu.memory_space<vmem>>, vector<8x128xf32>
    %250 = arith.truncf %249 : vector<8x128xf32> to vector<8x128xbf16>
    %c256_215 = arith.constant 256 : index
    %c0_216 = arith.constant 0 : index
    %251 = vector.load %arg4[%c256_215, %c0_216] : memref<512x64xbf16, #tpu.memory_space<vmem>>, vector<128x64xbf16>
    %cst_217 = arith.constant dense<0.000000e+00> : vector<8x64xf32>
    %252 = tpu.matmul %250, %251, %cst_217 {dimension_numbers = #tpu.dot_dimension_numbers<[1], [0], [0], [1], [0, 0, 1, 1], [], []>} : vector<8x128xbf16>, vector<128x64xbf16>, vector<8x64xf32> -> vector<8x64xf32>
    %253 = arith.addf %248, %252 : vector<8x64xf32>
    %c56_218 = arith.constant 56 : index
    %c128_219 = arith.constant 128 : index
    %254 = vector.load %arg17[%c56_218, %c128_219] : memref<64x256xf32, #tpu.memory_space<vmem>>, vector<8x128xf32>
    %255 = arith.truncf %254 : vector<8x128xf32> to vector<8x128xbf16>
    %c384_220 = arith.constant 384 : index
    %c0_221 = arith.constant 0 : index
    %256 = vector.load %arg4[%c384_220, %c0_221] : memref<512x64xbf16, #tpu.memory_space<vmem>>, vector<128x64xbf16>
    %cst_222 = arith.constant dense<0.000000e+00> : vector<8x64xf32>
    %257 = tpu.matmul %255, %256, %cst_222 {dimension_numbers = #tpu.dot_dimension_numbers<[1], [0], [0], [1], [0, 0, 1, 1], [], []>} : vector<8x128xbf16>, vector<128x64xbf16>, vector<8x64xf32> -> vector<8x64xf32>
    %258 = arith.addf %253, %257 : vector<8x64xf32>
    %cst_223 = arith.constant 0.000000e+00 : f32
    %259 = vector.broadcast %cst_223 : f32 to vector<8x64xf32>
    %260 = arith.maximumf %258, %259 : vector<8x64xf32>
    %261 = arith.truncf %260 : vector<8x64xf32> to vector<8x64xbf16>
    %c0_224 = arith.constant 0 : index
    %c0_225 = arith.constant 0 : index
    %262 = vector.load %arg7[%c0_224, %c0_225] : memref<1x64xf32, #tpu.memory_space<vmem>>, vector<1x64xf32>
    %263 = vector.shape_cast %262 : vector<1x64xf32> to vector<1x64xf32>
    %264 = vector.broadcast %263 : vector<1x64xf32> to vector<8x64xf32>
    %c0_226 = arith.constant 0 : index
    %c0_227 = arith.constant 0 : index
    %265 = vector.load %arg6[%c0_226, %c0_227] : memref<576x64xbf16, #tpu.memory_space<vmem>>, vector<64x64xbf16>
    %cst_228 = arith.constant dense<0.000000e+00> : vector<8x64xf32>
    %266 = tpu.matmul %77, %265, %cst_228 {dimension_numbers = #tpu.dot_dimension_numbers<[1], [0], [0], [1], [0, 0, 1, 1], [], []>} : vector<8x64xbf16>, vector<64x64xbf16>, vector<8x64xf32> -> vector<8x64xf32>
    %267 = arith.addf %264, %266 : vector<8x64xf32>
    %c64_229 = arith.constant 64 : index
    %c0_230 = arith.constant 0 : index
    %268 = vector.load %arg6[%c64_229, %c0_230] : memref<576x64xbf16, #tpu.memory_space<vmem>>, vector<64x64xbf16>
    %cst_231 = arith.constant dense<0.000000e+00> : vector<8x64xf32>
    %269 = tpu.matmul %100, %268, %cst_231 {dimension_numbers = #tpu.dot_dimension_numbers<[1], [0], [0], [1], [0, 0, 1, 1], [], []>} : vector<8x64xbf16>, vector<64x64xbf16>, vector<8x64xf32> -> vector<8x64xf32>
    %270 = arith.addf %267, %269 : vector<8x64xf32>
    %c128_232 = arith.constant 128 : index
    %c0_233 = arith.constant 0 : index
    %271 = vector.load %arg6[%c128_232, %c0_233] : memref<576x64xbf16, #tpu.memory_space<vmem>>, vector<64x64xbf16>
    %cst_234 = arith.constant dense<0.000000e+00> : vector<8x64xf32>
    %272 = tpu.matmul %123, %271, %cst_234 {dimension_numbers = #tpu.dot_dimension_numbers<[1], [0], [0], [1], [0, 0, 1, 1], [], []>} : vector<8x64xbf16>, vector<64x64xbf16>, vector<8x64xf32> -> vector<8x64xf32>
    %273 = arith.addf %270, %272 : vector<8x64xf32>
    %c192_235 = arith.constant 192 : index
    %c0_236 = arith.constant 0 : index
    %274 = vector.load %arg6[%c192_235, %c0_236] : memref<576x64xbf16, #tpu.memory_space<vmem>>, vector<64x64xbf16>
    %cst_237 = arith.constant dense<0.000000e+00> : vector<8x64xf32>
    %275 = tpu.matmul %146, %274, %cst_237 {dimension_numbers = #tpu.dot_dimension_numbers<[1], [0], [0], [1], [0, 0, 1, 1], [], []>} : vector<8x64xbf16>, vector<64x64xbf16>, vector<8x64xf32> -> vector<8x64xf32>
    %276 = arith.addf %273, %275 : vector<8x64xf32>
    %c256_238 = arith.constant 256 : index
    %c0_239 = arith.constant 0 : index
    %277 = vector.load %arg6[%c256_238, %c0_239] : memref<576x64xbf16, #tpu.memory_space<vmem>>, vector<64x64xbf16>
    %cst_240 = arith.constant dense<0.000000e+00> : vector<8x64xf32>
    %278 = tpu.matmul %169, %277, %cst_240 {dimension_numbers = #tpu.dot_dimension_numbers<[1], [0], [0], [1], [0, 0, 1, 1], [], []>} : vector<8x64xbf16>, vector<64x64xbf16>, vector<8x64xf32> -> vector<8x64xf32>
    %279 = arith.addf %276, %278 : vector<8x64xf32>
    %c320_241 = arith.constant 320 : index
    %c0_242 = arith.constant 0 : index
    %280 = vector.load %arg6[%c320_241, %c0_242] : memref<576x64xbf16, #tpu.memory_space<vmem>>, vector<64x64xbf16>
    %cst_243 = arith.constant dense<0.000000e+00> : vector<8x64xf32>
    %281 = tpu.matmul %192, %280, %cst_243 {dimension_numbers = #tpu.dot_dimension_numbers<[1], [0], [0], [1], [0, 0, 1, 1], [], []>} : vector<8x64xbf16>, vector<64x64xbf16>, vector<8x64xf32> -> vector<8x64xf32>
    %282 = arith.addf %279, %281 : vector<8x64xf32>
    %c384_244 = arith.constant 384 : index
    %c0_245 = arith.constant 0 : index
    %283 = vector.load %arg6[%c384_244, %c0_245] : memref<576x64xbf16, #tpu.memory_space<vmem>>, vector<64x64xbf16>
    %cst_246 = arith.constant dense<0.000000e+00> : vector<8x64xf32>
    %284 = tpu.matmul %215, %283, %cst_246 {dimension_numbers = #tpu.dot_dimension_numbers<[1], [0], [0], [1], [0, 0, 1, 1], [], []>} : vector<8x64xbf16>, vector<64x64xbf16>, vector<8x64xf32> -> vector<8x64xf32>
    %285 = arith.addf %282, %284 : vector<8x64xf32>
    %c448_247 = arith.constant 448 : index
    %c0_248 = arith.constant 0 : index
    %286 = vector.load %arg6[%c448_247, %c0_248] : memref<576x64xbf16, #tpu.memory_space<vmem>>, vector<64x64xbf16>
    %cst_249 = arith.constant dense<0.000000e+00> : vector<8x64xf32>
    %287 = tpu.matmul %238, %286, %cst_249 {dimension_numbers = #tpu.dot_dimension_numbers<[1], [0], [0], [1], [0, 0, 1, 1], [], []>} : vector<8x64xbf16>, vector<64x64xbf16>, vector<8x64xf32> -> vector<8x64xf32>
    %288 = arith.addf %285, %287 : vector<8x64xf32>
    %c512 = arith.constant 512 : index
    %c0_250 = arith.constant 0 : index
    %289 = vector.load %arg6[%c512, %c0_250] : memref<576x64xbf16, #tpu.memory_space<vmem>>, vector<64x64xbf16>
    %cst_251 = arith.constant dense<0.000000e+00> : vector<8x64xf32>
    %290 = tpu.matmul %261, %289, %cst_251 {dimension_numbers = #tpu.dot_dimension_numbers<[1], [0], [0], [1], [0, 0, 1, 1], [], []>} : vector<8x64xbf16>, vector<64x64xbf16>, vector<8x64xf32> -> vector<8x64xf32>
    %291 = arith.addf %288, %290 : vector<8x64xf32>
    %cst_252 = arith.constant 0.000000e+00 : f32
    %292 = vector.broadcast %cst_252 : f32 to vector<8x64xf32>
    %293 = arith.maximumf %291, %292 : vector<8x64xf32>
    %294 = arith.truncf %293 : vector<8x64xf32> to vector<8x64xbf16>
    %c0_253 = arith.constant 0 : index
    %c0_254 = arith.constant 0 : index
    %295 = vector.load %arg9[%c0_253, %c0_254] : memref<1x512xf32, #tpu.memory_space<vmem>>, vector<1x512xf32>
    %296 = vector.shape_cast %295 : vector<1x512xf32> to vector<1x512xf32>
    %297 = vector.broadcast %296 : vector<1x512xf32> to vector<8x512xf32>
    %c0_255 = arith.constant 0 : index
    %c0_256 = arith.constant 0 : index
    %298 = vector.load %arg8[%c0_255, %c0_256] : memref<64x512xbf16, #tpu.memory_space<vmem>>, vector<64x512xbf16>
    %cst_257 = arith.constant dense<0.000000e+00> : vector<8x512xf32>
    %299 = tpu.matmul %294, %298, %cst_257 {dimension_numbers = #tpu.dot_dimension_numbers<[1], [0], [0], [1], [0, 0, 1, 1], [], []>} : vector<8x64xbf16>, vector<64x512xbf16>, vector<8x512xf32> -> vector<8x512xf32>
    %300 = arith.addf %297, %299 : vector<8x512xf32>
    %cst_258 = arith.constant 0.000000e+00 : f32
    %301 = vector.broadcast %cst_258 : f32 to vector<8x512xf32>
    %302 = arith.maximumf %300, %301 : vector<8x512xf32>
    %303 = arith.truncf %302 : vector<8x512xf32> to vector<8x512xbf16>
    %c0_259 = arith.constant 0 : index
    %c0_260 = arith.constant 0 : index
    %304 = vector.load %arg10[%c0_259, %c0_260] : memref<512x256xbf16, #tpu.memory_space<vmem>>, vector<512x256xbf16>
    %cst_261 = arith.constant dense<0.000000e+00> : vector<8x256xf32>
    %305 = tpu.matmul %303, %304, %cst_261 {dimension_numbers = #tpu.dot_dimension_numbers<[1], [0], [0], [1], [0, 0, 1, 1], [], []>} : vector<8x512xbf16>, vector<512x256xbf16>, vector<8x256xf32> -> vector<8x256xf32>
    %c0_262 = arith.constant 0 : index
    %c0_263 = arith.constant 0 : index
    %306 = vector.load %arg11[%c0_262, %c0_263] : memref<1x256xf32, #tpu.memory_space<vmem>>, vector<1x256xf32>
    %307 = vector.broadcast %306 : vector<1x256xf32> to vector<8x256xf32>
    %308 = arith.addf %305, %307 : vector<8x256xf32>
    %cst_264 = arith.constant 0.000000e+00 : f32
    %309 = vector.broadcast %cst_264 : f32 to vector<8x256xf32>
    %310 = arith.maximumf %308, %309 : vector<8x256xf32>
    %311 = arith.truncf %310 : vector<8x256xf32> to vector<8x256xbf16>
    %c0_265 = arith.constant 0 : index
    %c0_266 = arith.constant 0 : index
    %312 = vector.load %arg12[%c0_265, %c0_266] : memref<256x3xbf16, #tpu.memory_space<vmem>>, vector<256x3xbf16>
    %cst_267 = arith.constant dense<0.000000e+00> : vector<8x3xf32>
    %313 = tpu.matmul %311, %312, %cst_267 {dimension_numbers = #tpu.dot_dimension_numbers<[1], [0], [0], [1], [0, 0, 1, 1], [], []>} : vector<8x256xbf16>, vector<256x3xbf16>, vector<8x3xf32> -> vector<8x3xf32>
    %c0_268 = arith.constant 0 : index
    %c0_269 = arith.constant 0 : index
    %314 = vector.load %arg13[%c0_268, %c0_269] : memref<1x3xf32, #tpu.memory_space<vmem>>, vector<1x3xf32>
    %315 = vector.broadcast %314 : vector<1x3xf32> to vector<8x3xf32>
    %316 = arith.addf %313, %315 : vector<8x3xf32>
    %c0_270 = arith.constant 0 : index
    %c0_271 = arith.constant 0 : index
    %317 = vector.load %arg14[%c0_270, %c0_271] : memref<1x3xf32, #tpu.memory_space<vmem>>, vector<1x3xf32>
    %c0_272 = arith.constant 0 : index
    %c0_273 = arith.constant 0 : index
    %318 = vector.load %arg15[%c0_272, %c0_273] : memref<1x3xf32, #tpu.memory_space<vmem>>, vector<1x3xf32>
    %319 = arith.subf %317, %318 : vector<1x3xf32>
    %cst_274 = arith.constant 5.000000e-01 : f32
    %320 = vector.broadcast %cst_274 : f32 to vector<1x3xf32>
    %321 = arith.mulf %319, %320 : vector<1x3xf32>
    %322 = math.tanh %316 : vector<8x3xf32>
    %323 = vector.broadcast %321 : vector<1x3xf32> to vector<8x3xf32>
    %324 = arith.mulf %323, %322 : vector<8x3xf32>
    %325 = arith.addf %317, %318 : vector<1x3xf32>
    %cst_275 = arith.constant 5.000000e-01 : f32
    %326 = vector.broadcast %cst_275 : f32 to vector<1x3xf32>
    %327 = arith.mulf %325, %326 : vector<1x3xf32>
    %328 = vector.broadcast %327 : vector<1x3xf32> to vector<8x3xf32>
    %329 = arith.addf %324, %328 : vector<8x3xf32>
    %c0_276 = arith.constant 0 : index
    %c0_277 = arith.constant 0 : index
    %330 = vector.load %arg16[%c0_276, %c0_277] : memref<8x3xf32, #tpu.memory_space<vmem>>, vector<8x3xf32>
    tpu.vector_store %arg16[%c0_276, %c0_277], %329 {strides = array<i32>} : memref<8x3xf32, #tpu.memory_space<vmem>>, vector<8x3xf32>,
    return
  }
  func.func @transform_0(%arg0: i32) -> (i32, i32) {
    %c0_i32 = arith.constant 0 : i32
    %c0_i32_0 = arith.constant 0 : i32
    return %arg0, %c0_i32 : i32, i32
  }
  func.func @transform_1(%arg0: i32) -> (i32, i32) {
    %c0_i32 = arith.constant 0 : i32
    %c0_i32_0 = arith.constant 0 : i32
    %c0_i32_1 = arith.constant 0 : i32
    return %c0_i32, %c0_i32_0 : i32, i32
  }
  func.func @transform_2(%arg0: i32) -> (i32, i32) {
    %c0_i32 = arith.constant 0 : i32
    %c0_i32_0 = arith.constant 0 : i32
    %c0_i32_1 = arith.constant 0 : i32
    return %c0_i32, %c0_i32_0 : i32, i32
  }
  func.func @transform_3(%arg0: i32) -> (i32, i32) {
    %c0_i32 = arith.constant 0 : i32
    %c0_i32_0 = arith.constant 0 : i32
    %c0_i32_1 = arith.constant 0 : i32
    return %c0_i32, %c0_i32_0 : i32, i32
  }
  func.func @transform_4(%arg0: i32) -> (i32, i32) {
    %c0_i32 = arith.constant 0 : i32
    %c0_i32_0 = arith.constant 0 : i32
    %c0_i32_1 = arith.constant 0 : i32
    return %c0_i32, %c0_i32_0 : i32, i32
  }
  func.func @transform_5(%arg0: i32) -> (i32, i32) {
    %c0_i32 = arith.constant 0 : i32
    %c0_i32_0 = arith.constant 0 : i32
    %c0_i32_1 = arith.constant 0 : i32
    return %c0_i32, %c0_i32_0 : i32, i32
  }
  func.func @transform_6(%arg0: i32) -> (i32, i32) {
    %c0_i32 = arith.constant 0 : i32
    %c0_i32_0 = arith.constant 0 : i32
    %c0_i32_1 = arith.constant 0 : i32
    return %c0_i32, %c0_i32_0 : i32, i32
  }
  func.func @transform_7(%arg0: i32) -> (i32, i32) {
    %c0_i32 = arith.constant 0 : i32
    %c0_i32_0 = arith.constant 0 : i32
    %c0_i32_1 = arith.constant 0 : i32
    return %c0_i32, %c0_i32_0 : i32, i32
  }
  func.func @transform_8(%arg0: i32) -> (i32, i32) {
    %c0_i32 = arith.constant 0 : i32
    %c0_i32_0 = arith.constant 0 : i32
    %c0_i32_1 = arith.constant 0 : i32
    return %c0_i32, %c0_i32_0 : i32, i32
  }
  func.func @transform_9(%arg0: i32) -> (i32, i32) {
    %c0_i32 = arith.constant 0 : i32
    %c0_i32_0 = arith.constant 0 : i32
    %c0_i32_1 = arith.constant 0 : i32
    return %c0_i32, %c0_i32_0 : i32, i32
  }
  func.func @transform_10(%arg0: i32) -> (i32, i32) {
    %c0_i32 = arith.constant 0 : i32
    %c0_i32_0 = arith.constant 0 : i32
    %c0_i32_1 = arith.constant 0 : i32
    return %c0_i32, %c0_i32_0 : i32, i32
  }
  func.func @transform_11(%arg0: i32) -> (i32, i32) {
    %c0_i32 = arith.constant 0 : i32
    %c0_i32_0 = arith.constant 0 : i32
    %c0_i32_1 = arith.constant 0 : i32
    return %c0_i32, %c0_i32_0 : i32, i32
  }
  func.func @transform_12(%arg0: i32) -> (i32, i32) {
    %c0_i32 = arith.constant 0 : i32
    %c0_i32_0 = arith.constant 0 : i32
    %c0_i32_1 = arith.constant 0 : i32
    return %c0_i32, %c0_i32_0 : i32, i32
  }
  func.func @transform_13(%arg0: i32) -> (i32, i32) {
    %c0_i32 = arith.constant 0 : i32
    %c0_i32_0 = arith.constant 0 : i32
    %c0_i32_1 = arith.constant 0 : i32
    return %c0_i32, %c0_i32_0 : i32, i32
  }
  func.func @transform_14(%arg0: i32) -> (i32, i32) {
    %c0_i32 = arith.constant 0 : i32
    %c0_i32_0 = arith.constant 0 : i32
    %c0_i32_1 = arith.constant 0 : i32
    return %c0_i32, %c0_i32_0 : i32, i32
  }
  func.func @transform_15(%arg0: i32) -> (i32, i32) {
    %c0_i32 = arith.constant 0 : i32
    %c0_i32_0 = arith.constant 0 : i32
    return %arg0, %c0_i32 : i32, i32
  }
}

</mosaic_0001>

<bundles_post_ra>
// kernel: determ_policy_forward.1
= control target key start
LH: loop header
LB: loop body
LE: loop exit
PB: predicated region body
PF: predicated region fallthrough
CT: control target
= control target key end

     0   :  { %s7660_s18 = smov 0   ;;  %s9984_s0 = inlined_call_operand.vmem [shape: bf16[1024,256], index: 0, kind: input, shape index: {}]   ;;  %s9985_s1 = inlined_call_operand.vmem [shape: bf16[256,32], index: 1, kind: input, shape index: {}]   ;;  %s9986_s2 = inlined_call_operand.vmem [shape: f32[1,32], index: 2, kind: input, shape index: {}]   ;;  %s9987_s3 = inlined_call_operand.vmem [shape: bf16[512,64], index: 3, kind: input, shape index: {}]   ;;  %s9988_s4 = inlined_call_operand.vmem [shape: f32[1,64], index: 4, kind: input, shape index: {}]   ;;  %s9989_s5 = inlined_call_operand.vmem [shape: bf16[576,64], index: 5, kind: input, shape index: {}]   ;;  %s9990_s6 = inlined_call_operand.vmem [shape: f32[1,64], index: 6, kind: input, shape index: {}]   ;;  %s9991_s7 = inlined_call_operand.vmem [shape: bf16[64,512], index: 7, kind: input, shape index: {}]   ;;  %s9992_s8 = inlined_call_operand.vmem [shape: f32[1,512], index: 8, kind: input, shape index: {}]   ;;  %s9993_s9 = inlined_call_operand.vmem [shape: bf16[512,256], index: 9, kind: input, shape index: {}]   ;;  %s9994_s10 = inlined_call_operand.vmem [shape: f32[1,256], index: 10, kind: input, shape index: {}]   ;;  %s9995_s11 = inlined_call_operand.vmem [shape: bf16[256,3], index: 11, kind: input, shape index: {}]   ;;  %s9996_s12 = inlined_call_operand.vmem [shape: f32[1,3], index: 12, kind: input, shape index: {}]   ;;  %s9997_s13 = inlined_call_operand.vmem [shape: f32[1,3], index: 13, kind: input, shape index: {}]   ;;  %s9998_s14 = inlined_call_operand.vmem [shape: f32[1,3], index: 14, kind: input, shape index: {}]   ;;  %s9999_s15 = inlined_call_operand.vmem [shape: f32[16,3], index: 15, kind: output, shape index: {}]  }
   0x1 LB: > { %s7666_s19 = sadd.s32 4294967295, %s7572_s18   ;;  %p5378_p0 = scmp.ge.s32.totalorder %s7572_s18, 1  ;;  %s7572_s18 = sphi %s7660_s18, %s25_s18  }
   0x2   : > { %p439_p1 = scmp.lt.s32.totalorder %s7572_s18, 3 }
   0x4   : > { %p440_p2 = pnand %p5378_p0, %p439_p1 }
   0x6   : > { %443 = sbr.rel (%p440_p2) target bundleno = 2092 (0x82c), region = 80 }
   0xb   : > { %v7673_v0 = vld [vmem:[%s9985_s1 + $0x78] sm:$0xff]   ;;  %s5379_s22 = sshll.u32 %s7666_s19, 6  ;;  %v7686_v2 = vld [vmem:[%s9985_s1 + $0x70] sm:$0xff]   ;;  %v7700_v4 = vld [vmem:[%s9985_s1 + $0x68] sm:$0xff]   ;;  %vm755_vm0 = vcmask 261120   ;;  %s7575_s24 = smov 32  }
   0xc   : > { %v7679_v1 = vld [vmem:[%s9985_s1 + $0x38] sm:$0xff]   ;;  %5645 = vmatprep.subr.bf16.mxu0 %v7673_v0  ;;  %5685 = vmatprep.subr.bf16.mxu1 %v7673_v0  ;;  %v7693_v3 = vld [vmem:[%s9985_s1 + $0x30] sm:$0xff]   ;;  %p488_p3 = scmp.lt.s32.totalorder %s5379_s22, 127  ;;  %v7707_v5 = vld [vmem:[%s9985_s1 + $0x28] sm:$0xff]   ;;  %vm7576_vm1 = vmmov 0   ;;  %s7577_s17 = smov 96  }
   0xd   : > { %5646 = vmatpush3.bf16.msra.mxu0 %v7679_v1  ;;  %5686 = vmatpush3.bf16.msra.mxu1 %v7679_v1  ;;  %v7714_v6 = vld [vmem:[%s9985_s1 + $0x60] sm:$0xff]   ;;  %v7728_v8 = vld [vmem:[%s9985_s1 + $0x58] sm:$0xff]   ;;  %v7747_v10 = vld [vmem:[%s9985_s1 + $0x50] sm:$0xff]   ;;  %s7578_s20 = smov 64   ;;  %vm917_vm2 = vcmask 523520   ;;  %vm1079_vm3 = vcmask 785920  }
   0xe   : > { %5647 = vmatprep.subr.bf16.mxu0 %v7686_v2  ;;  %5687 = vmatprep.subr.bf16.mxu1 %v7686_v2  ;;  %s10038_s22 = smov (!%p488_p3, %s5379_s22), 127  ;;  %v7721_v7 = vld [vmem:[%s9985_s1 + $0x20] sm:$0xff]   ;;  %v7740_v9 = vld [vmem:[%s9985_s1 + $0x18] sm:$0xff]   ;;  %v7756_v13 = vld [vmem:[%s9985_s1 + $0x10] sm:$0xff]   ;;  %vm1241_vm4 = vcmask 1048320   ;;  %vm2309_vm5 = vcmask 523264  }
   0xf   : > { %s5644_s25 = sshll.u32 %s10038_s22, 3  ;;  %v7763_v14 = vld [vmem:[%s9985_s1 + $0x48] sm:$0xff]   ;;  %v7777_v16 = vld [vmem:[%s9985_s1 + $0x40] sm:$0xff]   ;;  %p494_p4 = scmp.lt.s32.totalorder %s7666_s19, 1  ;;  %vm5319_vm6 = vcmask 23552  }
  0x10   : > { %s7733_s30 = scalar_lea.vmem %s9984_s0, %s5644_s25  ;;  %v7770_v15 = vld [vmem:[%s9985_s1 + $0x8] sm:$0xff]   ;;  %v7784_v17 = vld [vmem:[%s9985_s1] sm:$0xff]  }
  0x11   : > { %5648 = vmatpush3.bf16.msra.mxu0 %v7693_v3  ;;  %5688 = vmatpush3.bf16.msra.mxu1 %v7693_v3  ;;  %v7216_v11 = vld [vmem:[%s7733_s30 + $0x4] ss:$8 sps:$4 sm:$0xff]   ;;  %v7214_v18 = vld [vmem:[%s7733_s30] ss:$8 sps:$4 sm:$0xff]   ;;  %v7220_v20 = vld [vmem:[%s7733_s30 + $0x14] ss:$8 sps:$4 sm:$0xff]  }
  0x12   : > { %5649 = vmatprep.subr.bf16.mxu0 %v7700_v4  ;;  %5689 = vmatprep.subr.bf16.mxu1 %v7700_v4  ;;  %v7219_v12 = vld [vmem:[%s7733_s30 + $0x44] ss:$8 sps:$4 sm:$0xff]   ;;  %v7217_v19 = vld [vmem:[%s7733_s30 + $0x40] ss:$8 sps:$4 sm:$0xff]   ;;  %v7222_v21 = vld [vmem:[%s7733_s30 + $0x54] ss:$8 sps:$4 sm:$0xff]  }
  0x13   : > { %714 = vmatprep.mubr.bf16.mxu0 %v7216_v11  ;;  %844 = vmatprep.mubr.bf16.mxu1 %v7219_v12  ;;  %v7224_v22 = vld [vmem:[%s7733_s30 + $0x10] ss:$8 sps:$4 sm:$0xff]   ;;  %v7226_v24 = vld [vmem:[%s7733_s30 + $0x24] ss:$8 sps:$4 sm:$0xff]   ;;  %v7230_v26 = vld [vmem:[%s7733_s30 + $0x20] ss:$8 sps:$4 sm:$0xff]  }
  0x14   : > { %v7225_v23 = vld [vmem:[%s7733_s30 + $0x50] ss:$8 sps:$4 sm:$0xff]   ;;  %v7228_v25 = vld [vmem:[%s7733_s30 + $0x64] ss:$8 sps:$4 sm:$0xff]   ;;  %v7231_v27 = vld [vmem:[%s7733_s30 + $0x60] ss:$8 sps:$4 sm:$0xff]  }
  0x15   : > { %5650 = vmatpush3.bf16.msra.mxu0 %v7707_v5  ;;  %5690 = vmatpush3.bf16.msra.mxu1 %v7707_v5  ;;  %v7232_v28 = vld [vmem:[%s7733_s30 + $0x34] ss:$8 sps:$4 sm:$0xff]   ;;  %v7236_v30 = vld [vmem:[%s7733_s30 + $0x30] ss:$8 sps:$4 sm:$0xff]   ;;  %v7240_v32 = vld [vmem:[%s7733_s30 + $0x84] ss:$8 sps:$4 sm:$0xff]  }
  0x16   : > { %5651 = vmatprep.subr.bf16.mxu0 %v7714_v6  ;;  %5691 = vmatprep.subr.bf16.mxu1 %v7714_v6  ;;  %v7234_v29 = vld [vmem:[%s7733_s30 + $0x74] ss:$8 sps:$4 sm:$0xff]   ;;  %v7237_v31 = vld [vmem:[%s7733_s30 + $0x70] ss:$8 sps:$4 sm:$0xff]   ;;  %v7243_v33 = vld [vmem:[%s7733_s30 + $0xc4] ss:$8 sps:$4 sm:$0xff]  }
  0x17   : > { %v7238_v34 = vld [vmem:[%s7733_s30 + $0x80] ss:$8 sps:$4 sm:$0xff]   ;;  %v7244_v36 = vld [vmem:[%s7733_s30 + $0x94] ss:$8 sps:$4 sm:$0xff]   ;;  %v7248_v38 = vld [vmem:[%s7733_s30 + $0x90] ss:$8 sps:$4 sm:$0xff]  }
  0x18   : > { %v7241_v35 = vld [vmem:[%s7733_s30 + $0xc0] ss:$8 sps:$4 sm:$0xff]   ;;  %v7246_v37 = vld [vmem:[%s7733_s30 + $0xd4] ss:$8 sps:$4 sm:$0xff]   ;;  %v7249_v39 = vld [vmem:[%s7733_s30 + $0xd0] ss:$8 sps:$4 sm:$0xff]  }
  0x19   : > { %5652 = vmatpush3.bf16.msra.mxu0 %v7721_v7  ;;  %5692 = vmatpush3.bf16.msra.mxu1 %v7721_v7  ;;  %v7250_v40 = vld [vmem:[%s7733_s30 + $0xa4] ss:$8 sps:$4 sm:$0xff]   ;;  %v7254_v42 = vld [vmem:[%s7733_s30 + $0xa0] ss:$8 sps:$4 sm:$0xff]   ;;  %v7256_v44 = vld [vmem:[%s7733_s30 + $0xb4] ss:$8 sps:$4 sm:$0xff]  }
  0x1a   : > { %5653 = vmatprep.subr.bf16.mxu0 %v7728_v8  ;;  %5693 = vmatprep.subr.bf16.mxu1 %v7728_v8  ;;  %v7252_v41 = vld [vmem:[%s7733_s30 + $0xe4] ss:$8 sps:$4 sm:$0xff]   ;;  %v7255_v43 = vld [vmem:[%s7733_s30 + $0xe0] ss:$8 sps:$4 sm:$0xff]   ;;  %v7258_v45 = vld [vmem:[%s7733_s30 + $0xf4] ss:$8 sps:$4 sm:$0xff]  }
  0x1b   : > { %v7260_v46 = vld [vmem:[%s7733_s30 + $0xb0] ss:$8 sps:$4 sm:$0xff]   ;;  %v7264_v48 = vld [vmem:[%s7733_s30 + $0x104] ss:$8 sps:$4 sm:$0xff]   ;;  %v7262_v50 = vld [vmem:[%s7733_s30 + $0x100] ss:$8 sps:$4 sm:$0xff]  }
  0x1c   : > { %v7261_v47 = vld [vmem:[%s7733_s30 + $0xf0] ss:$8 sps:$4 sm:$0xff]   ;;  %v7267_v49 = vld [vmem:[%s7733_s30 + $0x144] ss:$8 sps:$4 sm:$0xff]   ;;  %v7265_v51 = vld [vmem:[%s7733_s30 + $0x140] ss:$8 sps:$4 sm:$0xff]  }
  0x1d   : > { %5654 = vmatpush3.bf16.msra.mxu0 %v7740_v9  ;;  %5694 = vmatpush3.bf16.msra.mxu1 %v7740_v9  ;;  %v7268_v52 = vld [vmem:[%s7733_s30 + $0x114] ss:$8 sps:$4 sm:$0xff]   ;;  %v7272_v54 = vld [vmem:[%s7733_s30 + $0x110] ss:$8 sps:$4 sm:$0xff]   ;;  %v7274_v56 = vld [vmem:[%s7733_s30 + $0x124] ss:$8 sps:$4 sm:$0xff]  }
  0x1e   : > { %5655 = vmatprep.subr.bf16.mxu0 %v7747_v10  ;;  %5695 = vmatprep.subr.bf16.mxu1 %v7747_v10  ;;  %v7270_v53 = vld [vmem:[%s7733_s30 + $0x154] ss:$8 sps:$4 sm:$0xff]   ;;  %v7273_v55 = vld [vmem:[%s7733_s30 + $0x150] ss:$8 sps:$4 sm:$0xff]   ;;  %v7276_v57 = vld [vmem:[%s7733_s30 + $0x164] ss:$8 sps:$4 sm:$0xff]  }
  0x1f   : > { %v7278_v58 = vld [vmem:[%s7733_s30 + $0x120] ss:$8 sps:$4 sm:$0xff]   ;;  %v7280_v60 = vld [vmem:[%s7733_s30 + $0x134] ss:$8 sps:$4 sm:$0xff]   ;;  %v7284_v62 = vld [vmem:[%s7733_s30 + $0x130] ss:$8 sps:$4 sm:$0xff]  }
  0x20   : > { %v7279_v59 = vld [vmem:[%s7733_s30 + $0x160] ss:$8 sps:$4 sm:$0xff]   ;;  %v7282_v61 = vld [vmem:[%s7733_s30 + $0x174] ss:$8 sps:$4 sm:$0xff]   ;;  %v7285_v63 = vld [vmem:[%s7733_s30 + $0x170] ss:$8 sps:$4 sm:$0xff]  }
  0x21   : > { %5656 = vmatpush3.bf16.msra.mxu0 %v7756_v13  ;;  %5696 = vmatpush3.bf16.msra.mxu1 %v7756_v13  ;;  %v7303_v11 = vld [vmem:[%s7733_s30 + $0x1e0] ss:$8 sps:$4 sm:$0xff]   ;;  %s10040_s19 = smov (!%p494_p4, %s7666_s19), 1 }
  0x22   : > { %5657 = vmatprep.subr.bf16.mxu0 %v7763_v14  ;;  %5697 = vmatprep.subr.bf16.mxu1 %v7763_v14  ;;  %s5382_s23 = sshll.u32 %s10040_s19, 3 }
  0x23   : > { %s497_s27 = scalar_lea.vmem %s9999_s15, %s5382_s23 }
  0x25   : > { %5658 = vmatpush3.bf16.msra.mxu0 %v7770_v15  ;;  %5698 = vmatpush3.bf16.msra.mxu1 %v7770_v15 }
  0x26   : > { %5659 = vmatprep.subr.bf16.mxu0 %v7777_v16  ;;  %5699 = vmatprep.subr.bf16.mxu1 %v7777_v16 }
  0x29   : > { %5660 = vmatpush3.bf16.msra.mxu0 %v7784_v17  ;;  %5700 = vmatpush3.bf16.msra.mxu1 %v7784_v17 }
  0x2a   : > { %5725 = vmatprep.subr.bf16.mxu0 %v7673_v0  ;;  %5765 = vmatprep.subr.bf16.mxu1 %v7673_v0 }
  0x2c   : > { %715 = vmatmul.mubr.bf16.vlgmr.msra.gmra.mxu0 %v7214_v18  ;;  %845 = vmatmul.mubr.bf16.vlgmr.msra.gmra.mxu1 %v7217_v19 }
  0x2d   : > { %5726 = vmatpush3.bf16.msra.mxu0 %v7679_v1  ;;  %5766 = vmatpush3.bf16.msra.mxu1 %v7679_v1 }
  0x2e   : > { %5727 = vmatprep.subr.bf16.mxu0 %v7686_v2  ;;  %5767 = vmatprep.subr.bf16.mxu1 %v7686_v2 }
  0x2f   : > { %722 = vmatprep.mubr.bf16.mxu0 %v7220_v20  ;;  %852 = vmatprep.mubr.bf16.mxu1 %v7222_v21 }
  0x31   : > { %5728 = vmatpush3.bf16.msra.mxu0 %v7693_v3  ;;  %5768 = vmatpush3.bf16.msra.mxu1 %v7693_v3 }
  0x32   : > { %5729 = vmatprep.subr.bf16.mxu0 %v7700_v4  ;;  %5769 = vmatprep.subr.bf16.mxu1 %v7700_v4 }
  0x34   : > { %723 = vmatmul.mubr.bf16.gmra.mxu0 %v7224_v22  ;;  %853 = vmatmul.mubr.bf16.gmra.mxu1 %v7225_v23  ;;  %v7954_v23 = vld [vmem:[%s9987_s3 + $0x38] sm:$0xff]  }
  0x35   : > { %5730 = vmatpush3.bf16.msra.mxu0 %v7707_v5  ;;  %5770 = vmatpush3.bf16.msra.mxu1 %v7707_v5 }
  0x36   : > { %5731 = vmatprep.subr.bf16.mxu0 %v7714_v6  ;;  %5771 = vmatprep.subr.bf16.mxu1 %v7714_v6 }
  0x37   : > { %730 = vmatprep.mubr.bf16.mxu0 %v7226_v24  ;;  %860 = vmatprep.mubr.bf16.mxu1 %v7228_v25 }
  0x39   : > { %5732 = vmatpush3.bf16.msra.mxu0 %v7721_v7  ;;  %5772 = vmatpush3.bf16.msra.mxu1 %v7721_v7 }
  0x3a   : > { %5733 = vmatprep.subr.bf16.mxu0 %v7728_v8  ;;  %5773 = vmatprep.subr.bf16.mxu1 %v7728_v8 }
  0x3c   : > { %731 = vmatmul.mubr.bf16.gmra.mxu0 %v7230_v26  ;;  %861 = vmatmul.mubr.bf16.gmra.mxu1 %v7231_v27  ;;  %v10000_v26 = vmov 0.0  }
  0x3d   : > { %5734 = vmatpush3.bf16.msra.mxu0 %v7740_v9  ;;  %5774 = vmatpush3.bf16.msra.mxu1 %v7740_v9 }
  0x3e   : > { %5735 = vmatprep.subr.bf16.mxu0 %v7747_v10  ;;  %5775 = vmatprep.subr.bf16.mxu1 %v7747_v10 }
  0x3f   : > { %738 = vmatprep.mubr.bf16.mxu0 %v7232_v28  ;;  %868 = vmatprep.mubr.bf16.mxu1 %v7234_v29 }
  0x41   : > { %5736 = vmatpush3.bf16.msra.mxu0 %v7756_v13  ;;  %5776 = vmatpush3.bf16.msra.mxu1 %v7756_v13 }
  0x42   : > { %5737 = vmatprep.subr.bf16.mxu0 %v7763_v14  ;;  %5777 = vmatprep.subr.bf16.mxu1 %v7763_v14 }
  0x44   : > { %739 = vmatmul.mubr.bf16.gmra.mxu0 %v7236_v30  ;;  %869 = vmatmul.mubr.bf16.gmra.mxu1 %v7237_v31 }
  0x45   : > { %5738 = vmatpush3.bf16.msra.mxu0 %v7770_v15  ;;  %5778 = vmatpush3.bf16.msra.mxu1 %v7770_v15 }
  0x46   : > { %5739 = vmatprep.subr.bf16.mxu0 %v7777_v16  ;;  %5779 = vmatprep.subr.bf16.mxu1 %v7777_v16 }
  0x47   : > { %1006 = vmatprep.mubr.bf16.mxu0 %v7240_v32  ;;  %1168 = vmatprep.mubr.bf16.mxu1 %v7243_v33 }
  0x49   : > { %5740 = vmatpush3.bf16.msra.mxu0 %v7784_v17  ;;  %5780 = vmatpush3.bf16.msra.mxu1 %v7784_v17 }
  0x4a   : > { %5805 = vmatprep.subr.bf16.mxu0 %v7673_v0  ;;  %5845 = vmatprep.subr.bf16.mxu1 %v7673_v0 }
  0x4c   : > { %1007 = vmatmul.mubr.bf16.vlgmr.msra.gmra.mxu0 %v7238_v34  ;;  %1169 = vmatmul.mubr.bf16.vlgmr.msra.gmra.mxu1 %v7241_v35  ;;  %v7967_v35 = vld [vmem:[%s9987_s3 + $0x30] sm:$0xff]  }
  0x4d   : > { %5806 = vmatpush3.bf16.msra.mxu0 %v7679_v1  ;;  %5846 = vmatpush3.bf16.msra.mxu1 %v7679_v1 }
  0x4e   : > { %5807 = vmatprep.subr.bf16.mxu0 %v7686_v2  ;;  %5847 = vmatprep.subr.bf16.mxu1 %v7686_v2 }
  0x4f   : > { %1014 = vmatprep.mubr.bf16.mxu0 %v7244_v36  ;;  %1176 = vmatprep.mubr.bf16.mxu1 %v7246_v37  ;;  %v7972_v36 = vld [vmem:[%s9987_s3 + $0x78] sm:$0xff]  }
  0x51   : > { %5808 = vmatpush3.bf16.msra.mxu0 %v7693_v3  ;;  %5848 = vmatpush3.bf16.msra.mxu1 %v7693_v3 }
  0x52   : > { %5809 = vmatprep.subr.bf16.mxu0 %v7700_v4  ;;  %5849 = vmatprep.subr.bf16.mxu1 %v7700_v4 }
  0x54   : > { %1015 = vmatmul.mubr.bf16.gmra.mxu0 %v7248_v38  ;;  %1177 = vmatmul.mubr.bf16.gmra.mxu1 %v7249_v39 }
  0x55   : > { %5810 = vmatpush3.bf16.msra.mxu0 %v7707_v5  ;;  %5850 = vmatpush3.bf16.msra.mxu1 %v7707_v5 }
  0x56   : > { %5811 = vmatprep.subr.bf16.mxu0 %v7714_v6  ;;  %5851 = vmatprep.subr.bf16.mxu1 %v7714_v6 }
  0x57   : > { %1022 = vmatprep.mubr.bf16.mxu0 %v7250_v40  ;;  %1184 = vmatprep.mubr.bf16.mxu1 %v7252_v41 }
  0x59   : > { %5812 = vmatpush3.bf16.msra.mxu0 %v7721_v7  ;;  %5852 = vmatpush3.bf16.msra.mxu1 %v7721_v7 }
  0x5a   : > { %5813 = vmatprep.subr.bf16.mxu0 %v7728_v8  ;;  %5853 = vmatprep.subr.bf16.mxu1 %v7728_v8 }
  0x5c   : > { %1023 = vmatmul.mubr.bf16.gmra.mxu0 %v7254_v42  ;;  %1185 = vmatmul.mubr.bf16.gmra.mxu1 %v7255_v43  ;;  %v7981_v43 = vld [vmem:[%s9987_s3 + $0x28] sm:$0xff]  }
  0x5d   : > { %5814 = vmatpush3.bf16.msra.mxu0 %v7740_v9  ;;  %5854 = vmatpush3.bf16.msra.mxu1 %v7740_v9 }
  0x5e   : > { %5815 = vmatprep.subr.bf16.mxu0 %v7747_v10  ;;  %5855 = vmatprep.subr.bf16.mxu1 %v7747_v10 }
  0x5f   : > { %1030 = vmatprep.mubr.bf16.mxu0 %v7256_v44  ;;  %1192 = vmatprep.mubr.bf16.mxu1 %v7258_v45  ;;  %v7986_v44 = vld [vmem:[%s9987_s3 + $0x70] sm:$0xff]  }
  0x61   : > { %5816 = vmatpush3.bf16.msra.mxu0 %v7756_v13  ;;  %5856 = vmatpush3.bf16.msra.mxu1 %v7756_v13 }
  0x62   : > { %5817 = vmatprep.subr.bf16.mxu0 %v7763_v14  ;;  %5857 = vmatprep.subr.bf16.mxu1 %v7763_v14 }
  0x64   : > { %1031 = vmatmul.mubr.bf16.gmra.mxu0 %v7260_v46  ;;  %1193 = vmatmul.mubr.bf16.gmra.mxu1 %v7261_v47 }
  0x65   : > { %5818 = vmatpush3.bf16.msra.mxu0 %v7770_v15  ;;  %5858 = vmatpush3.bf16.msra.mxu1 %v7770_v15 }
  0x66   : > { %5819 = vmatprep.subr.bf16.mxu0 %v7777_v16  ;;  %5859 = vmatprep.subr.bf16.mxu1 %v7777_v16 }
  0x67   : > { %1330 = vmatprep.mubr.bf16.mxu0 %v7264_v48  ;;  %1459 = vmatprep.mubr.bf16.mxu1 %v7267_v49 }
  0x69   : > { %5820 = vmatpush3.bf16.msra.mxu0 %v7784_v17  ;;  %5860 = vmatpush3.bf16.msra.mxu1 %v7784_v17 }
  0x6a   : > { %5885 = vmatprep.subr.bf16.mxu0 %v7673_v0  ;;  %5925 = vmatprep.subr.bf16.mxu1 %v7673_v0  ;;  %v7288_v0 = vld [vmem:[%s7733_s30 + $0x184] ss:$8 sps:$4 sm:$0xff]  }
  0x6c   : > { %1331 = vmatmul.mubr.bf16.vlgmr.msra.gmra.mxu0 %v7262_v50  ;;  %1460 = vmatmul.mubr.bf16.vlgmr.msra.gmra.mxu1 %v7265_v51 }
  0x6d   : > { %5886 = vmatpush3.bf16.msra.mxu0 %v7679_v1  ;;  %5926 = vmatpush3.bf16.msra.mxu1 %v7679_v1  ;;  %v7291_v1 = vld [vmem:[%s7733_s30 + $0x1c4] ss:$8 sps:$4 sm:$0xff]  }
  0x6e   : > { %5887 = vmatprep.subr.bf16.mxu0 %v7686_v2  ;;  %5927 = vmatprep.subr.bf16.mxu1 %v7686_v2  ;;  %v7286_v2 = vld [vmem:[%s7733_s30 + $0x180] ss:$8 sps:$4 sm:$0xff]  }
  0x6f   : > { %1338 = vmatprep.mubr.bf16.mxu0 %v7268_v52  ;;  %1467 = vmatprep.mubr.bf16.mxu1 %v7270_v53  ;;  %v8002_v52 = vld [vmem:[%s9987_s3 + $0x20] sm:$0xff]   ;;  %v8007_v53 = vld [vmem:[%s9987_s3 + $0x68] sm:$0xff]  }
  0x71   : > { %5888 = vmatpush3.bf16.msra.mxu0 %v7693_v3  ;;  %5928 = vmatpush3.bf16.msra.mxu1 %v7693_v3  ;;  %v7289_v3 = vld [vmem:[%s7733_s30 + $0x1c0] ss:$8 sps:$4 sm:$0xff]  }
  0x72   : > { %5889 = vmatprep.subr.bf16.mxu0 %v7700_v4  ;;  %5929 = vmatprep.subr.bf16.mxu1 %v7700_v4  ;;  %v7292_v4 = vld [vmem:[%s7733_s30 + $0x194] ss:$8 sps:$4 sm:$0xff]  }
  0x74   : > { %1339 = vmatmul.mubr.bf16.gmra.mxu0 %v7272_v54  ;;  %1468 = vmatmul.mubr.bf16.gmra.mxu1 %v7273_v55 }
  0x75   : > { %5890 = vmatpush3.bf16.msra.mxu0 %v7707_v5  ;;  %5930 = vmatpush3.bf16.msra.mxu1 %v7707_v5  ;;  %v7295_v5 = vld [vmem:[%s7733_s30 + $0x1d4] ss:$8 sps:$4 sm:$0xff]  }
  0x76   : > { %5891 = vmatprep.subr.bf16.mxu0 %v7714_v6  ;;  %5931 = vmatprep.subr.bf16.mxu1 %v7714_v6  ;;  %v7294_v6 = vld [vmem:[%s7733_s30 + $0x190] ss:$8 sps:$4 sm:$0xff]  }
  0x77   : > { %1346 = vmatprep.mubr.bf16.mxu0 %v7274_v56  ;;  %1475 = vmatprep.mubr.bf16.mxu1 %v7276_v57 }
  0x79   : > { %5892 = vmatpush3.bf16.msra.mxu0 %v7721_v7  ;;  %5932 = vmatpush3.bf16.msra.mxu1 %v7721_v7  ;;  %v7297_v7 = vld [vmem:[%s7733_s30 + $0x1d0] ss:$8 sps:$4 sm:$0xff]  }
  0x7a   : > { %5893 = vmatprep.subr.bf16.mxu0 %v7728_v8  ;;  %5933 = vmatprep.subr.bf16.mxu1 %v7728_v8  ;;  %v7298_v8 = vld [vmem:[%s7733_s30 + $0x1a4] ss:$8 sps:$4 sm:$0xff]  }
  0x7c   : > { %1347 = vmatmul.mubr.bf16.gmra.mxu0 %v7278_v58  ;;  %1476 = vmatmul.mubr.bf16.gmra.mxu1 %v7279_v59 }
  0x7d   : > { %5894 = vmatpush3.bf16.msra.mxu0 %v7740_v9  ;;  %5934 = vmatpush3.bf16.msra.mxu1 %v7740_v9  ;;  %v7300_v9 = vld [vmem:[%s7733_s30 + $0x1a0] ss:$8 sps:$4 sm:$0xff]  }
  0x7e   : > { %5895 = vmatprep.subr.bf16.mxu0 %v7747_v10  ;;  %5935 = vmatprep.subr.bf16.mxu1 %v7747_v10  ;;  %v7301_v10 = vld [vmem:[%s7733_s30 + $0x1e4] ss:$8 sps:$4 sm:$0xff]  }
  0x7f   : > { %1354 = vmatprep.mubr.bf16.mxu0 %v7280_v60  ;;  %1483 = vmatprep.mubr.bf16.mxu1 %v7282_v61 }
  0x81   : > { %5896 = vmatpush3.bf16.msra.mxu0 %v7756_v13  ;;  %5936 = vmatpush3.bf16.msra.mxu1 %v7756_v13 }
  0x82   : > { %5897 = vmatprep.subr.bf16.mxu0 %v7763_v14  ;;  %5937 = vmatprep.subr.bf16.mxu1 %v7763_v14  ;;  %v7947_v14 = vld [vmem:[%s9986_s2] ss:$0 sm:$0xff] }
  0x84   : > { %1355 = vmatmul.mubr.bf16.gmra.mxu0 %v7284_v62  ;;  %1484 = vmatmul.mubr.bf16.gmra.mxu1 %v7285_v63  ;;  %v8020_v62 = vld [vmem:[%s9987_s3 + $0x18] sm:$0xff]   ;;  %v8025_v63 = vld [vmem:[%s9987_s3 + $0x60] sm:$0xff]  }
  0x85   : > { %5898 = vmatpush3.bf16.msra.mxu0 %v7770_v15  ;;  %5938 = vmatpush3.bf16.msra.mxu1 %v7770_v15 }
  0x86   : > { %5899 = vmatprep.subr.bf16.mxu0 %v7777_v16  ;;  %5939 = vmatprep.subr.bf16.mxu1 %v7777_v16 }
  0x87   : > { %1620 = vmatprep.mubr.bf16.mxu0 %v7288_v0  ;;  %1781 = vmatprep.mubr.bf16.mxu1 %v7291_v1 }
  0x89   : > { %5900 = vmatpush3.bf16.msra.mxu0 %v7784_v17  ;;  %5940 = vmatpush3.bf16.msra.mxu1 %v7784_v17 }
  0x8a   : > { %6356 = vmatprep.subr.bf16.mxu0 %v10000_v26  ;;  %6376 = vmatprep.subr.bf16.mxu1 %v10000_v26 }
  0x8c   : > { %1621 = vmatmul.mubr.bf16.vlgmr.msra.gmra.mxu0 %v7286_v2  ;;  %1782 = vmatmul.mubr.bf16.vlgmr.msra.gmra.mxu1 %v7289_v3 }
  0x8d   : > { %1628 = vmatprep.mubr.bf16.mxu0 %v7292_v4  ;;  %1789 = vmatprep.mubr.bf16.mxu1 %v7295_v5 }
  0x8e   : > { %6357 = vmatpush3.bf16.msra.mxu0 %v7954_v23  ;;  %6377 = vmatpush3.bf16.msra.mxu1 %v7972_v36 }
  0x8f   : > { %6358 = vmatprep.subr.bf16.mxu0 %v10000_v26  ;;  %6378 = vmatprep.subr.bf16.mxu1 %v10000_v26 }
  0x92   : > { %6359 = vmatpush3.bf16.msra.mxu0 %v7967_v35  ;;  %6379 = vmatpush3.bf16.msra.mxu1 %v7986_v44 }
  0x93   : > { %6360 = vmatprep.subr.bf16.mxu0 %v10000_v26  ;;  %6380 = vmatprep.subr.bf16.mxu1 %v10000_v26 }
  0x94   : > { %1629 = vmatmul.mubr.bf16.gmra.mxu0 %v7294_v6  ;;  %1790 = vmatmul.mubr.bf16.gmra.mxu1 %v7297_v7 }
  0x95   : > { %1636 = vmatprep.mubr.bf16.mxu0 %v7298_v8  ;;  %1797 = vmatprep.mubr.bf16.mxu1 %v7301_v10 }
  0x96   : > { %6361 = vmatpush3.bf16.msra.mxu0 %v7981_v43  ;;  %6381 = vmatpush3.bf16.msra.mxu1 %v8007_v53 }
  0x97   : > { %6362 = vmatprep.subr.bf16.mxu0 %v10000_v26  ;;  %6382 = vmatprep.subr.bf16.mxu1 %v10000_v26 }
  0x9a   : > { %6363 = vmatpush3.bf16.msra.mxu0 %v8002_v52  ;;  %6383 = vmatpush3.bf16.msra.mxu1 %v8025_v63 }
  0x9b   : > { %6364 = vmatprep.subr.bf16.mxu0 %v10000_v26  ;;  %6384 = vmatprep.subr.bf16.mxu1 %v10000_v26 }
  0x9c   : > { %1637 = vmatmul.mubr.bf16.gmra.mxu0 %v7300_v9  ;;  %1798 = vmatmul.mubr.bf16.gmra.mxu1 %v7303_v11 }
  0x9e   : > { %6365 = vmatpush3.bf16.msra.mxu0 %v8020_v62 }
  0x9f   : > { %6366 = vmatprep.subr.bf16.mxu0 %v10000_v26 }
  0xec   : > { %v5661_v12 = vpop.f32.mrf.mxu0  ;;  %v5701_v13 = vpop.f32.mrf.mxu1 }
  0xee   : > { %v5662_v15 = vpop.f32.mrf.mxu0  ;;  %v5702_v16 = vpop.f32.mrf.mxu1 }
  0xef   : > { %v5663_v17 = vadd.f32 %v5662_v15, %v5661_v12  ;;  %v5703_v18 = vadd.f32 %v5702_v16, %v5701_v13  ;;  %v8044_v12 = vld [vmem:[%s9987_s3 + $0x10] sm:$0xff]   ;;  %v8049_v13 = vld [vmem:[%s9987_s3 + $0x58] sm:$0xff]  }
  0xf0   : > { %v5664_v19 = vpop.f32.mrf.mxu0  ;;  %v5704_v20 = vpop.f32.mrf.mxu1  ;;  %6367 = vmatpush3.bf16.msra.mxu0 %v8044_v12  ;;  %6385 = vmatpush3.bf16.msra.mxu1 %v8049_v13 }
  0xf1   : > { %v717_v21 = vadd.f32 %v5663_v17, %v7947_v14  ;;  %v847_v22 = vadd.f32 %v5703_v18, %v7947_v14  ;;  %6386 = vmatprep.subr.bf16.mxu1 %v10000_v26  ;;  %6368 = vmatprep.subr.bf16.mxu0 %v10000_v26 }
  0xf2   : > { %v5665_v24 = vpop.f32.mrf.mxu0  ;;  %v5705_v25 = vpop.f32.mrf.mxu1 }
  0xf3   : > { %v747_v27 = vmax.f32 %v717_v21, 0.0  ;;  %v5666_v28 = vadd.f32 %v5665_v24, %v5664_v19  ;;  %v5706_v29 = vadd.f32 %v5705_v25, %v5704_v20  ;;  %v877_v30 = vmax.f32 %v847_v22, 0.0  ;;  %v7315_v20 = vld [vmem:[%s7733_s30 + $0x1b4] ss:$8 sps:$4 sm:$0xff]   ;;  %v7317_v22 = vld [vmem:[%s7733_s30 + $0x1b0] ss:$8 sps:$4 sm:$0xff]  }
  0xf4   : > { %v5667_v31 = vpop.f32.mrf.mxu0  ;;  %v5707_v32 = vpop.f32.mrf.mxu1  ;;  %1644 = vmatprep.mubr.bf16.mxu0 %v7315_v20 }
  0xf5   : > { %v720_v33 = vadd.f32 %v5666_v28, %v7947_v14  ;;  %893 = vrot.lane.b32.xlu0 %v877_v30, %s7575_s24  ;;  %v850_v34 = vadd.f32 %v5706_v29, %v7947_v14  ;;  %756 = vst.msk [vmem:[#allocation2] sm:$0xff] %vm755_vm0, %v747_v27  ;;  %v8068_v27 = vld [vmem:[%s9987_s3 + $0x8] sm:$0xff]   ;;  %v8073_v28 = vld [vmem:[%s9987_s3 + $0x50] sm:$0xff]   ;;  %1645 = vmatmul.mubr.bf16.gmra.mxu0 %v7317_v22 }
  0xf6   : > { %v5668_v37 = vpop.f32.mrf.mxu0  ;;  %v5708_v38 = vpop.f32.mrf.mxu1  ;;  %6369 = vmatpush3.bf16.msra.mxu0 %v8068_v27  ;;  %6387 = vmatpush3.bf16.msra.mxu1 %v8073_v28 }
  0xf7   : > { %v748_v39 = vmax.f32 %v720_v33, 0.0  ;;  %v5669_v40 = vadd.f32 %v5668_v37, %v5667_v31  ;;  %v7974_v41 = vadd.f32 %v5708_v38, %v5707_v32  ;;  %v878_v42 = vmax.f32 %v850_v34, 0.0  ;;  %v7320_v33 = vld [vmem:[%s7733_s30 + $0x1f4] ss:$8 sps:$4 sm:$0xff]   ;;  %v7322_v37 = vld [vmem:[%s7733_s30 + $0x1f0] ss:$8 sps:$4 sm:$0xff]   ;;  %6370 = vmatprep.subr.bf16.mxu0 %v10000_v26  ;;  %6388 = vmatprep.subr.bf16.mxu1 %v10000_v26 }
  0xf8   : > { %v7988_v45 = vpop.f32.mrf.mxu1  ;;  %v5670_v46 = vpop.f32.mrf.mxu0  ;;  %v8086_v38 = vld [vmem:[%s9987_s3] sm:$0xff]   ;;  %1805 = vmatprep.mubr.bf16.mxu1 %v7320_v33  ;;  %6372 = vmatprep.mubr.msk.bf16.mxu0 %vm7576_vm1, %v10000_v26 }
  0xf9   : > { %v725_v47 = vadd.f32 %v5669_v40, %v7947_v14  ;;  %895 = vrot.lane.b32.xlu1 %v878_v42, %s7575_s24  ;;  %757 = vst.msk [vmem:[#allocation2 + $0x10] sm:$0xff] %vm755_vm0, %v748_v39  ;;  %v8091_v39 = vld [vmem:[%s9987_s3 + $0x48] sm:$0xff]   ;;  %1806 = vmatmul.mubr.bf16.gmra.mxu1 %v7322_v37 }
  0xfa   : > { %v5671_v48 = vpop.f32.mrf.mxu0  ;;  %v7995_v49 = vpop.f32.mrf.mxu1  ;;  %6371 = vmatpush3.bf16.msra.mxu0 %v8086_v38  ;;  %6389 = vmatpush3.bf16.msra.mxu1 %v8091_v39 }
  0xfb   : > { %v749_v50 = vmax.f32 %v725_v47, 0.0  ;;  %v5672_v51 = vadd.f32 %v5671_v48, %v5670_v46  ;;  %6390 = vmatprep.subr.bf16.mxu1 %v10000_v26  ;;  %6392 = vmatprep.mubr.msk.bf16.mxu1 %vm7576_vm1, %v10000_v26 }
  0xfc   : > { %v5673_v54 = vpop.f32.mrf.mxu0  ;;  %v5713_v55 = vpop.f32.mrf.mxu1  ;;  %6396 = vmatprep.subr.bf16.mxu0 %v10000_v26 }
  0xfd   : > { %v728_v56 = vadd.f32 %v5672_v51, %v7947_v14  ;;  %758 = vst.msk [vmem:[#allocation2 + $0x20] sm:$0xff] %vm755_vm0, %v749_v50 }
  0xfe   : > { %v5674_v57 = vpop.f32.mrf.mxu0  ;;  %v5714_v58 = vpop.f32.mrf.mxu1 }
  0xff   : > { %v750_v59 = vmax.f32 %v728_v56, 0.0  ;;  %v5675_v60 = vadd.f32 %v5674_v57, %v5673_v54  ;;  %v8013_v61 = vadd.f32 %v5714_v58, %v5713_v55  ;;  %v8106_v58 = vld [vmem:[%s9987_s3 + $0x40] sm:$0xff]  }
 0x100   : > { %v5676_v0 = vpop.f32.mrf.mxu0  ;;  %v8027_v1 = vpop.f32.mrf.mxu1  ;;  %6391 = vmatpush3.bf16.msra.mxu1 %v8106_v58 }
 0x101   : > { %v733_v2 = vadd.f32 %v5675_v60, %v7947_v14  ;;  %759 = vst.msk [vmem:[#allocation2 + $0x30] sm:$0xff] %vm755_vm0, %v750_v59  ;;  %6416 = vmatprep.subr.bf16.mxu1 %v10000_v26 }
 0x102   : > { %v5677_v3 = vpop.f32.mrf.mxu0  ;;  %v8033_v4 = vpop.f32.mrf.mxu1 }
 0x103   : > { %v751_v5 = vmax.f32 %v733_v2, 0.0  ;;  %v5678_v6 = vadd.f32 %v5677_v3, %v5676_v0 }
 0x104   : > { %v5679_v7 = vpop.f32.mrf.mxu0  ;;  %v5719_v8 = vpop.f32.mrf.mxu1 }
 0x105   : > { %v736_v9 = vadd.f32 %v5678_v6, %v7947_v14  ;;  %760 = vst.msk [vmem:[#allocation2 + $0x40] sm:$0xff] %vm755_vm0, %v751_v5 }
 0x106   : > { %v5680_v10 = vpop.f32.mrf.mxu0  ;;  %v5720_v11 = vpop.f32.mrf.mxu1 }
 0x107   : > { %v752_v15 = vmax.f32 %v736_v9, 0.0  ;;  %v5681_v16 = vadd.f32 %v5680_v10, %v5679_v7  ;;  %v8051_v17 = vadd.f32 %v5720_v11, %v5719_v8 }
 0x108   : > { %v5682_v18 = vpop.f32.mrf.mxu0  ;;  %v8053_v19 = vpop.f32.mrf.mxu1 }
 0x109   : > { %10006 = vst [vmem:[#allocation3_spill] sm:$0xff] %v8051_v17  ;;  %10007 = vst [vmem:[#allocation4_spill] sm:$0xff] %v8053_v19  ;;  %v741_v21 = vadd.f32 %v5681_v16, %v7947_v14 }
 0x10a   : > { %761 = vst.msk [vmem:[#allocation2 + $0x50] sm:$0xff] %vm755_vm0, %v752_v15  ;;  %v5683_v24 = vpop.f32.mrf.mxu0  ;;  %v8063_v25 = vpop.f32.mrf.mxu1 }
 0x10b   : > { %10008 = vst [vmem:[#allocation5_spill] sm:$0xff] %v8063_v25  ;;  %v753_v29 = vmax.f32 %v741_v21, 0.0  ;;  %v5684_v30 = vadd.f32 %v5683_v24, %v5682_v18 }
 0x10c   : > { %v5741_v31 = vpop.f32.mrf.mxu0  ;;  %v5781_v32 = vpop.f32.mrf.mxu1 }
 0x10d   : > { %v744_v34 = vadd.f32 %v5684_v30, %v7947_v14  ;;  %762 = vst.msk [vmem:[#allocation2 + $0x60] sm:$0xff] %vm755_vm0, %v753_v29 }
 0x10e   : > { %v5742_v40 = vpop.f32.mrf.mxu0  ;;  %v5782_v42 = vpop.f32.mrf.mxu1 }
 0x10f   : > { %v754_v46 = vmax.f32 %v744_v34, 0.0  ;;  %v5743_v47 = vadd.f32 %v5742_v40, %v5741_v31  ;;  %v5783_v48 = vadd.f32 %v5782_v42, %v5781_v32 }
 0x110   : > { %v5744_v50 = vpop.f32.mrf.mxu0  ;;  %v5784_v51 = vpop.f32.mrf.mxu1 }
 0x111   : > { %v1009_v54 = vadd.f32 %v5743_v47, %v7947_v14  ;;  %v1171_v55 = vadd.f32 %v5783_v48, %v7947_v14  ;;  %763 = vst.msk [vmem:[#allocation2 + $0x70] sm:$0xff] %vm755_vm0, %v754_v46 }
 0x112   : > { %v5745_v56 = vpop.f32.mrf.mxu0  ;;  %v5785_v57 = vpop.f32.mrf.mxu1 }
 0x113   : > { %v1039_v59 = vmax.f32 %v1009_v54, 0.0  ;;  %v1201_v60 = vmax.f32 %v1171_v55, 0.0  ;;  %v5746_v0 = vadd.f32 %v5745_v56, %v5744_v50  ;;  %v5786_v2 = vadd.f32 %v5785_v57, %v5784_v51 }
 0x114   : > { %v5747_v3 = vpop.f32.mrf.mxu0  ;;  %v5787_v5 = vpop.f32.mrf.mxu1 }
 0x115   : > { %v1012_v6 = vadd.f32 %v5746_v0, %v7947_v14  ;;  %v1174_v7 = vadd.f32 %v5786_v2, %v7947_v14  ;;  %1217 = vrot.lane.b32.xlu1 %v1201_v60, %s7577_s17  ;;  %1055 = vrot.lane.b32.xlu0 %v1039_v59, %s7578_s20 }
 0x116   : > { %v5748_v8 = vpop.f32.mrf.mxu0  ;;  %v5788_v9 = vpop.f32.mrf.mxu1 }
 0x117   : > { %v8115_v10 = vadd.f32 %v5748_v8, %v5747_v3  ;;  %v8117_v11 = vadd.f32 %v5788_v9, %v5787_v5  ;;  %v1202_v15 = vmax.f32 %v1174_v7, 0.0  ;;  %v1040_v16 = vmax.f32 %v1012_v6, 0.0 }
 0x118   : > { %v8119_v18 = vpop.f32.mrf.mxu0  ;;  %v8121_v20 = vpop.f32.mrf.mxu1 }
 0x119   : > { %1219 = vrot.lane.b32.xlu1 %v1202_v15, %s7577_s17  ;;  %1057 = vrot.lane.b32.xlu0 %v1040_v16, %s7578_s20 }
 0x11a   : > { %v8125_v21 = vpop.f32.mrf.mxu0  ;;  %v8127_v22 = vpop.f32.mrf.mxu1 }
 0x11c   : > { %v5753_v24 = vpop.f32.mrf.mxu0  ;;  %v5793_v29 = vpop.f32.mrf.mxu1 }
 0x11e   : > { %v5754_v30 = vpop.f32.mrf.mxu0  ;;  %v5794_v31 = vpop.f32.mrf.mxu1 }
 0x11f   : > { %v8129_v32 = vadd.f32 %v5754_v30, %v5753_v24  ;;  %v8131_v33 = vadd.f32 %v5794_v31, %v5793_v29 }
 0x120   : > { %v8133_v34 = vpop.f32.mrf.mxu0  ;;  %v8135_v37 = vpop.f32.mrf.mxu1 }
 0x122   : > { %v8137_v40 = vpop.f32.mrf.mxu0  ;;  %v8139_v42 = vpop.f32.mrf.mxu1 }
 0x124   : > { %v5759_v46 = vpop.f32.mrf.mxu0  ;;  %v5799_v47 = vpop.f32.mrf.mxu1 }
 0x126   : > { %v5760_v48 = vpop.f32.mrf.mxu0  ;;  %v5800_v50 = vpop.f32.mrf.mxu1 }
 0x127   : > { %v8141_v51 = vadd.f32 %v5760_v48, %v5759_v46  ;;  %v8143_v54 = vadd.f32 %v5800_v50, %v5799_v47 }
 0x128   : > { %v8145_v55 = vpop.f32.mrf.mxu0  ;;  %v8147_v56 = vpop.f32.mrf.mxu1 }
 0x129   : > { %10009 = vst [vmem:[#allocation6_spill] sm:$0xff] %v8141_v51  ;;  %10010 = vst [vmem:[#allocation7_spill] sm:$0xff] %v8143_v54 }
 0x12a   : > { %10011 = vst [vmem:[#allocation8_spill] sm:$0xff] %v8145_v55  ;;  %10012 = vst [vmem:[#allocation9_spill] sm:$0xff] %v8147_v56  ;;  %v8149_v57 = vpop.f32.mrf.mxu0  ;;  %v8151_v59 = vpop.f32.mrf.mxu1 }
 0x12b   : > { %10013 = vst [vmem:[#allocation10_spill] sm:$0xff] %v8149_v57  ;;  %10014 = vst [vmem:[#allocation11_spill] sm:$0xff] %v8151_v59 }
 0x12c   : > { %v5821_v60 = vpop.f32.mrf.mxu0  ;;  %v5861_v0 = vpop.f32.mrf.mxu1 }
 0x12e   : > { %v5822_v2 = vpop.f32.mrf.mxu0  ;;  %v5862_v3 = vpop.f32.mrf.mxu1 }
 0x12f   : > { %v5823_v5 = vadd.f32 %v5822_v2, %v5821_v60  ;;  %v5863_v6 = vadd.f32 %v5862_v3, %v5861_v0 }
 0x130   : > { %v5824_v7 = vpop.f32.mrf.mxu0  ;;  %v5864_v8 = vpop.f32.mrf.mxu1 }
 0x131   : > { %v1333_v9 = vadd.f32 %v5823_v5, %v7947_v14  ;;  %v1462_v15 = vadd.f32 %v5863_v6, %v7947_v14 }
 0x132   : > { %v5825_v16 = vpop.f32.mrf.mxu0  ;;  %v5865_v24 = vpop.f32.mrf.mxu1 }
 0x133   : > { %v1363_v29 = vmax.f32 %v1333_v9, 0.0  ;;  %v1492_v30 = vmax.f32 %v1462_v15, 0.0  ;;  %v5826_v31 = vadd.f32 %v5825_v16, %v5824_v7  ;;  %v5866_v46 = vadd.f32 %v5865_v24, %v5864_v8 }
 0x134   : > { %v5827_v47 = vpop.f32.mrf.mxu0  ;;  %v8155_v48 = vpop.f32.mrf.mxu1 }
 0x135   : > { %v1336_v50 = vadd.f32 %v5826_v31, %v7947_v14  ;;  %v1465_v60 = vadd.f32 %v5866_v46, %v7947_v14  ;;  %1508 = vrot.lane.b32.xlu0 %v1492_v30, %s7575_s24  ;;  %1371 = vst.msk [vmem:[#allocation2 + $0x8] sm:$0xff] %vm755_vm0, %v1363_v29 }
 0x136   : > { %v5828_v0 = vpop.f32.mrf.mxu0  ;;  %v8161_v2 = vpop.f32.mrf.mxu1 }
 0x137   : > { %v1364_v3 = vmax.f32 %v1336_v50, 0.0  ;;  %v5829_v5 = vadd.f32 %v5828_v0, %v5827_v47  ;;  %v1493_v6 = vmax.f32 %v1465_v60, 0.0 }
 0x138   : > { %v5830_v9 = vpop.f32.mrf.mxu0  ;;  %v8163_v7 = vpop.f32.mrf.mxu1 }
 0x139   : > { %v1341_v8 = vadd.f32 %v5829_v5, %v7947_v14  ;;  %1510 = vrot.lane.b32.xlu0 %v1493_v6, %s7575_s24  ;;  %1372 = vst.msk [vmem:[#allocation2 + $0x18] sm:$0xff] %vm755_vm0, %v1364_v3 }
 0x13a   : > { %v5831_v15 = vpop.f32.mrf.mxu0  ;;  %v8168_v16 = vpop.f32.mrf.mxu1 }
 0x13b   : > { %v1365_v24 = vmax.f32 %v1341_v8, 0.0  ;;  %v5832_v29 = vadd.f32 %v5831_v15, %v5830_v9 }
 0x13c   : > { %v5833_v30 = vpop.f32.mrf.mxu0  ;;  %v5873_v31 = vpop.f32.mrf.mxu1 }
 0x13d   : > { %v1344_v46 = vadd.f32 %v5832_v29, %v7947_v14  ;;  %1373 = vst.msk [vmem:[#allocation2 + $0x28] sm:$0xff] %vm755_vm0, %v1365_v24 }
 0x13e   : > { %v5834_v47 = vpop.f32.mrf.mxu0  ;;  %v5874_v50 = vpop.f32.mrf.mxu1 }
 0x13f   : > { %v1366_v60 = vmax.f32 %v1344_v46, 0.0  ;;  %v5835_v0 = vadd.f32 %v5834_v47, %v5833_v30  ;;  %v8172_v5 = vadd.f32 %v5874_v50, %v5873_v31 }
 0x140   : > { %v5836_v6 = vpop.f32.mrf.mxu0  ;;  %v8174_v26 = vpop.f32.mrf.mxu1 }
 0x141   : > { %v1349_v3 = vadd.f32 %v5835_v0, %v7947_v14  ;;  %1374 = vst.msk [vmem:[#allocation2 + $0x38] sm:$0xff] %vm755_vm0, %v1366_v60 }
 0x142   : > { %v5837_v9 = vpop.f32.mrf.mxu0  ;;  %v8178_v8 = vpop.f32.mrf.mxu1 }
 0x143   : > { %v1367_v15 = vmax.f32 %v1349_v3, 0.0  ;;  %v5838_v29 = vadd.f32 %v5837_v9, %v5836_v6 }
 0x144   : > { %v5839_v59 = vpop.f32.mrf.mxu0  ;;  %v5879_v24 = vpop.f32.mrf.mxu1 }
 0x145   : > { %v1352_v56 = vadd.f32 %v5838_v29, %v7947_v14  ;;  %1375 = vst.msk [vmem:[#allocation2 + $0x48] sm:$0xff] %vm755_vm0, %v1367_v15 }
 0x146   : > { %v5840_v30 = vpop.f32.mrf.mxu0  ;;  %v5880_v31 = vpop.f32.mrf.mxu1 }
 0x147   : > { %v1368_v46 = vmax.f32 %v1352_v56, 0.0  ;;  %v5841_v47 = vadd.f32 %v5840_v30, %v5839_v59  ;;  %v8182_v50 = vadd.f32 %v5880_v31, %v5879_v24 }
 0x148   : > { %v5842_v0 = vpop.f32.mrf.mxu0  ;;  %v8184_v54 = vpop.f32.mrf.mxu1 }
 0x149   : > { %10015 = vst [vmem:[#allocation12_spill] sm:$0xff] %v8182_v50  ;;  %10016 = vst [vmem:[#allocation13_spill] sm:$0xff] %v8184_v54  ;;  %v1357_v60 = vadd.f32 %v5841_v47, %v7947_v14 }
 0x14a   : > { %1376 = vst.msk [vmem:[#allocation2 + $0x58] sm:$0xff] %vm755_vm0, %v1368_v46  ;;  %v5843_v6 = vpop.f32.mrf.mxu0  ;;  %v8188_v3 = vpop.f32.mrf.mxu1 }
 0x14b   : > { %10017 = vst [vmem:[#allocation14_spill] sm:$0xff] %v8188_v3  ;;  %v1369_v9 = vmax.f32 %v1357_v60, 0.0  ;;  %v5844_v29 = vadd.f32 %v5843_v6, %v5842_v0 }
 0x14c   : > { %v5901_v51 = vpop.f32.mrf.mxu0  ;;  %v5941_v15 = vpop.f32.mrf.mxu1 }
 0x14d   : > { %v1360_v57 = vadd.f32 %v5844_v29, %v7947_v14  ;;  %1377 = vst.msk [vmem:[#allocation2 + $0x68] sm:$0xff] %vm755_vm0, %v1369_v9 }
 0x14e   : > { %v5902_v56 = vpop.f32.mrf.mxu0  ;;  %v5942_v59 = vpop.f32.mrf.mxu1 }
 0x14f   : > { %v1370_v24 = vmax.f32 %v1360_v57, 0.0  ;;  %v5903_v30 = vadd.f32 %v5902_v56, %v5901_v51  ;;  %v5943_v31 = vadd.f32 %v5942_v59, %v5941_v15  ;;  %v5712_v51 = vadd.f32 %v7995_v49, %v7988_v45 }
 0x150   : > { %v5904_v54 = vpop.f32.mrf.mxu0  ;;  %v5944_v47 = vpop.f32.mrf.mxu1  ;;  %v855_v57 = vadd.f32 %v7974_v41, %v7947_v14  ;;  %v5752_v45 = vadd.f32 %v8125_v21, %v8119_v18  ;;  %v5869_v18 = vadd.f32 %v8161_v2, %v8155_v48 }
 0x151   : > { %v1623_v46 = vadd.f32 %v5903_v30, %v7947_v14  ;;  %1378 = vst.msk [vmem:[#allocation2 + $0x78] sm:$0xff] %vm755_vm0, %v1370_v24  ;;  %v1784_v6 = vadd.f32 %v5943_v31, %v7947_v14  ;;  %v1017_v30 = vadd.f32 %v8115_v10, %v7947_v14  ;;  %v1179_v31 = vadd.f32 %v8117_v11, %v7947_v14 }
 0x152   : > { %v5905_v3 = vpop.f32.mrf.mxu0  ;;  %v5945_v60 = vpop.f32.mrf.mxu1  ;;  %v5792_v10 = vadd.f32 %v8127_v22, %v8121_v20 }
 0x153   : > { %v1653_v0 = vmax.f32 %v1623_v46, 0.0  ;;  %v5906_v50 = vadd.f32 %v5905_v3, %v5904_v54  ;;  %v5946_v29 = vadd.f32 %v5945_v60, %v5944_v47  ;;  %v1814_v15 = vmax.f32 %v1784_v6, 0.0 }
 0x154   : > { %v5907_v24 = vpop.f32.mrf.mxu0  ;;  %v858_v54 = vadd.f32 %v5712_v51, %v7947_v14  ;;  %v879_v3 = vmax.f32 %v855_v57, 0.0  ;;  %v1020_v6 = vadd.f32 %v5752_v45, %v7947_v14  ;;  %v1182_v51 = vadd.f32 %v5792_v10, %v7947_v14 }
 0x155   : > { %v1626_v9 = vadd.f32 %v5906_v50, %v7947_v14  ;;  %1669 = vrot.lane.b32.xlu1 %v1653_v0, %s7578_s20  ;;  %v1787_v56 = vadd.f32 %v5946_v29, %v7947_v14  ;;  %v5947_v50 = vpop.f32.mrf.mxu1  ;;  %v1041_v0 = vmax.f32 %v1017_v30, 0.0  ;;  %v1203_v29 = vmax.f32 %v1179_v31, 0.0 }
 0x156   : > { %v5908_v49 = vpop.f32.mrf.mxu0  ;;  %v880_v47 = vmax.f32 %v858_v54, 0.0  ;;  %v1470_v57 = vadd.f32 %v5869_v18, %v7947_v14  ;;  %v1204_v54 = vmax.f32 %v1182_v51, 0.0  ;;  %v8259_v51 = vld [vmem:[%s9987_s3 + $0xf8] sm:$0xff]  }
 0x157   : > { %v1654_v59 = vmax.f32 %v1626_v9, 0.0  ;;  %v1815_v41 = vmax.f32 %v1787_v56, 0.0  ;;  %v5948_v46 = vpop.f32.mrf.mxu1  ;;  %v5909_v21 = vadd.f32 %v5908_v49, %v5907_v24  ;;  %v1042_v56 = vmax.f32 %v1020_v6, 0.0 }
 0x158   : > { %v5910_v60 = vpop.f32.mrf.mxu0  ;;  %v5949_v22 = vadd.f32 %v5948_v46, %v5947_v50 }
 0x159   : > { %1830 = vrot.lane.b32.xlu1 %v1814_v15, %s7577_s17  ;;  %1671 = vrot.lane.b32.xlu0 %v1654_v59, %s7578_s20  ;;  %v5950_v9 = vpop.f32.mrf.mxu1  ;;  %v5872_v15 = vadd.f32 %v8168_v16, %v8163_v7  ;;  %v1631_v20 = vadd.f32 %v5909_v21, %v7947_v14  ;;  %v1494_v59 = vmax.f32 %v1470_v57, 0.0  ;;  %v8247_v21 = vld [vmem:[%s9987_s3 + $0xb8] sm:$0xff]   ;;  %v10018_v57 = vmov 0.0  }
 0x15a   : > { %v5911_v11 = vpop.f32.mrf.mxu0  ;;  %v1792_v7 = vadd.f32 %v5949_v22, %v7947_v14  ;;  %v8286_v22 = vld [vmem:[%s9987_s3 + $0xa0] sm:$0xff]  }
 0x15b   : > { %v5912_v48 = vadd.f32 %v5911_v11, %v5910_v60  ;;  %v5951_v2 = vpop.f32.mrf.mxu1  ;;  %v1473_v24 = vadd.f32 %v5872_v15, %v7947_v14  ;;  %v1655_v30 = vmax.f32 %v1631_v20, 0.0  ;;  %v8254_v11 = vld [vmem:[%s9987_s3 + $0xb0] sm:$0xff]  }
 0x15c   : > { %v5952_v50 = vadd.f32 %v5951_v2, %v5950_v9  ;;  %v1816_v49 = vmax.f32 %v1792_v7, 0.0  ;;  %v8275_v20 = vld [vmem:[%s9987_s3 + $0xf0] sm:$0xff]   ;;  %v8300_v2 = vld [vmem:[%s9987_s3 + $0x98] sm:$0xff]  }
 0x15d   : > { %1832 = vrot.lane.b32.xlu1 %v1815_v41, %s7577_s17  ;;  %897 = vrot.lane.b32.xlu0 %v879_v3, %s7575_s24  ;;  %v1634_v16 = vadd.f32 %v5912_v48, %v7947_v14  ;;  %v1495_v41 = vmax.f32 %v1473_v24, 0.0  ;;  %v8291_v48 = vld [vmem:[%s9987_s3 + $0xe8] sm:$0xff]   ;;  %v8314_v24 = vld [vmem:[%s9987_s3 + $0x90] sm:$0xff]  }
 0x15e   : > { %v8334_v7 = vld [vmem:[%s9987_s3 + $0xd0] sm:$0xff]  }
 0x15f   : > { %v1656_v31 = vmax.f32 %v1634_v16, 0.0 }
 0x161   : > { %1059 = vrot.lane.b32.xlu1 %v1041_v0, %s7578_s20  ;;  %899 = vrot.lane.b32.xlu0 %v880_v47, %s7575_s24  ;;  %v1795_v47 = vadd.f32 %v5952_v50, %v7947_v14  ;;  %v8344_v50 = vld [vmem:[%s9987_s3 + $0x80] sm:$0xff]  }
 0x163   : > { %v1817_v46 = vmax.f32 %v1795_v47, 0.0 }
 0x165   : > { %1221 = vrot.lane.b32.xlu1 %v1203_v29, %s7577_s17  ;;  %1061 = vrot.lane.b32.xlu0 %v1042_v56, %s7578_s20  ;;  %v8270_v56 = vld [vmem:[%s9987_s3 + $0xa8] sm:$0xff]  }
 0x167   : > { %v894_v3 = vpop.permute.xlu0 %893 }
 0x168   : > { %918 = vst.msk [vmem:[#allocation2] sm:$0xff] %vm917_vm2, %v894_v3 }
 0x169   : > { %1223 = vrot.lane.b32.xlu1 %v1204_v54, %s7577_s17  ;;  %1512 = vrot.lane.b32.xlu0 %v1494_v59, %s7575_s24  ;;  %v8305_v59 = vld [vmem:[%s9987_s3 + $0xe0] sm:$0xff]   ;;  %v8319_v54 = vld [vmem:[%s9987_s3 + $0xd8] sm:$0xff]  }
 0x16b   : > { %v896_v45 = vpop.permute.xlu1 %895 }
 0x16c   : > { %919 = vst.msk [vmem:[#allocation2 + $0x10] sm:$0xff] %vm917_vm2, %v896_v45  ;;  %v8349_v45 = vld [vmem:[%s9987_s3 + $0xc8] sm:$0xff]  }
 0x16d   : > { %1673 = vrot.lane.b32.xlu1 %v1655_v30, %s7578_s20  ;;  %1514 = vrot.lane.b32.xlu0 %v1495_v41, %s7575_s24  ;;  %v8329_v30 = vld [vmem:[%s9987_s3 + $0x88] sm:$0xff]   ;;  %10019 = vst [vmem:[#allocation15_spill] sm:$0xff] %v8349_v45  ;;  %v8358_v41 = vld [vmem:[%s9987_s3 + $0xc0] sm:$0xff]  }
 0x16e   : > { %10020 = vst [vmem:[#allocation16_spill] sm:$0xff] %v8358_v41 }
 0x171   : > { %1834 = vrot.lane.b32.xlu1 %v1816_v49, %s7577_s17  ;;  %1675 = vrot.lane.b32.xlu0 %v1656_v31, %s7578_s20  ;;  %v8364_v49 = vpop.f32.mrf.mxu0  ;;  %v8366_v31 = vpop.f32.mrf.mxu1 }
 0x173   : > { %v8368_v47 = vpop.f32.mrf.mxu0 }
 0x175   : > { %1836 = vrot.lane.b32.xlu1 %v1817_v46, %s7577_s17  ;;  %v8370_v46 = vpop.f32.mrf.mxu1 }
 0x187   : > { %v1218_v60 = vpop.permute.xlu1 %1217  ;;  %v1056_v0 = vpop.permute.xlu0 %1055 }
 0x188   : > { %1080 = vst.msk [vmem:[#allocation2] sm:$0xff] %vm1079_vm3, %v1056_v0 }
 0x189   : > { %1242 = vst.msk [vmem:[#allocation2] sm:$0xff] %vm1241_vm4, %v1218_v60  ;;  %v8372_v60 = vpop.f32.mrf.mxu0 }
 0x18b   : > { %v1220_v6 = vpop.permute.xlu1 %1219  ;;  %v1058_v10 = vpop.permute.xlu0 %1057 }
 0x18c   : > { %1081 = vst.msk [vmem:[#allocation2 + $0x10] sm:$0xff] %vm1079_vm3, %v1058_v10  ;;  %v8377_v10 = vpop.f32.mrf.mxu0 }
 0x18d   : > { %1243 = vst.msk [vmem:[#allocation2 + $0x10] sm:$0xff] %vm1241_vm4, %v1220_v6  ;;  %v8375_v6 = vpop.f32.mrf.mxu1 }
 0x190   : > { %v2299_v18 = vld [vmem:[#allocation2] sm:$0xff] }
 0x191   : > { %v2301_v29 = vpack.c.bf16 %v2299_v18, %v2299_v18 }
 0x193   : > { %2305 = vrot.lane.b32.xlu0 %v2301_v29, %s7578_s20  ;;  %6373 = vmatmul.mubr.bf16.vlgmr.msra.gmra.mxu0 %v2301_v29 }
 0x194   : > { %v1976_v9 = vld [vmem:[#allocation2 + $0x10] sm:$0xff]  ;;  %6397 = vmatpush3.bf16.msra.mxu0 %v8247_v21  ;;  %6412 = vmatprep.mubr.msk.bf16.mxu0 %vm7576_vm1, %v10018_v57 }
 0x195   : > { %v1977_v15 = vpack.c.bf16 %v1976_v9, %v1976_v9  ;;  %6398 = vmatprep.subr.bf16.mxu0 %v10018_v57 }
 0x197   : > { %6393 = vmatmul.mubr.bf16.vlgmr.msra.gmra.mxu1 %v1977_v15  ;;  %2359 = vrot.lane.b32.xlu0 %v1977_v15, %s7578_s20  ;;  %v8381_v15 = vpop.f32.mrf.mxu1 }
 0x198   : > { %6399 = vmatpush3.bf16.msra.mxu0 %v8254_v11  ;;  %6417 = vmatpush3.bf16.msra.mxu1 %v8259_v51 }
 0x199   : > { %6400 = vmatprep.subr.bf16.mxu0 %v10018_v57  ;;  %6418 = vmatprep.subr.bf16.mxu1 %v10018_v57 }
 0x19a   : > { %6432 = vmatprep.mubr.msk.bf16.mxu1 %vm7576_vm1, %v10018_v57 }
 0x19c   : > { %6401 = vmatpush3.bf16.msra.mxu0 %v8270_v56  ;;  %6419 = vmatpush3.bf16.msra.mxu1 %v8275_v20 }
 0x19d   : > { %6402 = vmatprep.subr.bf16.mxu0 %v10018_v57  ;;  %6420 = vmatprep.subr.bf16.mxu1 %v10018_v57 }
 0x1a0   : > { %6403 = vmatpush3.bf16.msra.mxu0 %v8286_v22  ;;  %6421 = vmatpush3.bf16.msra.mxu1 %v8291_v48 }
 0x1a1   : > { %6404 = vmatprep.subr.bf16.mxu0 %v10018_v57  ;;  %6422 = vmatprep.subr.bf16.mxu1 %v10018_v57 }
 0x1a4   : > { %6405 = vmatpush3.bf16.msra.mxu0 %v8300_v2  ;;  %6423 = vmatpush3.bf16.msra.mxu1 %v8305_v59 }
 0x1a5   : > { %6406 = vmatprep.subr.bf16.mxu0 %v10018_v57  ;;  %6424 = vmatprep.subr.bf16.mxu1 %v10018_v57 }
 0x1a7   : > { %v1509_v3 = vpop.permute.xlu0 %1508 }
 0x1a8   : > { %1532 = vst.msk [vmem:[#allocation2 + $0x8] sm:$0xff] %vm917_vm2, %v1509_v3  ;;  %6407 = vmatpush3.bf16.msra.mxu0 %v8314_v24  ;;  %6425 = vmatpush3.bf16.msra.mxu1 %v8319_v54 }
 0x1a9   : > { %6408 = vmatprep.subr.bf16.mxu0 %v10018_v57  ;;  %6426 = vmatprep.subr.bf16.mxu1 %v10018_v57 }
 0x1ab   : > { %v1511_v16 = vpop.permute.xlu0 %1510 }
 0x1ac   : > { %1533 = vst.msk [vmem:[#allocation2 + $0x18] sm:$0xff] %vm917_vm2, %v1511_v16  ;;  %6409 = vmatpush3.bf16.msra.mxu0 %v8329_v30  ;;  %6427 = vmatpush3.bf16.msra.mxu1 %v8334_v7 }
 0x1ad   : > { %6410 = vmatprep.subr.bf16.mxu0 %v10018_v57  ;;  %6428 = vmatprep.subr.bf16.mxu1 %v10018_v57 }
 0x1b0   : > { %6411 = vmatpush3.bf16.msra.mxu0 %v8344_v50  ;;  %6429 = vmatpush3.bf16.msra.mxu1 %v8349_v45 }
 0x1b1   : > { %6430 = vmatprep.subr.bf16.mxu1 %v10018_v57  ;;  %6436 = vmatprep.subr.bf16.mxu0 %v10018_v57 }
 0x1b4   : > { %6431 = vmatpush3.bf16.msra.mxu1 %v8358_v41 }
 0x1b5   : > { %6456 = vmatprep.subr.bf16.mxu1 %v10018_v57  ;;  %v5919_v9 = vpop.f32.mrf.mxu0 }
 0x1b7   : > { %v5920_v3 = vpop.f32.mrf.mxu0 }
 0x1b8   : > { %v8383_v25 = vadd.f32 %v5920_v3, %v5919_v9 }
 0x1c7   : > { %v1670_v0 = vpop.permute.xlu1 %1669 }
 0x1c8   : > { %1693 = vst.msk [vmem:[#allocation2 + $0x8] sm:$0xff] %vm1079_vm3, %v1670_v0  ;;  %v5959_v0 = vpop.f32.mrf.mxu1 }
 0x1ca   : > { %v5960_v19 = vpop.f32.mrf.mxu1 }
 0x1cb   : > { %v1831_v18 = vpop.permute.xlu1 %1830  ;;  %v1672_v29 = vpop.permute.xlu0 %1671 }
 0x1cc   : > { %1854 = vst.msk [vmem:[#allocation2 + $0x8] sm:$0xff] %vm1241_vm4, %v1831_v18  ;;  %v8387_v18 = vadd.f32 %v5960_v19, %v5959_v0 }
 0x1cd   : > { %1694 = vst.msk [vmem:[#allocation2 + $0x18] sm:$0xff] %vm1079_vm3, %v1672_v29 }
 0x1ce   : > { %10021 = vst [vmem:[#allocation17_spill] sm:$0xff] %v8387_v18 }
 0x1cf   : > { %v1833_v16 = vpop.permute.xlu1 %1832  ;;  %v898_v55 = vpop.permute.xlu0 %897 }
 0x1d0   : > { %1855 = vst.msk [vmem:[#allocation2 + $0x18] sm:$0xff] %vm1241_vm4, %v1833_v16 }
 0x1d1   : > { %920 = vst.msk [vmem:[#allocation2 + $0x20] sm:$0xff] %vm917_vm2, %v898_v55 }
 0x1d3   : > { %v1060_v17 = vpop.permute.xlu1 %1059  ;;  %v900_v41 = vpop.permute.xlu0 %899  ;;  %v2300_v45 = vld [vmem:[#allocation2 + $0x8] sm:$0xff] }
 0x1d4   : > { %1082 = vst.msk [vmem:[#allocation2 + $0x20] sm:$0xff] %vm1079_vm3, %v1060_v17  ;;  %v8391_v29 = vpack.c.bf16 %v2300_v45, %v2300_v45 }
 0x1d5   : > { %921 = vst.msk [vmem:[#allocation2 + $0x30] sm:$0xff] %vm917_vm2, %v900_v41 }
 0x1d6   : > { %2307 = vrot.lane.b32.xlu1 %v8391_v29, %s7578_s20 }
 0x1d7   : > { %v1222_v9 = vpop.permute.xlu1 %1221  ;;  %v1062_v3 = vpop.permute.xlu0 %1061  ;;  %v2354_v16 = vld [vmem:[#allocation2 + $0x18] sm:$0xff] }
 0x1d8   : > { %1244 = vst.msk [vmem:[#allocation2 + $0x20] sm:$0xff] %vm1241_vm4, %v1222_v9  ;;  %v8397_v55 = vpack.c.bf16 %v2354_v16, %v2354_v16 }
 0x1d9   : > { %1083 = vst.msk [vmem:[#allocation2 + $0x30] sm:$0xff] %vm1079_vm3, %v1062_v3 }
 0x1da   : > { %2361 = vrot.lane.b32.xlu1 %v8397_v55, %s7578_s20 }
 0x1db   : > { %v1224_v17 = vpop.permute.xlu1 %1223  ;;  %v1513_v19 = vpop.permute.xlu0 %1512 }
 0x1dc   : > { %1245 = vst.msk [vmem:[#allocation2 + $0x30] sm:$0xff] %vm1241_vm4, %v1224_v17  ;;  %v863_v17 = vadd.f32 %v8013_v61, %v7947_v14 }
 0x1dd   : > { %1534 = vst.msk [vmem:[#allocation2 + $0x28] sm:$0xff] %vm917_vm2, %v1513_v19  ;;  %v5718_v19 = vadd.f32 %v8033_v4, %v8027_v1  ;;  %v5758_v4 = vadd.f32 %v8137_v40, %v8133_v34  ;;  %v1025_v40 = vadd.f32 %v8129_v32, %v7947_v14  ;;  %v5798_v32 = vadd.f32 %v8139_v42, %v8135_v37 }
 0x1de   : > { %v881_v61 = vmax.f32 %v863_v17, 0.0 }
 0x1df   : > { %v1674_v45 = vpop.permute.xlu1 %1673  ;;  %v1515_v41 = vpop.permute.xlu0 %1514  ;;  %v2406_v0 = vld [vmem:[#allocation2 + $0x20] sm:$0xff]  ;;  %v866_v1 = vadd.f32 %v5718_v19, %v7947_v14 }
 0x1e0   : > { %1695 = vst.msk [vmem:[#allocation2 + $0x28] sm:$0xff] %vm1079_vm3, %v1674_v45  ;;  %v8405_v9 = vpack.c.bf16 %v2406_v0, %v2406_v0 }
 0x1e1   : > { %1535 = vst.msk [vmem:[#allocation2 + $0x38] sm:$0xff] %vm917_vm2, %v1515_v41  ;;  %v882_v34 = vmax.f32 %v866_v1, 0.0  ;;  %v5878_v41 = vadd.f32 %v8178_v8, %v8174_v26 }
 0x1e2   : > { %2412 = vrot.lane.b32.xlu0 %v8405_v9, %s7578_s20  ;;  %6413 = vmatmul.mubr.bf16.vlgmr.msra.gmra.mxu0 %v8405_v9 }
 0x1e3   : > { %v1835_v3 = vpop.permute.xlu1 %1834  ;;  %v1676_v16 = vpop.permute.xlu0 %1675  ;;  %v2190_v18 = vld [vmem:[#allocation2 + $0x30] sm:$0xff]  ;;  %6437 = vmatpush3.bf16.msra.mxu0 %v7954_v23  ;;  %6452 = vmatprep.mubr.msk.bf16.mxu0 %vm7576_vm1, %v10018_v57 }
 0x1e4   : > { %1856 = vst.msk [vmem:[#allocation2 + $0x28] sm:$0xff] %vm1241_vm4, %v1835_v3  ;;  %v8419_v45 = vpack.c.bf16 %v2190_v18, %v2190_v18  ;;  %6438 = vmatprep.subr.bf16.mxu0 %v10018_v57 }
 0x1e5   : > { %1696 = vst.msk [vmem:[#allocation2 + $0x38] sm:$0xff] %vm1079_vm3, %v1676_v16  ;;  %v5958_v16 = vadd.f32 %v8381_v15, %v8375_v6  ;;  %v8513_v6 = vpop.f32.mrf.mxu0 }
 0x1e6   : > { %6433 = vmatmul.mubr.bf16.vlgmr.msra.gmra.mxu1 %v8419_v45  ;;  %2465 = vrot.lane.b32.xlu0 %v8419_v45, %s7578_s20 }
 0x1e7   : > { %v1837_v23 = vpop.permute.xlu1 %1836  ;;  %6439 = vmatpush3.bf16.msra.mxu0 %v7967_v35  ;;  %6457 = vmatpush3.bf16.msra.mxu1 %v7972_v36  ;;  %v1028_v36 = vadd.f32 %v5758_v4, %v7947_v14  ;;  %v8521_v19 = vpop.f32.mrf.mxu0 }
 0x1e8   : > { %1857 = vst.msk [vmem:[#allocation2 + $0x38] sm:$0xff] %vm1241_vm4, %v1837_v23  ;;  %6440 = vmatprep.subr.bf16.mxu0 %v10018_v57  ;;  %6458 = vmatprep.subr.bf16.mxu1 %v10018_v57  ;;  %v8523_v23 = vpop.f32.mrf.mxu1 }
 0x1e9   : > { %6472 = vmatprep.mubr.msk.bf16.mxu1 %vm7576_vm1, %v10018_v57  ;;  %v1044_v3 = vmax.f32 %v1028_v36, 0.0 }
 0x1ea   : > { %901 = vrot.lane.b32.xlu0 %v881_v61, %s7575_s24  ;;  %v8530_v61 = vld [vmem:[%s9988_s4] ss:$0 sm:$0xff]  ;;  %v8536_v4 = vpop.f32.mrf.mxu1 }
 0x1eb   : > { %v2407_v35 = vld [vmem:[#allocation2 + $0x28] sm:$0xff]  ;;  %6441 = vmatpush3.bf16.msra.mxu0 %v7981_v43  ;;  %6459 = vmatpush3.bf16.msra.mxu1 %v7986_v44  ;;  %v1478_v44 = vadd.f32 %v8172_v5, %v7947_v14  ;;  %v8466_v14 = vld [vmem:[%s9986_s2] ss:$0 sm:$0xff] }
 0x1ec   : > { %v8439_v18 = vpack.c.bf16 %v2407_v35, %v2407_v35  ;;  %6442 = vmatprep.subr.bf16.mxu0 %v10018_v57  ;;  %6460 = vmatprep.subr.bf16.mxu1 %v10018_v57  ;;  %v1187_v26 = vadd.f32 %v8466_v14, %v8131_v33  ;;  %v1481_v8 = vadd.f32 %v8466_v14, %v5878_v41 }
 0x1ed   : > { %v1496_v5 = vmax.f32 %v1478_v44, 0.0  ;;  %v1190_v37 = vadd.f32 %v8466_v14, %v5798_v32 }
 0x1ee   : > { %2414 = vrot.lane.b32.xlu1 %v8439_v18, %s7578_s20  ;;  %903 = vrot.lane.b32.xlu0 %v882_v34, %s7575_s24  ;;  %v1205_v33 = vmax.f32 %v1187_v26, 0.0  ;;  %v1497_v42 = vmax.f32 %v1481_v8, 0.0 }
 0x1ef   : > { %v2460_v43 = vld [vmem:[#allocation2 + $0x38] sm:$0xff]  ;;  %6443 = vmatpush3.bf16.msra.mxu0 %v8002_v52  ;;  %6461 = vmatpush3.bf16.msra.mxu1 %v8007_v53  ;;  %v5918_v52 = vadd.f32 %v8377_v10, %v8372_v60  ;;  %v1043_v53 = vmax.f32 %v1025_v40, 0.0 }
 0x1f0   : > { %v8454_v0 = vpack.c.bf16 %v2460_v43, %v2460_v43  ;;  %6444 = vmatprep.subr.bf16.mxu0 %v10018_v57  ;;  %6462 = vmatprep.subr.bf16.mxu1 %v10018_v57 }
 0x1f2   : > { %2467 = vrot.lane.b32.xlu1 %v8454_v0, %s7578_s20  ;;  %1065 = vrot.lane.b32.xlu0 %v1044_v3, %s7578_s20 }
 0x1f3   : > { %6445 = vmatpush3.bf16.msra.mxu0 %v8020_v62  ;;  %6463 = vmatpush3.bf16.msra.mxu1 %v8025_v63  ;;  %v5915_v62 = vadd.f32 %v8368_v47, %v8364_v49  ;;  %v1642_v63 = vadd.f32 %v8466_v14, %v5918_v52  ;;  %v5955_v47 = vadd.f32 %v8370_v46, %v8366_v31 }
 0x1f4   : > { %6446 = vmatprep.subr.bf16.mxu0 %v10018_v57  ;;  %6464 = vmatprep.subr.bf16.mxu1 %v10018_v57 }
 0x1f5   : > { %v1639_v49 = vadd.f32 %v8466_v14, %v5915_v62  ;;  %v1800_v10 = vadd.f32 %v8466_v14, %v5955_v47  ;;  %v10023_v47 = vld [vmem:[#allocation16_spill] sm:$0xff] }
 0x1f6   : > { %1063 = vrot.lane.b32.xlu1 %v1043_v53, %s7578_s20  ;;  %1516 = vrot.lane.b32.xlu0 %v1496_v5, %s7575_s24 }
 0x1f7   : > { %6447 = vmatpush3.bf16.msra.mxu0 %v8044_v12  ;;  %6465 = vmatpush3.bf16.msra.mxu1 %v8049_v13  ;;  %v1658_v12 = vmax.f32 %v1642_v63, 0.0  ;;  %v1206_v13 = vmax.f32 %v1190_v37, 0.0  ;;  %v1657_v60 = vmax.f32 %v1639_v49, 0.0 }
 0x1f8   : > { %6448 = vmatprep.subr.bf16.mxu0 %v10018_v57  ;;  %6466 = vmatprep.subr.bf16.mxu1 %v10018_v57 }
 0x1fa   : > { %1225 = vrot.lane.b32.xlu1 %v1205_v33, %s7577_s17  ;;  %1518 = vrot.lane.b32.xlu0 %v1497_v42, %s7575_s24  ;;  %v10022_v33 = vld [vmem:[#allocation15_spill] sm:$0xff] }
 0x1fb   : > { %6449 = vmatpush3.bf16.msra.mxu0 %v8068_v27  ;;  %6467 = vmatpush3.bf16.msra.mxu1 %v8073_v28  ;;  %v1818_v27 = vmax.f32 %v1800_v10, 0.0  ;;  %v1803_v28 = vadd.f32 %v8466_v14, %v5958_v16  ;;  %v8592_v16 = vld [vmem:[%s9987_s3 + $0x30] sm:$0xff]  }
 0x1fc   : > { %6450 = vmatprep.subr.bf16.mxu0 %v10018_v57  ;;  %6468 = vmatprep.subr.bf16.mxu1 %v10018_v57 }
 0x1fd   : > { %v1819_v31 = vmax.f32 %v1803_v28, 0.0 }
 0x1fe   : > { %1227 = vrot.lane.b32.xlu1 %v1206_v13, %s7577_s17  ;;  %1679 = vrot.lane.b32.xlu0 %v1658_v12, %s7578_s20  ;;  %v8576_v12 = vld [vmem:[%s9987_s3 + $0x38] sm:$0xff]  }
 0x1ff   : > { %6451 = vmatpush3.bf16.msra.mxu0 %v8086_v38  ;;  %6469 = vmatpush3.bf16.msra.mxu1 %v8091_v39 }
 0x200   : > { %6470 = vmatprep.subr.bf16.mxu1 %v10018_v57  ;;  %6476 = vmatprep.subr.bf16.mxu0 %v10018_v57 }
 0x202   : > { %1677 = vrot.lane.b32.xlu1 %v1657_v60, %s7578_s20 }
 0x203   : > { %6471 = vmatpush3.bf16.msra.mxu1 %v8106_v58 }
 0x204   : > { %6496 = vmatprep.subr.bf16.mxu1 %v10018_v57 }
 0x205   : > { %v2306_v38 = vpop.permute.xlu0 %2305 }
 0x206   : > { %1838 = vrot.lane.b32.xlu1 %v1818_v27, %s7577_s17  ;;  %v8598_v27 = vld [vmem:[%s9987_s3 + $0x78] sm:$0xff]  }
 0x209   : > { %v2360_v58 = vpop.permute.xlu0 %2359 }
 0x20a   : > { %1840 = vrot.lane.b32.xlu1 %v1819_v31, %s7577_s17 }
 0x248   : > { %v2308_v39 = vpop.permute.xlu1 %2307 }
 0x249   : > { %v2310_v46 = vsel %vm2309_vm5, %v2306_v38, %v2308_v39  ;;  %v8610_v38 = vld [vmem:[%s9987_s3 + $0x28] sm:$0xff]   ;;  %v8616_v39 = vld [vmem:[%s9987_s3 + $0x70] sm:$0xff]  }
 0x24a   : > { %6453 = vmatmul.mubr.bf16.vlgmr.msra.gmra.mxu0 %v2310_v46 }
 0x24b   : > { %6477 = vmatpush3.bf16.msra.mxu0 %v8247_v21  ;;  %6492 = vmatprep.mubr.msk.bf16.mxu0 %vm7576_vm1, %v10018_v57 }
 0x24c   : > { %v2362_v15 = vpop.permute.xlu1 %2361  ;;  %6478 = vmatprep.subr.bf16.mxu0 %v10018_v57 }
 0x24d   : > { %v2363_v17 = vsel %vm2309_vm5, %v2360_v58, %v2362_v15 }
 0x24e   : > { %6473 = vmatmul.mubr.bf16.vlgmr.msra.gmra.mxu1 %v2363_v17  ;;  %v8627_v17 = vld [vmem:[%s9987_s3 + $0x20] sm:$0xff]  }
 0x24f   : > { %6479 = vmatpush3.bf16.msra.mxu0 %v8254_v11  ;;  %6497 = vmatpush3.bf16.msra.mxu1 %v8259_v51 }
 0x250   : > { %6480 = vmatprep.subr.bf16.mxu0 %v10018_v57  ;;  %6498 = vmatprep.subr.bf16.mxu1 %v10018_v57 }
 0x251   : > { %6512 = vmatprep.mubr.msk.bf16.mxu1 %vm7576_vm1, %v10018_v57 }
 0x253   : > { %6481 = vmatpush3.bf16.msra.mxu0 %v8270_v56  ;;  %6499 = vmatpush3.bf16.msra.mxu1 %v8275_v20  ;;  %v1969_v1 = vpop.f32.mrf.mxu0 }
 0x254   : > { %v1975_v35 = vadd.f32 %v8530_v61, %v1969_v1  ;;  %v2413_v36 = vpop.permute.xlu0 %2412  ;;  %6482 = vmatprep.subr.bf16.mxu0 %v10018_v57  ;;  %6500 = vmatprep.subr.bf16.mxu1 %v10018_v57  ;;  %v8633_v1 = vld [vmem:[%s9987_s3 + $0x68] sm:$0xff]  }
 0x255   : > { %v6374_v34 = vpop.f32.mrf.mxu0 }
 0x257   : > { %6483 = vmatpush3.bf16.msra.mxu0 %v8286_v22  ;;  %6501 = vmatpush3.bf16.msra.mxu1 %v8291_v48  ;;  %v1972_v40 = vpop.f32.mrf.mxu0  ;;  %v2076_v43 = vpop.f32.mrf.mxu1 }
 0x258   : > { %v8543_v44 = vadd.f32 %v2076_v43, %v1975_v35  ;;  %v2466_v41 = vpop.permute.xlu0 %2465  ;;  %6484 = vmatprep.subr.bf16.mxu0 %v10018_v57  ;;  %6502 = vmatprep.subr.bf16.mxu1 %v10018_v57  ;;  %v10024_v40 = vld [vmem:[#allocation3_spill] sm:$0xff] }
 0x259   : > { %v6375_v3 = vpop.f32.mrf.mxu0  ;;  %v6394_v52 = vpop.f32.mrf.mxu1  ;;  %v871_v43 = vadd.f32 %v8466_v14, %v10024_v40 }
 0x25a   : > { %v10026_v3 = vld [vmem:[#allocation5_spill] sm:$0xff] }
 0x25b   : > { %6485 = vmatpush3.bf16.msra.mxu0 %v8300_v2  ;;  %6503 = vmatpush3.bf16.msra.mxu1 %v8305_v59  ;;  %v2079_v26 = vpop.f32.mrf.mxu1 }
 0x25c   : > { %v902_v53 = vpop.permute.xlu0 %901  ;;  %6486 = vmatprep.subr.bf16.mxu0 %v10018_v57  ;;  %6504 = vmatprep.subr.bf16.mxu1 %v10018_v57  ;;  %v8650_v26 = vld [vmem:[%s9987_s3 + $0x18] sm:$0xff]  }
 0x25d   : > { %922 = vst.msk [vmem:[#allocation2 + $0x40] sm:$0xff] %vm917_vm2, %v902_v53  ;;  %v6395_v32 = vpop.f32.mrf.mxu1  ;;  %v8656_v53 = vld [vmem:[%s9987_s3 + $0x60] sm:$0xff]  }
 0x25f   : > { %6487 = vmatpush3.bf16.msra.mxu0 %v8314_v24  ;;  %6505 = vmatpush3.bf16.msra.mxu1 %v8319_v54 }
 0x260   : > { %v2415_v5 = vpop.permute.xlu1 %2414  ;;  %v904_v8 = vpop.permute.xlu0 %903  ;;  %6488 = vmatprep.subr.bf16.mxu0 %v10018_v57  ;;  %6506 = vmatprep.subr.bf16.mxu1 %v10018_v57 }
 0x261   : > { %923 = vst.msk [vmem:[#allocation2 + $0x50] sm:$0xff] %vm917_vm2, %v904_v8  ;;  %v8567_v49 = vsel %vm2309_vm5, %v2413_v36, %v2415_v5  ;;  %v883_v5 = vmax.f32 %v871_v43, 0.0  ;;  %v10029_v43 = vld [vmem:[#allocation6_spill] sm:$0xff] }
 0x263   : > { %6489 = vmatpush3.bf16.msra.mxu0 %v8329_v30  ;;  %6507 = vmatpush3.bf16.msra.mxu1 %v8334_v7 }
 0x264   : > { %v2468_v62 = vpop.permute.xlu1 %2467  ;;  %v1066_v63 = vpop.permute.xlu0 %1065  ;;  %6490 = vmatprep.subr.bf16.mxu0 %v10018_v57  ;;  %6508 = vmatprep.subr.bf16.mxu1 %v10018_v57 }
 0x265   : > { %1085 = vst.msk [vmem:[#allocation2 + $0x50] sm:$0xff] %vm1079_vm3, %v1066_v63  ;;  %v8582_v10 = vsel %vm2309_vm5, %v2466_v41, %v2468_v62  ;;  %v10025_v41 = vld [vmem:[#allocation4_spill] sm:$0xff]  ;;  %v10028_v63 = vld [vmem:[#allocation10_spill] sm:$0xff] }
 0x266   : > { %v5724_v52 = vadd.f32 %v10026_v3, %v10025_v41  ;;  %v10027_v62 = vld [vmem:[#allocation8_spill] sm:$0xff]  ;;  %v1033_v41 = vadd.f32 %v8466_v14, %v10029_v43  ;;  %v10034_v43 = vld [vmem:[#allocation9_spill] sm:$0xff] }
 0x267   : > { %6491 = vmatpush3.bf16.msra.mxu0 %v8344_v50  ;;  %6509 = vmatpush3.bf16.msra.mxu1 %v10022_v33  ;;  %v10030_v3 = vld [vmem:[#allocation12_spill] sm:$0xff] }
 0x268   : > { %v1064_v37 = vpop.permute.xlu1 %1063  ;;  %v1517_v42 = vpop.permute.xlu0 %1516  ;;  %6510 = vmatprep.subr.bf16.mxu1 %v10018_v57  ;;  %6516 = vmatprep.subr.bf16.mxu0 %v10018_v57  ;;  %v874_v8 = vadd.f32 %v8466_v14, %v5724_v52  ;;  %v1486_v52 = vadd.f32 %v8466_v14, %v10030_v3  ;;  %v10035_v3 = vld [vmem:[#allocation11_spill] sm:$0xff] }
 0x269   : > { %1084 = vst.msk [vmem:[#allocation2 + $0x40] sm:$0xff] %vm1079_vm3, %v1064_v37  ;;  %v5764_v37 = vadd.f32 %v10028_v63, %v10027_v62  ;;  %v8713_v63 = vld [vmem:[%s9987_s3] sm:$0xff]  }
 0x26a   : > { %1536 = vst.msk [vmem:[#allocation2 + $0x48] sm:$0xff] %vm917_vm2, %v1517_v42  ;;  %6493 = vmatmul.mubr.bf16.vlgmr.msra.gmra.mxu0 %v8567_v49  ;;  %v8670_v42 = vld [vmem:[%s9987_s3 + $0x10] sm:$0xff]  }
 0x26b   : > { %6511 = vmatpush3.bf16.msra.mxu1 %v10023_v47  ;;  %6517 = vmatpush3.bf16.msra.mxu0 %v8576_v12 }
 0x26c   : > { %v1226_v13 = vpop.permute.xlu1 %1225  ;;  %v1519_v60 = vpop.permute.xlu0 %1518  ;;  %6518 = vmatprep.subr.bf16.mxu0 %v10018_v57  ;;  %6536 = vmatprep.subr.bf16.mxu1 %v10018_v57 }
 0x26d   : > { %1246 = vst.msk [vmem:[#allocation2 + $0x40] sm:$0xff] %vm1241_vm4, %v1226_v13  ;;  %6532 = vmatprep.mubr.msk.bf16.mxu0 %vm7576_vm1, %v10018_v57  ;;  %v8676_v13 = vld [vmem:[%s9987_s3 + $0x58] sm:$0xff]  }
 0x26e   : > { %1537 = vst.msk [vmem:[#allocation2 + $0x58] sm:$0xff] %vm917_vm2, %v1519_v60  ;;  %6513 = vmatmul.mubr.bf16.vlgmr.msra.gmra.mxu1 %v8582_v10 }
 0x26f   : > { %6519 = vmatpush3.bf16.msra.mxu0 %v8592_v16  ;;  %6537 = vmatpush3.bf16.msra.mxu1 %v8598_v27 }
 0x270   : > { %v1228_v28 = vpop.permute.xlu1 %1227  ;;  %6520 = vmatprep.subr.bf16.mxu0 %v10018_v57  ;;  %6538 = vmatprep.subr.bf16.mxu1 %v10018_v57  ;;  %v1680_v31 = vpop.permute.xlu0 %1679 }
 0x271   : > { %1247 = vst.msk [vmem:[#allocation2 + $0x50] sm:$0xff] %vm1241_vm4, %v1228_v28  ;;  %6552 = vmatprep.mubr.msk.bf16.mxu1 %vm7576_vm1, %v10018_v57 }
 0x272   : > { %1698 = vst.msk [vmem:[#allocation2 + $0x58] sm:$0xff] %vm1079_vm3, %v1680_v31  ;;  %v1036_v31 = vadd.f32 %v8466_v14, %v5764_v37  ;;  %v8719_v37 = vld [vmem:[%s9987_s3 + $0x48] sm:$0xff]  }
 0x273   : > { %6521 = vmatpush3.bf16.msra.mxu0 %v8610_v38  ;;  %6539 = vmatpush3.bf16.msra.mxu1 %v8616_v39 }
 0x274   : > { %v1678_v46 = vpop.permute.xlu1 %1677  ;;  %6522 = vmatprep.subr.bf16.mxu0 %v10018_v57  ;;  %6540 = vmatprep.subr.bf16.mxu1 %v10018_v57  ;;  %v2932_v58 = vld [vmem:[#allocation2 + $0x40] sm:$0xff]  ;;  %v1046_v62 = vmax.f32 %v1036_v31, 0.0 }
 0x275   : > { %1697 = vst.msk [vmem:[#allocation2 + $0x48] sm:$0xff] %vm1079_vm3, %v1678_v46  ;;  %v8622_v15 = vpack.c.bf16 %v2932_v58, %v2932_v58  ;;  %v884_v46 = vmax.f32 %v874_v8, 0.0  ;;  %v8688_v58 = vld [vmem:[%s9987_s3 + $0x8] sm:$0xff]  }
 0x277   : > { %6523 = vmatpush3.bf16.msra.mxu0 %v8627_v17  ;;  %6541 = vmatpush3.bf16.msra.mxu1 %v8633_v1 }
 0x278   : > { %2938 = vrot.lane.b32.xlu0 %v8622_v15, %s7578_s20  ;;  %v1839_v35 = vpop.permute.xlu1 %1838  ;;  %6524 = vmatprep.subr.bf16.mxu0 %v10018_v57  ;;  %v2985_v36 = vld [vmem:[#allocation2 + $0x50] sm:$0xff] }
 0x279   : > { %1858 = vst.msk [vmem:[#allocation2 + $0x48] sm:$0xff] %vm1241_vm4, %v1839_v35  ;;  %6542 = vmatprep.subr.bf16.mxu1 %v10018_v57  ;;  %v8641_v34 = vpack.c.bf16 %v2985_v36, %v2985_v36  ;;  %v8694_v35 = vld [vmem:[%s9987_s3 + $0x50] sm:$0xff]  }
 0x27b   : > { %6525 = vmatpush3.bf16.msra.mxu0 %v8650_v26  ;;  %6543 = vmatpush3.bf16.msra.mxu1 %v8656_v53 }
 0x27c   : > { %2991 = vrot.lane.b32.xlu0 %v8641_v34, %s7578_s20  ;;  %v1841_v32 = vpop.permute.xlu1 %1840  ;;  %6526 = vmatprep.subr.bf16.mxu0 %v10018_v57 }
 0x27d   : > { %1859 = vst.msk [vmem:[#allocation2 + $0x58] sm:$0xff] %vm1241_vm4, %v1841_v32  ;;  %6544 = vmatprep.subr.bf16.mxu1 %v10018_v57  ;;  %v10031_v32 = vld [vmem:[#allocation13_spill] sm:$0xff] }
 0x27f   : > { %6527 = vmatpush3.bf16.msra.mxu0 %v8670_v42  ;;  %6545 = vmatpush3.bf16.msra.mxu1 %v8676_v13 }
 0x280   : > { %905 = vrot.lane.b32.xlu0 %v883_v5, %s7575_s24  ;;  %6528 = vmatprep.subr.bf16.mxu0 %v10018_v57  ;;  %v2933_v60 = vld [vmem:[#allocation2 + $0x48] sm:$0xff]  ;;  %v10032_v5 = vld [vmem:[#allocation14_spill] sm:$0xff] }
 0x281   : > { %6546 = vmatprep.subr.bf16.mxu1 %v10018_v57  ;;  %v8682_v28 = vpack.c.bf16 %v2933_v60, %v2933_v60  ;;  %v5884_v8 = vadd.f32 %v10032_v5, %v10031_v32  ;;  %v10033_v60 = vld [vmem:[#allocation7_spill] sm:$0xff]  ;;  %v5804_v32 = vadd.f32 %v10035_v3, %v10034_v43  ;;  %v1498_v5 = vmax.f32 %v1486_v52, 0.0 }
 0x282   : > { %v1195_v31 = vadd.f32 %v8466_v14, %v10033_v60  ;;  %v8738_v60 = vld [vmem:[%s9987_s3 + $0x40] sm:$0xff]   ;;  %v1647_v52 = vadd.f32 %v8466_v14, %v8383_v25 }
 0x283   : > { %6529 = vmatpush3.bf16.msra.mxu0 %v8688_v58  ;;  %6547 = vmatpush3.bf16.msra.mxu1 %v8694_v35 }
 0x284   : > { %907 = vrot.lane.b32.xlu0 %v884_v46, %s7575_s24  ;;  %2940 = vrot.lane.b32.xlu1 %v8682_v28, %s7578_s20  ;;  %v2986_v36 = vld [vmem:[#allocation2 + $0x58] sm:$0xff]  ;;  %v5924_v46 = vadd.f32 %v8521_v19, %v8513_v6  ;;  %v1198_v19 = vadd.f32 %v8466_v14, %v5804_v32 }
 0x285   : > { %6530 = vmatprep.subr.bf16.mxu0 %v10018_v57  ;;  %6548 = vmatprep.subr.bf16.mxu1 %v10018_v57  ;;  %v8702_v40 = vpack.c.bf16 %v2986_v36, %v2986_v36  ;;  %v1045_v36 = vmax.f32 %v1033_v41, 0.0 }
 0x286   : > { %v1650_v6 = vadd.f32 %v8466_v14, %v5924_v46  ;;  %v10036_v46 = vld [vmem:[#allocation17_spill] sm:$0xff] }
 0x287   : > { %6531 = vmatpush3.bf16.msra.mxu0 %v8713_v63  ;;  %6549 = vmatpush3.bf16.msra.mxu1 %v8719_v37  ;;  %v1808_v25 = vadd.f32 %v8466_v14, %v10036_v46 }
 0x288   : > { %1069 = vrot.lane.b32.xlu0 %v1046_v62, %s7578_s20  ;;  %2993 = vrot.lane.b32.xlu1 %v8702_v40, %s7578_s20  ;;  %v1489_v62 = vadd.f32 %v8466_v14, %v5884_v8  ;;  %v1660_v8 = vmax.f32 %v1650_v6, 0.0 }
 0x289   : > { %6550 = vmatprep.subr.bf16.mxu1 %v10018_v57  ;;  %6556 = vmatprep.subr.bf16.mxu0 %v10018_v57  ;;  %v1820_v43 = vmax.f32 %v1808_v25, 0.0  ;;  %v8952_v25 = vld [vmem:[%s9987_s3 + $0xb0] sm:$0xff]  }
 0x28a   : > { %6533 = vmatmul.mubr.bf16.vlgmr.msra.gmra.mxu0 %v8391_v29  ;;  %v1207_v29 = vmax.f32 %v1195_v31, 0.0  ;;  %v1499_v41 = vmax.f32 %v1489_v62, 0.0  ;;  %v1659_v31 = vmax.f32 %v1647_v52, 0.0 }
 0x28b   : > { %6551 = vmatpush3.bf16.msra.mxu1 %v8738_v60  ;;  %6557 = vmatpush3.bf16.msra.mxu0 %v8247_v21 }
 0x28c   : > { %1520 = vrot.lane.b32.xlu0 %v1498_v5, %s7575_s24  ;;  %1067 = vrot.lane.b32.xlu1 %v1045_v36, %s7578_s20  ;;  %v5964_v36 = vadd.f32 %v8536_v4, %v8523_v23 }
 0x28d   : > { %6558 = vmatprep.subr.bf16.mxu0 %v10018_v57  ;;  %6576 = vmatprep.subr.bf16.mxu1 %v10018_v57 }
 0x28e   : > { %6553 = vmatmul.mubr.bf16.vlgmr.msra.gmra.mxu1 %v8397_v55  ;;  %6572 = vmatprep.mubr.msk.bf16.mxu0 %vm7576_vm1, %v10018_v57  ;;  %v1208_v55 = vmax.f32 %v1198_v19, 0.0  ;;  %v1811_v3 = vadd.f32 %v8466_v14, %v5964_v36  ;;  %v8958_v36 = vld [vmem:[%s9987_s3 + $0xf8] sm:$0xff]  }
 0x28f   : > { %6559 = vmatpush3.bf16.msra.mxu0 %v8254_v11  ;;  %6577 = vmatpush3.bf16.msra.mxu1 %v8259_v51 }
 0x290   : > { %1522 = vrot.lane.b32.xlu0 %v1499_v41, %s7575_s24  ;;  %1229 = vrot.lane.b32.xlu1 %v1207_v29, %s7577_s17  ;;  %v1821_v23 = vmax.f32 %v1811_v3, 0.0 }
 0x291   : > { %6560 = vmatprep.subr.bf16.mxu0 %v10018_v57  ;;  %6578 = vmatprep.subr.bf16.mxu1 %v10018_v57 }
 0x292   : > { %6592 = vmatprep.mubr.msk.bf16.mxu1 %vm7576_vm1, %v10018_v57 }
 0x293   : > { %6561 = vmatpush3.bf16.msra.mxu0 %v8270_v56  ;;  %6579 = vmatpush3.bf16.msra.mxu1 %v8275_v20 }
 0x294   : > { %1231 = vrot.lane.b32.xlu1 %v1208_v55, %s7577_s17  ;;  %6562 = vmatprep.subr.bf16.mxu0 %v10018_v57 }
 0x295   : > { %6580 = vmatprep.subr.bf16.mxu1 %v10018_v57  ;;  %1683 = vrot.lane.b32.xlu0 %v1660_v8, %s7578_s20 }
 0x297   : > { %6563 = vmatpush3.bf16.msra.mxu0 %v8286_v22  ;;  %6581 = vmatpush3.bf16.msra.mxu1 %v8291_v48 }
 0x298   : > { %1681 = vrot.lane.b32.xlu1 %v1659_v31, %s7578_s20  ;;  %6564 = vmatprep.subr.bf16.mxu0 %v10018_v57 }
 0x299   : > { %6582 = vmatprep.subr.bf16.mxu1 %v10018_v57 }
 0x29b   : > { %6565 = vmatpush3.bf16.msra.mxu0 %v8300_v2  ;;  %6583 = vmatpush3.bf16.msra.mxu1 %v8305_v59 }
 0x29c   : > { %1842 = vrot.lane.b32.xlu1 %v1820_v43, %s7577_s17  ;;  %6566 = vmatprep.subr.bf16.mxu0 %v10018_v57 }
 0x29d   : > { %6584 = vmatprep.subr.bf16.mxu1 %v10018_v57 }
 0x29f   : > { %6585 = vmatpush3.bf16.msra.mxu1 %v8319_v54  ;;  %6567 = vmatpush3.bf16.msra.mxu0 %v8314_v24 }
 0x2a0   : > { %1844 = vrot.lane.b32.xlu1 %v1821_v23, %s7577_s17  ;;  %6568 = vmatprep.subr.bf16.mxu0 %v10018_v57 }
 0x2a1   : > { %6586 = vmatprep.subr.bf16.mxu1 %v10018_v57 }
 0x2a2   : > { %v2183_v14 = vpop.f32.mrf.mxu0 }
 0x2a3   : > { %v2189_v4 = vadd.f32 %v2183_v14, %v8543_v44  ;;  %6569 = vmatpush3.bf16.msra.mxu0 %v8329_v30  ;;  %6587 = vmatpush3.bf16.msra.mxu1 %v8334_v7 }
 0x2a4   : > { %v6414_v32 = vpop.f32.mrf.mxu0  ;;  %6570 = vmatprep.subr.bf16.mxu0 %v10018_v57  ;;  %6588 = vmatprep.subr.bf16.mxu1 %v10018_v57 }
 0x2a5   : > { %v8973_v32 = vld [vmem:[%s9987_s3 + $0xa8] sm:$0xff]  }
 0x2a6   : > { %v2186_v5 = vpop.f32.mrf.mxu0  ;;  %v2290_v62 = vpop.f32.mrf.mxu1 }
 0x2a7   : > { %v8792_v6 = vadd.f32 %v2290_v62, %v2189_v4  ;;  %6571 = vmatpush3.bf16.msra.mxu0 %v8344_v50  ;;  %6589 = vmatpush3.bf16.msra.mxu1 %v10022_v33  ;;  %v8979_v5 = vld [vmem:[%s9987_s3 + $0xf0] sm:$0xff]  }
 0x2a8   : > { %v6415_v29 = vpop.f32.mrf.mxu0  ;;  %v6434_v19 = vpop.f32.mrf.mxu1  ;;  %6590 = vmatprep.subr.bf16.mxu1 %v10018_v57  ;;  %6596 = vmatprep.subr.bf16.mxu0 %v10018_v57 }
 0x2a9   : > { %v8987_v19 = vld [vmem:[%s9987_s3 + $0xa0] sm:$0xff]  }
 0x2aa   : > { %6573 = vmatmul.mubr.bf16.vlgmr.msra.gmra.mxu0 %v8439_v18  ;;  %v2293_v44 = vpop.f32.mrf.mxu1 }
 0x2ab   : > { %6591 = vmatpush3.bf16.msra.mxu1 %v10023_v47  ;;  %6597 = vmatpush3.bf16.msra.mxu0 %v8576_v12  ;;  %v8993_v44 = vld [vmem:[%s9987_s3 + $0xe8] sm:$0xff]  }
 0x2ac   : > { %v6435_v41 = vpop.f32.mrf.mxu1  ;;  %6598 = vmatprep.subr.bf16.mxu0 %v10018_v57  ;;  %6616 = vmatprep.subr.bf16.mxu1 %v10018_v57 }
 0x2ad   : > { %6612 = vmatprep.mubr.msk.bf16.mxu0 %vm7576_vm1, %v10018_v57 }
 0x2ae   : > { %6593 = vmatmul.mubr.bf16.vlgmr.msra.gmra.mxu1 %v8454_v0 }
 0x2af   : > { %6599 = vmatpush3.bf16.msra.mxu0 %v8592_v16  ;;  %6617 = vmatpush3.bf16.msra.mxu1 %v8598_v27 }
 0x2b0   : > { %6600 = vmatprep.subr.bf16.mxu0 %v10018_v57  ;;  %6618 = vmatprep.subr.bf16.mxu1 %v10018_v57 }
 0x2b1   : > { %6632 = vmatprep.mubr.msk.bf16.mxu1 %vm7576_vm1, %v10018_v57 }
 0x2b3   : > { %6601 = vmatpush3.bf16.msra.mxu0 %v8610_v38  ;;  %6619 = vmatpush3.bf16.msra.mxu1 %v8616_v39 }
 0x2b4   : > { %6602 = vmatprep.subr.bf16.mxu0 %v10018_v57  ;;  %6620 = vmatprep.subr.bf16.mxu1 %v10018_v57 }
 0x2b7   : > { %6603 = vmatpush3.bf16.msra.mxu0 %v8627_v17  ;;  %6621 = vmatpush3.bf16.msra.mxu1 %v8633_v1 }
 0x2b8   : > { %6604 = vmatprep.subr.bf16.mxu0 %v10018_v57  ;;  %6622 = vmatprep.subr.bf16.mxu1 %v10018_v57 }
 0x2bb   : > { %6605 = vmatpush3.bf16.msra.mxu0 %v8650_v26  ;;  %6623 = vmatpush3.bf16.msra.mxu1 %v8656_v53 }
 0x2bc   : > { %6606 = vmatprep.subr.bf16.mxu0 %v10018_v57  ;;  %6624 = vmatprep.subr.bf16.mxu1 %v10018_v57 }
 0x2bf   : > { %6607 = vmatpush3.bf16.msra.mxu0 %v8670_v42  ;;  %6625 = vmatpush3.bf16.msra.mxu1 %v8676_v13 }
 0x2c0   : > { %6608 = vmatprep.subr.bf16.mxu0 %v10018_v57  ;;  %6626 = vmatprep.subr.bf16.mxu1 %v10018_v57 }
 0x2c3   : > { %6609 = vmatpush3.bf16.msra.mxu0 %v8688_v58  ;;  %6627 = vmatpush3.bf16.msra.mxu1 %v8694_v35 }
 0x2c4   : > { %6610 = vmatprep.subr.bf16.mxu0 %v10018_v57  ;;  %6628 = vmatprep.subr.bf16.mxu1 %v10018_v57 }
 0x2c7   : > { %6611 = vmatpush3.bf16.msra.mxu0 %v8713_v63  ;;  %6629 = vmatpush3.bf16.msra.mxu1 %v8719_v37 }
 0x2c8   : > { %6630 = vmatprep.subr.bf16.mxu1 %v10018_v57  ;;  %6636 = vmatprep.subr.bf16.mxu0 %v10018_v57 }
 0x2ca   : > { %6613 = vmatmul.mubr.bf16.vlgmr.msra.gmra.mxu0 %v8405_v9 }
 0x2cb   : > { %6631 = vmatpush3.bf16.msra.mxu1 %v8738_v60  ;;  %6637 = vmatpush3.bf16.msra.mxu0 %v8247_v21 }
 0x2cc   : > { %6638 = vmatprep.subr.bf16.mxu0 %v10018_v57  ;;  %6656 = vmatprep.subr.bf16.mxu1 %v10018_v57 }
 0x2cd   : > { %6652 = vmatprep.mubr.msk.bf16.mxu0 %vm7576_vm1, %v10018_v57 }
 0x2ce   : > { %6633 = vmatmul.mubr.bf16.vlgmr.msra.gmra.mxu1 %v8419_v45 }
 0x2cf   : > { %6639 = vmatpush3.bf16.msra.mxu0 %v8254_v11  ;;  %6657 = vmatpush3.bf16.msra.mxu1 %v8259_v51 }
 0x2d0   : > { %6640 = vmatprep.subr.bf16.mxu0 %v10018_v57  ;;  %6658 = vmatprep.subr.bf16.mxu1 %v10018_v57 }
 0x2d1   : > { %6672 = vmatprep.mubr.msk.bf16.mxu1 %vm7576_vm1, %v10018_v57 }
 0x2d3   : > { %6641 = vmatpush3.bf16.msra.mxu0 %v8270_v56  ;;  %6659 = vmatpush3.bf16.msra.mxu1 %v8275_v20 }
 0x2d4   : > { %6642 = vmatprep.subr.bf16.mxu0 %v10018_v57  ;;  %6660 = vmatprep.subr.bf16.mxu1 %v10018_v57 }
 0x2d7   : > { %6643 = vmatpush3.bf16.msra.mxu0 %v8286_v22  ;;  %6661 = vmatpush3.bf16.msra.mxu1 %v8291_v48 }
 0x2d8   : > { %6644 = vmatprep.subr.bf16.mxu0 %v10018_v57  ;;  %6662 = vmatprep.subr.bf16.mxu1 %v10018_v57 }
 0x2db   : > { %6645 = vmatpush3.bf16.msra.mxu0 %v8300_v2  ;;  %6663 = vmatpush3.bf16.msra.mxu1 %v8305_v59 }
 0x2dc   : > { %6646 = vmatprep.subr.bf16.mxu0 %v10018_v57  ;;  %6664 = vmatprep.subr.bf16.mxu1 %v10018_v57 }
 0x2df   : > { %6647 = vmatpush3.bf16.msra.mxu0 %v8314_v24  ;;  %6665 = vmatpush3.bf16.msra.mxu1 %v8319_v54 }
 0x2e0   : > { %6648 = vmatprep.subr.bf16.mxu0 %v10018_v57  ;;  %6666 = vmatprep.subr.bf16.mxu1 %v10018_v57 }
 0x2e3   : > { %6649 = vmatpush3.bf16.msra.mxu0 %v8329_v30  ;;  %6667 = vmatpush3.bf16.msra.mxu1 %v8334_v7 }
 0x2e4   : > { %6650 = vmatprep.subr.bf16.mxu0 %v10018_v57  ;;  %6668 = vmatprep.subr.bf16.mxu1 %v10018_v57 }
 0x2e7   : > { %6651 = vmatpush3.bf16.msra.mxu0 %v8344_v50  ;;  %6669 = vmatpush3.bf16.msra.mxu1 %v10022_v33  ;;  %v8935_v33 = vld [vmem:[%s9987_s3 + $0xb8] sm:$0xff]  }
 0x2e8   : > { %6670 = vmatprep.subr.bf16.mxu1 %v10018_v57  ;;  %6676 = vmatprep.subr.bf16.mxu0 %v10018_v57 }
 0x2ea   : > { %v8874_v21 = vpop.permute.xlu0 %2938  ;;  %6653 = vmatmul.mubr.bf16.vlgmr.msra.gmra.mxu0 %v8622_v15 }
 0x2eb   : > { %6671 = vmatpush3.bf16.msra.mxu1 %v10023_v47  ;;  %6677 = vmatpush3.bf16.msra.mxu0 %v8576_v12 }
 0x2ec   : > { %6696 = vmatprep.subr.bf16.mxu1 %v10018_v57  ;;  %6678 = vmatprep.subr.bf16.mxu0 %v10018_v57 }
 0x2ed   : > { %6692 = vmatprep.mubr.msk.bf16.mxu0 %vm7576_vm1, %v10018_v57 }
 0x2ee   : > { %6673 = vmatmul.mubr.bf16.vlgmr.msra.gmra.mxu1 %v8641_v34  ;;  %v8884_v11 = vpop.permute.xlu0 %2991 }
 0x2ef   : > { %6679 = vmatpush3.bf16.msra.mxu0 %v8592_v16  ;;  %6697 = vmatpush3.bf16.msra.mxu1 %v8598_v27 }
 0x2f0   : > { %6698 = vmatprep.subr.bf16.mxu1 %v10018_v57  ;;  %6680 = vmatprep.subr.bf16.mxu0 %v10018_v57 }
 0x2f1   : > { %6712 = vmatprep.mubr.msk.bf16.mxu1 %vm7576_vm1, %v10018_v57 }
 0x2f2   : > { %v906_v51 = vpop.permute.xlu0 %905 }
 0x2f3   : > { %924 = vst.msk [vmem:[#allocation2 + $0x60] sm:$0xff] %vm917_vm2, %v906_v51  ;;  %6681 = vmatpush3.bf16.msra.mxu0 %v8610_v38  ;;  %6699 = vmatpush3.bf16.msra.mxu1 %v8616_v39 }
 0x2f4   : > { %6700 = vmatprep.subr.bf16.mxu1 %v10018_v57  ;;  %6682 = vmatprep.subr.bf16.mxu0 %v10018_v57 }
 0x2f6   : > { %v8897_v56 = vpop.permute.xlu1 %2940  ;;  %v908_v20 = vpop.permute.xlu0 %907 }
 0x2f7   : > { %925 = vst.msk [vmem:[#allocation2 + $0x70] sm:$0xff] %vm917_vm2, %v908_v20  ;;  %6683 = vmatpush3.bf16.msra.mxu0 %v8627_v17  ;;  %6701 = vmatpush3.bf16.msra.mxu1 %v8633_v1  ;;  %v9005_v20 = vld [vmem:[%s9987_s3 + $0x98] sm:$0xff]  }
 0x2f8   : > { %6702 = vmatprep.subr.bf16.mxu1 %v10018_v57  ;;  %6684 = vmatprep.subr.bf16.mxu0 %v10018_v57 }
 0x2fa   : > { %v8904_v22 = vpop.permute.xlu1 %2993  ;;  %v1070_v48 = vpop.permute.xlu0 %1069 }
 0x2fb   : > { %1087 = vst.msk [vmem:[#allocation2 + $0x70] sm:$0xff] %vm1079_vm3, %v1070_v48  ;;  %6685 = vmatpush3.bf16.msra.mxu0 %v8650_v26  ;;  %6703 = vmatpush3.bf16.msra.mxu1 %v8656_v53  ;;  %v9011_v48 = vld [vmem:[%s9987_s3 + $0xe0] sm:$0xff]  }
 0x2fc   : > { %6704 = vmatprep.subr.bf16.mxu1 %v10018_v57  ;;  %6686 = vmatprep.subr.bf16.mxu0 %v10018_v57 }
 0x2fe   : > { %v1068_v2 = vpop.permute.xlu1 %1067  ;;  %v1521_v59 = vpop.permute.xlu0 %1520 }
 0x2ff   : > { %1086 = vst.msk [vmem:[#allocation2 + $0x60] sm:$0xff] %vm1079_vm3, %v1068_v2  ;;  %6687 = vmatpush3.bf16.msra.mxu0 %v8670_v42  ;;  %6705 = vmatpush3.bf16.msra.mxu1 %v8676_v13 }
 0x300   : > { %1538 = vst.msk [vmem:[#allocation2 + $0x68] sm:$0xff] %vm917_vm2, %v1521_v59  ;;  %6706 = vmatprep.subr.bf16.mxu1 %v10018_v57  ;;  %6688 = vmatprep.subr.bf16.mxu0 %v10018_v57  ;;  %v9023_v59 = vld [vmem:[%s9987_s3 + $0x90] sm:$0xff]  }
 0x302   : > { %v1230_v24 = vpop.permute.xlu1 %1229  ;;  %v1523_v54 = vpop.permute.xlu0 %1522 }
 0x303   : > { %1248 = vst.msk [vmem:[#allocation2 + $0x60] sm:$0xff] %vm1241_vm4, %v1230_v24  ;;  %6689 = vmatpush3.bf16.msra.mxu0 %v8688_v58  ;;  %6707 = vmatpush3.bf16.msra.mxu1 %v8694_v35  ;;  %v9029_v24 = vld [vmem:[%s9987_s3 + $0xd8] sm:$0xff]  }
 0x304   : > { %1539 = vst.msk [vmem:[#allocation2 + $0x78] sm:$0xff] %vm917_vm2, %v1523_v54  ;;  %6708 = vmatprep.subr.bf16.mxu1 %v10018_v57  ;;  %6690 = vmatprep.subr.bf16.mxu0 %v10018_v57  ;;  %v9037_v54 = vld [vmem:[%s9987_s3 + $0x88] sm:$0xff]  }
 0x306   : > { %v1232_v30 = vpop.permute.xlu1 %1231 }
 0x307   : > { %1249 = vst.msk [vmem:[#allocation2 + $0x70] sm:$0xff] %vm1241_vm4, %v1232_v30  ;;  %6691 = vmatpush3.bf16.msra.mxu0 %v8713_v63  ;;  %6709 = vmatpush3.bf16.msra.mxu1 %v8719_v37  ;;  %v1684_v7 = vpop.permute.xlu0 %1683  ;;  %v9043_v30 = vld [vmem:[%s9987_s3 + $0xd0] sm:$0xff]  }
 0x308   : > { %6710 = vmatprep.subr.bf16.mxu1 %v10018_v57  ;;  %6716 = vmatprep.subr.bf16.mxu0 %v10018_v57  ;;  %1700 = vst.msk [vmem:[#allocation2 + $0x78] sm:$0xff] %vm1079_vm3, %v1684_v7  ;;  %v9051_v7 = vld [vmem:[%s9987_s3 + $0x80] sm:$0xff]  }
 0x30a   : > { %v1682_v50 = vpop.permute.xlu1 %1681  ;;  %6693 = vmatmul.mubr.bf16.vlgmr.msra.gmra.mxu0 %v8567_v49  ;;  %v2346_v9 = vpop.f32.mrf.mxu0  ;;  %v3458_v45 = vld [vmem:[#allocation2 + $0x60] sm:$0xff] }
 0x30b   : > { %1699 = vst.msk [vmem:[#allocation2 + $0x68] sm:$0xff] %vm1079_vm3, %v1682_v50  ;;  %6711 = vmatpush3.bf16.msra.mxu1 %v8738_v60  ;;  %6717 = vmatpush3.bf16.msra.mxu0 %v8935_v33  ;;  %v8938_v47 = vpack.c.bf16 %v3458_v45, %v3458_v45  ;;  %v2352_v49 = vadd.f32 %v8530_v61, %v2346_v9  ;;  %v9057_v50 = vld [vmem:[%s9987_s3 + $0xc8] sm:$0xff]  }
 0x30c   : > { %v6454_v52 = vpop.f32.mrf.mxu0  ;;  %6736 = vmatprep.subr.bf16.mxu1 %v10018_v57  ;;  %6718 = vmatprep.subr.bf16.mxu0 %v10018_v57  ;;  %v9065_v9 = vsel %vm2309_vm5, %v8874_v21, %v8897_v56  ;;  %v9080_v21 = vsel %vm2309_vm5, %v8884_v11, %v8904_v22 }
 0x30d   : > { %3464 = vrot.lane.b32.xlu0 %v8938_v47, %s7578_s20  ;;  %6732 = vmatprep.mubr.msk.bf16.mxu0 %vm7576_vm1, %v10018_v57 }
 0x30e   : > { %6713 = vmatmul.mubr.bf16.vlgmr.msra.gmra.mxu1 %v8582_v10  ;;  %v1843_v8 = vpop.permute.xlu1 %1842  ;;  %v2349_v55 = vpop.f32.mrf.mxu0  ;;  %v3511_v31 = vld [vmem:[#allocation2 + $0x70] sm:$0xff] }
 0x30f   : > { %1860 = vst.msk [vmem:[#allocation2 + $0x68] sm:$0xff] %vm1241_vm4, %v1843_v8  ;;  %v2399_v46 = vpop.f32.mrf.mxu1  ;;  %6719 = vmatpush3.bf16.msra.mxu0 %v8952_v25  ;;  %6737 = vmatpush3.bf16.msra.mxu1 %v8958_v36  ;;  %v8961_v10 = vpack.c.bf16 %v3511_v31, %v3511_v31 }
 0x310   : > { %v2405_v43 = vadd.f32 %v2399_v46, %v2352_v49  ;;  %v6455_v3 = vpop.f32.mrf.mxu0  ;;  %6738 = vmatprep.subr.bf16.mxu1 %v10018_v57  ;;  %6720 = vmatprep.subr.bf16.mxu0 %v10018_v57  ;;  %v9071_v49 = vld [vmem:[%s9987_s3 + $0xc0] sm:$0xff]  }
 0x311   : > { %v6474_v23 = vpop.f32.mrf.mxu1  ;;  %3517 = vrot.lane.b32.xlu0 %v8961_v10, %s7578_s20  ;;  %6752 = vmatprep.mubr.msk.bf16.mxu1 %vm7576_vm1, %v10018_v57 }
 0x312   : > { %v1845_v14 = vpop.permute.xlu1 %1844 }
 0x313   : > { %1861 = vst.msk [vmem:[#allocation2 + $0x78] sm:$0xff] %vm1241_vm4, %v1845_v14  ;;  %v2402_v4 = vpop.f32.mrf.mxu1  ;;  %6721 = vmatpush3.bf16.msra.mxu0 %v8973_v32  ;;  %6739 = vmatpush3.bf16.msra.mxu1 %v8979_v5 }
 0x314   : > { %6722 = vmatprep.subr.bf16.mxu0 %v10018_v57  ;;  %6740 = vmatprep.subr.bf16.mxu1 %v10018_v57 }
 0x315   : > { %v6475_v62 = vpop.f32.mrf.mxu1 }
 0x316   : > { %v3459_v29 = vld [vmem:[#allocation2 + $0x68] sm:$0xff] }
 0x317   : > { %6723 = vmatpush3.bf16.msra.mxu0 %v8987_v19  ;;  %6741 = vmatpush3.bf16.msra.mxu1 %v8993_v44  ;;  %v8996_v41 = vpack.c.bf16 %v3459_v29, %v3459_v29 }
 0x318   : > { %6724 = vmatprep.subr.bf16.mxu0 %v10018_v57  ;;  %6742 = vmatprep.subr.bf16.mxu1 %v10018_v57 }
 0x319   : > { %3466 = vrot.lane.b32.xlu1 %v8996_v41, %s7578_s20 }
 0x31a   : > { %v3512_v51 = vld [vmem:[#allocation2 + $0x78] sm:$0xff] }
 0x31b   : > { %6725 = vmatpush3.bf16.msra.mxu0 %v9005_v20  ;;  %6743 = vmatpush3.bf16.msra.mxu1 %v9011_v48  ;;  %v9014_v2 = vpack.c.bf16 %v3512_v51, %v3512_v51 }
 0x31c   : > { %6726 = vmatprep.subr.bf16.mxu0 %v10018_v57  ;;  %6744 = vmatprep.subr.bf16.mxu1 %v10018_v57 }
 0x31d   : > { %3519 = vrot.lane.b32.xlu1 %v9014_v2, %s7578_s20 }
 0x31f   : > { %6727 = vmatpush3.bf16.msra.mxu0 %v9023_v59  ;;  %6745 = vmatpush3.bf16.msra.mxu1 %v9029_v24 }
 0x320   : > { %6728 = vmatprep.subr.bf16.mxu0 %v10018_v57  ;;  %6746 = vmatprep.subr.bf16.mxu1 %v10018_v57 }
 0x323   : > { %6729 = vmatpush3.bf16.msra.mxu0 %v9037_v54  ;;  %6747 = vmatpush3.bf16.msra.mxu1 %v9043_v30 }
 0x324   : > { %6730 = vmatprep.subr.bf16.mxu0 %v10018_v57  ;;  %6748 = vmatprep.subr.bf16.mxu1 %v10018_v57 }
 0x327   : > { %6731 = vmatpush3.bf16.msra.mxu0 %v9051_v7  ;;  %6749 = vmatpush3.bf16.msra.mxu1 %v9057_v50 }
 0x328   : > { %6750 = vmatprep.subr.bf16.mxu1 %v10018_v57  ;;  %6756 = vmatprep.subr.bf16.mxu0 %v10018_v57 }
 0x32a   : > { %v2452_v45 = vpop.f32.mrf.mxu0  ;;  %6733 = vmatmul.mubr.bf16.vlgmr.msra.gmra.mxu0 %v9065_v9 }
 0x32b   : > { %v2458_v52 = vadd.f32 %v2452_v45, %v2405_v43  ;;  %6751 = vmatpush3.bf16.msra.mxu1 %v9071_v49  ;;  %6757 = vmatpush3.bf16.msra.mxu0 %v8576_v12 }
 0x32c   : > { %v6494_v8 = vpop.f32.mrf.mxu0  ;;  %6758 = vmatprep.subr.bf16.mxu0 %v10018_v57  ;;  %6776 = vmatprep.subr.bf16.mxu1 %v10018_v57 }
 0x32d   : > { %6772 = vmatprep.mubr.msk.bf16.mxu0 %vm7576_vm1, %v10018_v57 }
 0x32e   : > { %v2455_v56 = vpop.f32.mrf.mxu0  ;;  %v2505_v55 = vpop.f32.mrf.mxu1  ;;  %6753 = vmatmul.mubr.bf16.vlgmr.msra.gmra.mxu1 %v9080_v21 }
 0x32f   : > { %v9085_v31 = vadd.f32 %v2505_v55, %v2458_v52  ;;  %6759 = vmatpush3.bf16.msra.mxu0 %v8592_v16  ;;  %6777 = vmatpush3.bf16.msra.mxu1 %v8598_v27 }
 0x330   : > { %v6495_v46 = vpop.f32.mrf.mxu0  ;;  %v6514_v43 = vpop.f32.mrf.mxu1  ;;  %6760 = vmatprep.subr.bf16.mxu0 %v10018_v57  ;;  %6778 = vmatprep.subr.bf16.mxu1 %v10018_v57 }
 0x331   : > { %6792 = vmatprep.mubr.msk.bf16.mxu1 %vm7576_vm1, %v10018_v57 }
 0x332   : > { %v2508_v11 = vpop.f32.mrf.mxu1 }
 0x333   : > { %6761 = vmatpush3.bf16.msra.mxu0 %v8610_v38  ;;  %6779 = vmatpush3.bf16.msra.mxu1 %v8616_v39 }
 0x334   : > { %v6515_v22 = vpop.f32.mrf.mxu1  ;;  %6762 = vmatprep.subr.bf16.mxu0 %v10018_v57  ;;  %6780 = vmatprep.subr.bf16.mxu1 %v10018_v57 }
 0x337   : > { %6763 = vmatpush3.bf16.msra.mxu0 %v8627_v17  ;;  %6781 = vmatpush3.bf16.msra.mxu1 %v8633_v1 }
 0x338   : > { %6764 = vmatprep.subr.bf16.mxu0 %v10018_v57  ;;  %6782 = vmatprep.subr.bf16.mxu1 %v10018_v57 }
 0x33b   : > { %6765 = vmatpush3.bf16.msra.mxu0 %v8650_v26  ;;  %6783 = vmatpush3.bf16.msra.mxu1 %v8656_v53 }
 0x33c   : > { %6766 = vmatprep.subr.bf16.mxu0 %v10018_v57  ;;  %6784 = vmatprep.subr.bf16.mxu1 %v10018_v57 }
 0x33f   : > { %6767 = vmatpush3.bf16.msra.mxu0 %v8670_v42  ;;  %6785 = vmatpush3.bf16.msra.mxu1 %v8676_v13 }
 0x340   : > { %6768 = vmatprep.subr.bf16.mxu0 %v10018_v57  ;;  %6786 = vmatprep.subr.bf16.mxu1 %v10018_v57 }
 0x343   : > { %6769 = vmatpush3.bf16.msra.mxu0 %v8688_v58  ;;  %6787 = vmatpush3.bf16.msra.mxu1 %v8694_v35 }
 0x344   : > { %6770 = vmatprep.subr.bf16.mxu0 %v10018_v57  ;;  %6788 = vmatprep.subr.bf16.mxu1 %v10018_v57 }
 0x347   : > { %6771 = vmatpush3.bf16.msra.mxu0 %v8713_v63  ;;  %6789 = vmatpush3.bf16.msra.mxu1 %v8719_v37 }
 0x348   : > { %6790 = vmatprep.subr.bf16.mxu1 %v10018_v57  ;;  %6796 = vmatprep.subr.bf16.mxu0 %v10018_v57 }
 0x34a   : > { %v2548_v3 = vpop.f32.mrf.mxu0  ;;  %6773 = vmatmul.mubr.bf16.vlgmr.msra.gmra.mxu0 %v8439_v18 }
 0x34b   : > { %6791 = vmatpush3.bf16.msra.mxu1 %v8738_v60  ;;  %6797 = vmatpush3.bf16.msra.mxu0 %v8935_v33  ;;  %v2554_v14 = vadd.f32 %v8530_v61, %v2548_v3 }
 0x34c   : > { %v6534_v23 = vpop.f32.mrf.mxu0  ;;  %6798 = vmatprep.subr.bf16.mxu0 %v10018_v57  ;;  %6816 = vmatprep.subr.bf16.mxu1 %v10018_v57 }
 0x34d   : > { %6812 = vmatprep.mubr.msk.bf16.mxu0 %vm7576_vm1, %v10018_v57  ;;  %v9245_v23 = vld [vmem:[%s9987_s3 + $0x38] sm:$0xff]  }
 0x34e   : > { %v2551_v4 = vpop.f32.mrf.mxu0  ;;  %v2589_v62 = vpop.f32.mrf.mxu1  ;;  %6793 = vmatmul.mubr.bf16.vlgmr.msra.gmra.mxu1 %v8454_v0 }
 0x34f   : > { %v2595_v29 = vadd.f32 %v2589_v62, %v2554_v14  ;;  %6799 = vmatpush3.bf16.msra.mxu0 %v8952_v25  ;;  %6817 = vmatpush3.bf16.msra.mxu1 %v8958_v36 }
 0x350   : > { %v6535_v18 = vpop.f32.mrf.mxu0  ;;  %v6554_v51 = vpop.f32.mrf.mxu1  ;;  %6800 = vmatprep.subr.bf16.mxu0 %v10018_v57  ;;  %6818 = vmatprep.subr.bf16.mxu1 %v10018_v57 }
 0x351   : > { %6832 = vmatprep.mubr.msk.bf16.mxu1 %vm7576_vm1, %v10018_v57  ;;  %v9264_v18 = vld [vmem:[%s9987_s3 + $0x78] sm:$0xff]  }
 0x352   : > { %v2592_v61 = vpop.f32.mrf.mxu1 }
 0x353   : > { %6801 = vmatpush3.bf16.msra.mxu0 %v8973_v32  ;;  %6819 = vmatpush3.bf16.msra.mxu1 %v8979_v5 }
 0x354   : > { %v6555_v0 = vpop.f32.mrf.mxu1  ;;  %6802 = vmatprep.subr.bf16.mxu0 %v10018_v57  ;;  %6820 = vmatprep.subr.bf16.mxu1 %v10018_v57 }
 0x355   : > { %v9274_v0 = vld [vmem:[%s9987_s3 + $0x28] sm:$0xff]  }
 0x357   : > { %6803 = vmatpush3.bf16.msra.mxu0 %v8987_v19  ;;  %6821 = vmatpush3.bf16.msra.mxu1 %v8993_v44 }
 0x358   : > { %6804 = vmatprep.subr.bf16.mxu0 %v10018_v57  ;;  %6822 = vmatprep.subr.bf16.mxu1 %v10018_v57 }
 0x35b   : > { %6805 = vmatpush3.bf16.msra.mxu0 %v9005_v20  ;;  %6823 = vmatpush3.bf16.msra.mxu1 %v9011_v48 }
 0x35c   : > { %6806 = vmatprep.subr.bf16.mxu0 %v10018_v57  ;;  %6824 = vmatprep.subr.bf16.mxu1 %v10018_v57 }
 0x35f   : > { %6807 = vmatpush3.bf16.msra.mxu0 %v9023_v59  ;;  %6825 = vmatpush3.bf16.msra.mxu1 %v9029_v24 }
 0x360   : > { %6808 = vmatprep.subr.bf16.mxu0 %v10018_v57  ;;  %6826 = vmatprep.subr.bf16.mxu1 %v10018_v57 }
 0x363   : > { %6809 = vmatpush3.bf16.msra.mxu0 %v9037_v54  ;;  %6827 = vmatpush3.bf16.msra.mxu1 %v9043_v30 }
 0x364   : > { %6810 = vmatprep.subr.bf16.mxu0 %v10018_v57  ;;  %6828 = vmatprep.subr.bf16.mxu1 %v10018_v57 }
 0x367   : > { %6811 = vmatpush3.bf16.msra.mxu0 %v9051_v7  ;;  %6829 = vmatpush3.bf16.msra.mxu1 %v9057_v50 }
 0x368   : > { %6830 = vmatprep.subr.bf16.mxu1 %v10018_v57  ;;  %6836 = vmatprep.subr.bf16.mxu0 %v10018_v57 }
 0x36a   : > { %v2630_v45 = vpop.f32.mrf.mxu0  ;;  %6813 = vmatmul.mubr.bf16.vlgmr.msra.gmra.mxu0 %v8682_v28 }
 0x36b   : > { %v2636_v52 = vadd.f32 %v2630_v45, %v2595_v29  ;;  %6831 = vmatpush3.bf16.msra.mxu1 %v9071_v49  ;;  %6837 = vmatpush3.bf16.msra.mxu0 %v8576_v12  ;;  %v9258_v29 = vld [vmem:[%s9987_s3 + $0x30] sm:$0xff]  }
 0x36c   : > { %v6574_v8 = vpop.f32.mrf.mxu0  ;;  %6838 = vmatprep.subr.bf16.mxu0 %v10018_v57  ;;  %6856 = vmatprep.subr.bf16.mxu1 %v10018_v57  ;;  %v9280_v45 = vld [vmem:[%s9987_s3 + $0x70] sm:$0xff]  }
 0x36d   : > { %6852 = vmatprep.mubr.msk.bf16.mxu0 %vm7576_vm1, %v10018_v57  ;;  %v9288_v8 = vld [vmem:[%s9987_s3 + $0x20] sm:$0xff]  }
 0x36e   : > { %v2633_v56 = vpop.f32.mrf.mxu0  ;;  %v2671_v55 = vpop.f32.mrf.mxu1  ;;  %6833 = vmatmul.mubr.bf16.vlgmr.msra.gmra.mxu1 %v8702_v40 }
 0x36f   : > { %v9164_v46 = vadd.f32 %v2671_v55, %v2636_v52  ;;  %6839 = vmatpush3.bf16.msra.mxu0 %v8592_v16  ;;  %6857 = vmatpush3.bf16.msra.mxu1 %v8598_v27  ;;  %v9294_v56 = vld [vmem:[%s9987_s3 + $0x68] sm:$0xff]   ;;  %v9302_v55 = vld [vmem:[%s9987_s3 + $0x18] sm:$0xff]  }
 0x370   : > { %v6575_v43 = vpop.f32.mrf.mxu0  ;;  %v6594_v12 = vpop.f32.mrf.mxu1  ;;  %6840 = vmatprep.subr.bf16.mxu0 %v10018_v57  ;;  %6858 = vmatprep.subr.bf16.mxu1 %v10018_v57 }
 0x371   : > { %6872 = vmatprep.mubr.msk.bf16.mxu1 %vm7576_vm1, %v10018_v57  ;;  %v9308_v43 = vld [vmem:[%s9987_s3 + $0x60] sm:$0xff]   ;;  %v9316_v12 = vld [vmem:[%s9987_s3 + $0x10] sm:$0xff]  }
 0x372   : > { %v2674_v11 = vpop.f32.mrf.mxu1 }
 0x373   : > { %6841 = vmatpush3.bf16.msra.mxu0 %v8610_v38  ;;  %6859 = vmatpush3.bf16.msra.mxu1 %v8616_v39  ;;  %v9204_v38 = vld [vmem:[%s9988_s4] ss:$0 sm:$0xff]  ;;  %v9322_v11 = vld [vmem:[%s9987_s3 + $0x58] sm:$0xff]  }
 0x374   : > { %v6595_v22 = vpop.f32.mrf.mxu1  ;;  %6842 = vmatprep.subr.bf16.mxu0 %v10018_v57  ;;  %6860 = vmatprep.subr.bf16.mxu1 %v10018_v57 }
 0x377   : > { %6843 = vmatpush3.bf16.msra.mxu0 %v8627_v17  ;;  %6861 = vmatpush3.bf16.msra.mxu1 %v8633_v1 }
 0x378   : > { %6844 = vmatprep.subr.bf16.mxu0 %v10018_v57  ;;  %6862 = vmatprep.subr.bf16.mxu1 %v10018_v57 }
 0x37b   : > { %6845 = vmatpush3.bf16.msra.mxu0 %v8650_v26  ;;  %6863 = vmatpush3.bf16.msra.mxu1 %v8656_v53 }
 0x37c   : > { %6846 = vmatprep.subr.bf16.mxu0 %v10018_v57  ;;  %6864 = vmatprep.subr.bf16.mxu1 %v10018_v57 }
 0x37f   : > { %6865 = vmatpush3.bf16.msra.mxu1 %v8676_v13  ;;  %6847 = vmatpush3.bf16.msra.mxu0 %v8670_v42 }
 0x380   : > { %6848 = vmatprep.subr.bf16.mxu0 %v10018_v57  ;;  %6866 = vmatprep.subr.bf16.mxu1 %v10018_v57 }
 0x383   : > { %6867 = vmatpush3.bf16.msra.mxu1 %v8694_v35  ;;  %6849 = vmatpush3.bf16.msra.mxu0 %v8688_v58 }
 0x384   : > { %6850 = vmatprep.subr.bf16.mxu0 %v10018_v57  ;;  %6868 = vmatprep.subr.bf16.mxu1 %v10018_v57 }
 0x387   : > { %6851 = vmatpush3.bf16.msra.mxu0 %v8713_v63  ;;  %6869 = vmatpush3.bf16.msra.mxu1 %v8719_v37 }
 0x388   : > { %6870 = vmatprep.subr.bf16.mxu1 %v10018_v57  ;;  %6876 = vmatprep.subr.bf16.mxu0 %v10018_v57 }
 0x38a   : > { %v2714_v16 = vpop.f32.mrf.mxu0  ;;  %6853 = vmatmul.mubr.bf16.vlgmr.msra.gmra.mxu0 %v8622_v15 }
 0x38b   : > { %6871 = vmatpush3.bf16.msra.mxu1 %v8738_v60  ;;  %6877 = vmatpush3.bf16.msra.mxu0 %v8935_v33  ;;  %v2720_v39 = vadd.f32 %v9204_v38, %v2714_v16 }
 0x38c   : > { %v6614_v27 = vpop.f32.mrf.mxu0  ;;  %6878 = vmatprep.subr.bf16.mxu0 %v10018_v57  ;;  %6896 = vmatprep.subr.bf16.mxu1 %v10018_v57 }
 0x38d   : > { %6892 = vmatprep.mubr.msk.bf16.mxu0 %vm7576_vm1, %v10018_v57 }
 0x38e   : > { %v2717_v15 = vpop.f32.mrf.mxu0  ;;  %v2755_v17 = vpop.f32.mrf.mxu1  ;;  %6873 = vmatmul.mubr.bf16.vlgmr.msra.gmra.mxu1 %v8641_v34 }
 0x38f   : > { %v2761_v1 = vadd.f32 %v2755_v17, %v2720_v39  ;;  %6897 = vmatpush3.bf16.msra.mxu1 %v8958_v36  ;;  %6879 = vmatpush3.bf16.msra.mxu0 %v8952_v25  ;;  %v3467_v39 = vpop.permute.xlu1 %3466  ;;  %v3465_v15 = vpop.permute.xlu0 %3464 }
 0x390   : > { %v6615_v26 = vpop.f32.mrf.mxu0  ;;  %v6634_v53 = vpop.f32.mrf.mxu1  ;;  %6880 = vmatprep.subr.bf16.mxu0 %v10018_v57  ;;  %6898 = vmatprep.subr.bf16.mxu1 %v10018_v57  ;;  %v3468_v17 = vsel %vm2309_vm5, %v3465_v15, %v3467_v39  ;;  %v7358_v39 = vld [vmem:[%s9989_s5 + $0x98] sm:$0xff]  }
 0x391   : > { %6912 = vmatprep.mubr.msk.bf16.mxu1 %vm7576_vm1, %v10018_v57 }
 0x392   : > { %v2758_v42 = vpop.f32.mrf.mxu1 }
 0x393   : > { %6881 = vmatpush3.bf16.msra.mxu0 %v8973_v32  ;;  %6899 = vmatpush3.bf16.msra.mxu1 %v8979_v5  ;;  %v3518_v42 = vpop.permute.xlu0 %3517 }
 0x394   : > { %v6635_v34 = vpop.f32.mrf.mxu1  ;;  %6882 = vmatprep.subr.bf16.mxu0 %v10018_v57  ;;  %6900 = vmatprep.subr.bf16.mxu1 %v10018_v57 }
 0x397   : > { %6883 = vmatpush3.bf16.msra.mxu0 %v8987_v19  ;;  %6901 = vmatpush3.bf16.msra.mxu1 %v8993_v44 }
 0x398   : > { %6884 = vmatprep.subr.bf16.mxu0 %v10018_v57  ;;  %6902 = vmatprep.subr.bf16.mxu1 %v10018_v57 }
 0x39b   : > { %6885 = vmatpush3.bf16.msra.mxu0 %v9005_v20  ;;  %6903 = vmatpush3.bf16.msra.mxu1 %v9011_v48 }
 0x39c   : > { %6886 = vmatprep.subr.bf16.mxu0 %v10018_v57  ;;  %6904 = vmatprep.subr.bf16.mxu1 %v10018_v57 }
 0x39f   : > { %6887 = vmatpush3.bf16.msra.mxu0 %v9023_v59  ;;  %6905 = vmatpush3.bf16.msra.mxu1 %v9029_v24 }
 0x3a0   : > { %6888 = vmatprep.subr.bf16.mxu0 %v10018_v57  ;;  %6906 = vmatprep.subr.bf16.mxu1 %v10018_v57 }
 0x3a3   : > { %6889 = vmatpush3.bf16.msra.mxu0 %v9037_v54  ;;  %6907 = vmatpush3.bf16.msra.mxu1 %v9043_v30 }
 0x3a4   : > { %6890 = vmatprep.subr.bf16.mxu0 %v10018_v57  ;;  %6908 = vmatprep.subr.bf16.mxu1 %v10018_v57 }
 0x3a7   : > { %6891 = vmatpush3.bf16.msra.mxu0 %v9051_v7  ;;  %6909 = vmatpush3.bf16.msra.mxu1 %v9057_v50 }
 0x3a8   : > { %6910 = vmatprep.subr.bf16.mxu1 %v10018_v57  ;;  %6916 = vmatprep.subr.bf16.mxu0 %v10018_v57 }
 0x3aa   : > { %v2798_v13 = vpop.f32.mrf.mxu0  ;;  %6893 = vmatmul.mubr.bf16.vlgmr.msra.gmra.mxu0 %v8938_v47 }
 0x3ab   : > { %v2804_v3 = vadd.f32 %v2798_v13, %v2761_v1  ;;  %6911 = vmatpush3.bf16.msra.mxu1 %v9071_v49  ;;  %6917 = vmatpush3.bf16.msra.mxu0 %v9245_v23  ;;  %v3520_v1 = vpop.permute.xlu1 %3519 }
 0x3ac   : > { %v6654_v14 = vpop.f32.mrf.mxu0  ;;  %6918 = vmatprep.subr.bf16.mxu0 %v10018_v57  ;;  %6936 = vmatprep.subr.bf16.mxu1 %v10018_v57  ;;  %v3521_v13 = vsel %vm2309_vm5, %v3518_v42, %v3520_v1  ;;  %v7359_v1 = vld [vmem:[%s9989_s5 + $0x90] sm:$0xff]  }
 0x3ad   : > { %6932 = vmatprep.mubr.msk.bf16.mxu0 %vm7576_vm1, %v10018_v57 }
 0x3ae   : > { %v2801_v4 = vpop.f32.mrf.mxu0  ;;  %v2841_v47 = vpop.f32.mrf.mxu1  ;;  %6913 = vmatmul.mubr.bf16.vlgmr.msra.gmra.mxu1 %v8961_v10 }
 0x3af   : > { %v9253_v62 = vadd.f32 %v2841_v47, %v2804_v3  ;;  %6919 = vmatpush3.bf16.msra.mxu0 %v9258_v29  ;;  %6937 = vmatpush3.bf16.msra.mxu1 %v9264_v18 }
 0x3b0   : > { %v6655_v51 = vpop.f32.mrf.mxu0  ;;  %v6674_v61 = vpop.f32.mrf.mxu1  ;;  %6920 = vmatprep.subr.bf16.mxu0 %v10018_v57  ;;  %6938 = vmatprep.subr.bf16.mxu1 %v10018_v57 }
 0x3b1   : > { %6952 = vmatprep.mubr.msk.bf16.mxu1 %vm7576_vm1, %v10018_v57 }
 0x3b2   : > { %v2844_v10 = vpop.f32.mrf.mxu1 }
 0x3b3   : > { %6921 = vmatpush3.bf16.msra.mxu0 %v9274_v0  ;;  %6939 = vmatpush3.bf16.msra.mxu1 %v9280_v45  ;;  %v7563_v10 = vld [vmem:[%s9987_s3] sm:$0xff]  }
 0x3b4   : > { %v6675_v52 = vpop.f32.mrf.mxu1  ;;  %6922 = vmatprep.subr.bf16.mxu0 %v10018_v57  ;;  %6940 = vmatprep.subr.bf16.mxu1 %v10018_v57 }
 0x3b5   : > { %v7565_v52 = vld [vmem:[%s9987_s3 + $0x40] sm:$0xff]  }
 0x3b7   : > { %6923 = vmatpush3.bf16.msra.mxu0 %v9288_v8  ;;  %6941 = vmatpush3.bf16.msra.mxu1 %v9294_v56 }
 0x3b8   : > { %6924 = vmatprep.subr.bf16.mxu0 %v10018_v57  ;;  %6942 = vmatprep.subr.bf16.mxu1 %v10018_v57 }
 0x3bb   : > { %6925 = vmatpush3.bf16.msra.mxu0 %v9302_v55  ;;  %6943 = vmatpush3.bf16.msra.mxu1 %v9308_v43 }
 0x3bc   : > { %6926 = vmatprep.subr.bf16.mxu0 %v10018_v57  ;;  %6944 = vmatprep.subr.bf16.mxu1 %v10018_v57 }
 0x3bf   : > { %6927 = vmatpush3.bf16.msra.mxu0 %v9316_v12  ;;  %6945 = vmatpush3.bf16.msra.mxu1 %v9322_v11 }
 0x3c0   : > { %6928 = vmatprep.subr.bf16.mxu0 %v10018_v57  ;;  %6946 = vmatprep.subr.bf16.mxu1 %v10018_v57 }
 0x3c3   : > { %6929 = vmatpush3.bf16.msra.mxu0 %v8688_v58  ;;  %6947 = vmatpush3.bf16.msra.mxu1 %v8694_v35 }
 0x3c4   : > { %6930 = vmatprep.subr.bf16.mxu0 %v10018_v57  ;;  %6948 = vmatprep.subr.bf16.mxu1 %v10018_v57 }
 0x3c7   : > { %6931 = vmatpush3.bf16.msra.mxu0 %v8713_v63  ;;  %6949 = vmatpush3.bf16.msra.mxu1 %v8719_v37 }
 0x3c8   : > { %6950 = vmatprep.subr.bf16.mxu1 %v10018_v57  ;;  %6956 = vmatprep.subr.bf16.mxu0 %v10018_v57 }
 0x3ca   : > { %v2884_v22 = vpop.f32.mrf.mxu0  ;;  %6933 = vmatmul.mubr.bf16.vlgmr.msra.gmra.mxu0 %v9065_v9 }
 0x3cb   : > { %6951 = vmatpush3.bf16.msra.mxu1 %v8738_v60  ;;  %6957 = vmatpush3.bf16.msra.mxu0 %v8935_v33  ;;  %v2890_v35 = vadd.f32 %v9204_v38, %v2884_v22  ;;  %v7350_v22 = vld [vmem:[%s9989_s5 + $0x58] sm:$0xff]  }
 0x3cc   : > { %v6694_v58 = vpop.f32.mrf.mxu0  ;;  %6958 = vmatprep.subr.bf16.mxu0 %v10018_v57  ;;  %6976 = vmatprep.subr.bf16.mxu1 %v10018_v57 }
 0x3cd   : > { %6972 = vmatprep.mubr.msk.bf16.mxu0 %vm7576_vm1, %v10018_v57 }
 0x3ce   : > { %v2887_v63 = vpop.f32.mrf.mxu0  ;;  %v2925_v37 = vpop.f32.mrf.mxu1  ;;  %6953 = vmatmul.mubr.bf16.vlgmr.msra.gmra.mxu1 %v9080_v21 }
 0x3cf   : > { %v2931_v16 = vadd.f32 %v2925_v37, %v2890_v35  ;;  %6959 = vmatpush3.bf16.msra.mxu0 %v8952_v25  ;;  %6977 = vmatpush3.bf16.msra.mxu1 %v8958_v36  ;;  %v2512_v35 = vmax.f32 %v9085_v31, 0.0  ;;  %v7352_v63 = vld [vmem:[%s9989_s5 + $0x78] sm:$0xff]   ;;  %v7353_v31 = vld [vmem:[%s9989_s5 + $0x48] sm:$0xff]  }
 0x3d0   : > { %v6695_v60 = vpop.f32.mrf.mxu0  ;;  %v6714_v9 = vpop.f32.mrf.mxu1  ;;  %6960 = vmatprep.subr.bf16.mxu0 %v10018_v57  ;;  %6978 = vmatprep.subr.bf16.mxu1 %v10018_v57 }
 0x3d1   : > { %6992 = vmatprep.mubr.msk.bf16.mxu1 %vm7576_vm1, %v10018_v57  ;;  %v2513_v37 = vpack.c.bf16 %v2512_v35, %v2512_v35  ;;  %v7355_v60 = vld [vmem:[%s9989_s5 + $0x40] sm:$0xff]   ;;  %v7356_v9 = vld [vmem:[%s9989_s5 + $0x68] sm:$0xff]  }
 0x3d2   : > { %v2928_v27 = vpop.f32.mrf.mxu1 }
 0x3d3   : > { %6961 = vmatpush3.bf16.msra.mxu0 %v8973_v32  ;;  %6979 = vmatpush3.bf16.msra.mxu1 %v8979_v5  ;;  %v2678_v27 = vmax.f32 %v9164_v46, 0.0 }
 0x3d4   : > { %v6715_v21 = vpop.f32.mrf.mxu1  ;;  %6962 = vmatprep.subr.bf16.mxu0 %v10018_v57  ;;  %6980 = vmatprep.subr.bf16.mxu1 %v10018_v57 }
 0x3d5   : > { %v7357_v21 = vld [vmem:[%s9989_s5 + $0x60] sm:$0xff]   ;;  %v2679_v15 = vpack.c.bf16 %v2678_v27, %v2678_v27 }
 0x3d7   : > { %6963 = vmatpush3.bf16.msra.mxu0 %v8987_v19  ;;  %6981 = vmatpush3.bf16.msra.mxu1 %v8993_v44 }
 0x3d8   : > { %6964 = vmatprep.subr.bf16.mxu0 %v10018_v57  ;;  %6982 = vmatprep.subr.bf16.mxu1 %v10018_v57 }
 0x3db   : > { %6965 = vmatpush3.bf16.msra.mxu0 %v9005_v20  ;;  %6983 = vmatpush3.bf16.msra.mxu1 %v9011_v48 }
 0x3dc   : > { %6966 = vmatprep.subr.bf16.mxu0 %v10018_v57  ;;  %6984 = vmatprep.subr.bf16.mxu1 %v10018_v57 }
 0x3df   : > { %6967 = vmatpush3.bf16.msra.mxu0 %v9023_v59  ;;  %6985 = vmatpush3.bf16.msra.mxu1 %v9029_v24 }
 0x3e0   : > { %6968 = vmatprep.subr.bf16.mxu0 %v10018_v57  ;;  %6986 = vmatprep.subr.bf16.mxu1 %v10018_v57 }
 0x3e3   : > { %6969 = vmatpush3.bf16.msra.mxu0 %v9037_v54  ;;  %6987 = vmatpush3.bf16.msra.mxu1 %v9043_v30 }
 0x3e4   : > { %6970 = vmatprep.subr.bf16.mxu0 %v10018_v57  ;;  %6988 = vmatprep.subr.bf16.mxu1 %v10018_v57 }
 0x3e7   : > { %6971 = vmatpush3.bf16.msra.mxu0 %v9051_v7  ;;  %6989 = vmatpush3.bf16.msra.mxu1 %v9057_v50 }
 0x3e8   : > { %6990 = vmatprep.subr.bf16.mxu1 %v10018_v57  ;;  %6996 = vmatprep.subr.bf16.mxu0 %v10018_v57 }
 0x3ea   : > { %v2978_v26 = vpop.f32.mrf.mxu0  ;;  %6973 = vmatmul.mubr.bf16.vlgmr.msra.gmra.mxu0 %v3468_v17  ;;  %v2848_v17 = vmax.f32 %v9253_v62, 0.0 }
 0x3eb   : > { %v2984_v53 = vadd.f32 %v2978_v26, %v2931_v16  ;;  %6991 = vmatpush3.bf16.msra.mxu1 %v9071_v49  ;;  %6997 = vmatpush3.bf16.msra.mxu0 %v9245_v23  ;;  %v7354_v16 = vld [vmem:[%s9989_s5 + $0x70] sm:$0xff]   ;;  %v7360_v26 = vld [vmem:[%s9989_s5 + $0xb8] sm:$0xff]  }
 0x3ec   : > { %v6734_v34 = vpop.f32.mrf.mxu0  ;;  %6998 = vmatprep.subr.bf16.mxu0 %v10018_v57  ;;  %7016 = vmatprep.subr.bf16.mxu1 %v10018_v57 }
 0x3ed   : > { %7012 = vmatprep.mubr.msk.bf16.mxu0 %vm7576_vm1, %v10018_v57 }
 0x3ee   : > { %v2981_v3 = vpop.f32.mrf.mxu0  ;;  %v3031_v14 = vpop.f32.mrf.mxu1  ;;  %6993 = vmatmul.mubr.bf16.vlgmr.msra.gmra.mxu1 %v3521_v13  ;;  %v7361_v13 = vld [vmem:[%s9989_s5 + $0x88] sm:$0xff]  }
 0x3ef   : > { %v9382_v4 = vadd.f32 %v3031_v14, %v2984_v53  ;;  %6999 = vmatpush3.bf16.msra.mxu0 %v9258_v29  ;;  %7017 = vmatpush3.bf16.msra.mxu1 %v9264_v18  ;;  %v7561_v29 = vld [vmem:[%s9987_s3 + $0x8] sm:$0xff]   ;;  %v7562_v18 = vld [vmem:[%s9987_s3 + $0x50] sm:$0xff]   ;;  %v2849_v53 = vpack.c.bf16 %v2848_v17, %v2848_v17 }
 0x3f0   : > { %v6735_v23 = vpop.f32.mrf.mxu0  ;;  %v6754_v47 = vpop.f32.mrf.mxu1  ;;  %7000 = vmatprep.subr.bf16.mxu0 %v10018_v57  ;;  %7018 = vmatprep.subr.bf16.mxu1 %v10018_v57  ;;  %v7362_v3 = vld [vmem:[%s9989_s5 + $0xb0] sm:$0xff]  }
 0x3f1   : > { %7032 = vmatprep.mubr.msk.bf16.mxu1 %vm7576_vm1, %v10018_v57 }
 0x3f2   : > { %v3034_v51 = vpop.f32.mrf.mxu1 }
 0x3f3   : > { %7001 = vmatpush3.bf16.msra.mxu0 %v9274_v0  ;;  %7019 = vmatpush3.bf16.msra.mxu1 %v9280_v45  ;;  %v7564_v0 = vld [vmem:[%s9987_s3 + $0x48] sm:$0xff]  }
 0x3f4   : > { %v6755_v61 = vpop.f32.mrf.mxu1  ;;  %7002 = vmatprep.subr.bf16.mxu0 %v10018_v57  ;;  %7020 = vmatprep.subr.bf16.mxu1 %v10018_v57 }
 0x3f5   : > { %v7363_v61 = vld [vmem:[%s9989_s5 + $0x80] sm:$0xff]  }
 0x3f7   : > { %7003 = vmatpush3.bf16.msra.mxu0 %v9288_v8  ;;  %7021 = vmatpush3.bf16.msra.mxu1 %v9294_v56 }
 0x3f8   : > { %7004 = vmatprep.subr.bf16.mxu0 %v10018_v57  ;;  %7022 = vmatprep.subr.bf16.mxu1 %v10018_v57 }
 0x3fb   : > { %7005 = vmatpush3.bf16.msra.mxu0 %v9302_v55  ;;  %7023 = vmatpush3.bf16.msra.mxu1 %v9308_v43 }
 0x3fc   : > { %7006 = vmatprep.subr.bf16.mxu0 %v10018_v57  ;;  %7024 = vmatprep.subr.bf16.mxu1 %v10018_v57 }
 0x3ff   : > { %7007 = vmatpush3.bf16.msra.mxu0 %v9316_v12  ;;  %7025 = vmatpush3.bf16.msra.mxu1 %v9322_v11 }
 0x400   : > { %7008 = vmatprep.subr.bf16.mxu0 %v10018_v57  ;;  %7026 = vmatprep.subr.bf16.mxu1 %v10018_v57 }
 0x403   : > { %7009 = vmatpush3.bf16.msra.mxu0 %v7561_v29  ;;  %7027 = vmatpush3.bf16.msra.mxu1 %v7562_v18  ;;  %v7364_v29 = vld [vmem:[%s9989_s5 + $0xa8] sm:$0xff]   ;;  %v3038_v18 = vmax.f32 %v9382_v4, 0.0  ;;  %v7367_v4 = vld [vmem:[%s9989_s5 + $0xd0] sm:$0xff]  }
 0x404   : > { %7010 = vmatprep.subr.bf16.mxu0 %v10018_v57  ;;  %7028 = vmatprep.subr.bf16.mxu1 %v10018_v57 }
 0x407   : > { %7011 = vmatpush3.bf16.msra.mxu0 %v7563_v10  ;;  %7029 = vmatpush3.bf16.msra.mxu1 %v7564_v0 }
 0x408   : > { %7030 = vmatprep.subr.bf16.mxu1 %v10018_v57  ;;  %7036 = vmatprep.subr.bf16.mxu0 %v10018_v57 }
 0x40a   : > { %v3074_v45 = vpop.f32.mrf.mxu0  ;;  %7013 = vmatmul.mubr.bf16.vlgmr.msra.gmra.mxu0 %v8682_v28 }
 0x40b   : > { %7031 = vmatpush3.bf16.msra.mxu1 %v7565_v52  ;;  %7037 = vmatpush3.bf16.msra.mxu0 %v8935_v33  ;;  %v3080_v56 = vadd.f32 %v9204_v38, %v3074_v45  ;;  %v7365_v45 = vld [vmem:[%s9989_s5 + $0xa0] sm:$0xff]   ;;  %v7366_v52 = vld [vmem:[%s9989_s5 + $0xd8] sm:$0xff]  }
 0x40c   : > { %v6774_v8 = vpop.f32.mrf.mxu0  ;;  %7038 = vmatprep.subr.bf16.mxu0 %v10018_v57  ;;  %7056 = vmatprep.subr.bf16.mxu1 %v10018_v57 }
 0x40d   : > { %7052 = vmatprep.mubr.msk.bf16.mxu0 %vm7576_vm1, %v10018_v57  ;;  %v3039_v8 = vpack.c.bf16 %v3038_v18, %v3038_v18 }
 0x40e   : > { %v3077_v55 = vpop.f32.mrf.mxu0  ;;  %v3115_v43 = vpop.f32.mrf.mxu1  ;;  %7033 = vmatmul.mubr.bf16.vlgmr.msra.gmra.mxu1 %v8702_v40 }
 0x40f   : > { %v9433_v28 = vadd.f32 %v3115_v43, %v3080_v56  ;;  %7039 = vmatpush3.bf16.msra.mxu0 %v8952_v25  ;;  %7057 = vmatpush3.bf16.msra.mxu1 %v8958_v36  ;;  %v7342_v25 = vld [vmem:[%s9989_s5 + $0x18] sm:$0xff]  }
 0x410   : > { %v6775_v33 = vpop.f32.mrf.mxu0  ;;  %v6794_v12 = vpop.f32.mrf.mxu1  ;;  %7040 = vmatprep.subr.bf16.mxu0 %v10018_v57  ;;  %7058 = vmatprep.subr.bf16.mxu1 %v10018_v57  ;;  %v7370_v55 = vld [vmem:[%s9989_s5 + $0xf8] sm:$0xff]  }
 0x411   : > { %7072 = vmatprep.mubr.msk.bf16.mxu1 %vm7576_vm1, %v10018_v57  ;;  %v7371_v33 = vld [vmem:[%s9989_s5 + $0xf0] sm:$0xff]   ;;  %v7369_v12 = vld [vmem:[%s9989_s5 + $0xc0] sm:$0xff]  }
 0x412   : > { %v3118_v11 = vpop.f32.mrf.mxu1 }
 0x413   : > { %7041 = vmatpush3.bf16.msra.mxu0 %v8973_v32  ;;  %7059 = vmatpush3.bf16.msra.mxu1 %v8979_v5  ;;  %v7343_v32 = vld [vmem:[%s9989_s5 + $0x10] sm:$0xff]   ;;  %v7344_v5 = vld [vmem:[%s9989_s5 + $0x38] sm:$0xff]   ;;  %v7372_v11 = vld [vmem:[%s9989_s5 + $0xe8] sm:$0xff]  }
 0x414   : > { %v6795_v40 = vpop.f32.mrf.mxu1  ;;  %7042 = vmatprep.subr.bf16.mxu0 %v10018_v57  ;;  %7060 = vmatprep.subr.bf16.mxu1 %v10018_v57 }
 0x415   : > { %v7373_v40 = vld [vmem:[%s9989_s5 + $0xe0] sm:$0xff]  }
 0x417   : > { %7043 = vmatpush3.bf16.msra.mxu0 %v8987_v19  ;;  %7061 = vmatpush3.bf16.msra.mxu1 %v8993_v44 }
 0x418   : > { %7044 = vmatprep.subr.bf16.mxu0 %v10018_v57  ;;  %7062 = vmatprep.subr.bf16.mxu1 %v10018_v57 }
 0x41b   : > { %7045 = vmatpush3.bf16.msra.mxu0 %v9005_v20  ;;  %7063 = vmatpush3.bf16.msra.mxu1 %v9011_v48  ;;  %v7345_v20 = vld [vmem:[%s9989_s5 + $0x8] sm:$0xff]   ;;  %v7346_v48 = vld [vmem:[%s9989_s5 + $0x30] sm:$0xff]  }
 0x41c   : > { %7046 = vmatprep.subr.bf16.mxu0 %v10018_v57  ;;  %7064 = vmatprep.subr.bf16.mxu1 %v10018_v57 }
 0x41f   : > { %7047 = vmatpush3.bf16.msra.mxu0 %v9023_v59  ;;  %7065 = vmatpush3.bf16.msra.mxu1 %v9029_v24 }
 0x420   : > { %7048 = vmatprep.subr.bf16.mxu0 %v10018_v57  ;;  %7066 = vmatprep.subr.bf16.mxu1 %v10018_v57 }
 0x423   : > { %7049 = vmatpush3.bf16.msra.mxu0 %v9037_v54  ;;  %7067 = vmatpush3.bf16.msra.mxu1 %v9043_v30  ;;  %v7347_v54 = vld [vmem:[%s9989_s5] sm:$0xff]   ;;  %v7348_v30 = vld [vmem:[%s9989_s5 + $0x28] sm:$0xff]  }
 0x424   : > { %7050 = vmatprep.subr.bf16.mxu0 %v10018_v57  ;;  %7068 = vmatprep.subr.bf16.mxu1 %v10018_v57 }
 0x427   : > { %7051 = vmatpush3.bf16.msra.mxu0 %v9051_v7  ;;  %7069 = vmatpush3.bf16.msra.mxu1 %v9057_v50  ;;  %v2297_v7 = vmax.f32 %v8792_v6, 0.0  ;;  %v7351_v6 = vld [vmem:[%s9989_s5 + $0x50] sm:$0xff]  }
 0x428   : > { %7070 = vmatprep.subr.bf16.mxu1 %v10018_v57  ;;  %7076 = vmatprep.subr.bf16.mxu0 %v10018_v57 }
 0x429   : > { %v2298_v58 = vpack.c.bf16 %v2297_v7, %v2297_v7 }
 0x42a   : > { %v9468_v36 = vpop.f32.mrf.mxu0  ;;  %7053 = vmatmul.mubr.bf16.vlgmr.msra.gmra.mxu0 %v8996_v41 }
 0x42b   : > { %7071 = vmatpush3.bf16.msra.mxu1 %v9071_v49  ;;  %7077 = vmatpush3.bf16.msra.mxu0 %v7342_v25  ;;  %v7349_v49 = vld [vmem:[%s9989_s5 + $0x20] sm:$0xff]   ;;  %v3162_v47 = vadd.f32 %v9468_v36, %v9433_v28  ;;  %v7368_v28 = vld [vmem:[%s9989_s5 + $0xc8] sm:$0xff]  }
 0x42c   : > { %v6814_v19 = vpop.f32.mrf.mxu0  ;;  %7078 = vmatprep.subr.bf16.mxu0 %v10018_v57  ;;  %7088 = vmatprep.subr.bf16.mxu1 %v10018_v57 }
 0x42d   : > { %7084 = vmatprep.mubr.msk.bf16.mxu0 %vm7576_vm1, %v10018_v57 }
 0x42e   : > { %v3159_v44 = vpop.f32.mrf.mxu0  ;;  %v9482_v41 = vpop.f32.mrf.mxu1  ;;  %7073 = vmatmul.mubr.bf16.vlgmr.msra.gmra.mxu1 %v9014_v2 }
 0x42f   : > { %7079 = vmatpush3.bf16.msra.mxu0 %v7343_v32  ;;  %7089 = vmatpush3.bf16.msra.mxu1 %v7344_v5  ;;  %v3203_v10 = vadd.f32 %v9482_v41, %v3162_v47 }
 0x430   : > { %v6815_v59 = vpop.f32.mrf.mxu0  ;;  %v6834_v24 = vpop.f32.mrf.mxu1  ;;  %7080 = vmatprep.subr.bf16.mxu0 %v10018_v57  ;;  %7090 = vmatprep.subr.bf16.mxu1 %v10018_v57 }
 0x431   : > { %7096 = vmatprep.mubr.msk.bf16.mxu1 %vm7576_vm1, %v10018_v57  ;;  %v3204_v56 = vmax.f32 %v3203_v10, 0.0 }
 0x432   : > { %v3200_v2 = vpop.f32.mrf.mxu1 }
 0x433   : > { %7081 = vmatpush3.bf16.msra.mxu0 %v7345_v20  ;;  %7091 = vmatpush3.bf16.msra.mxu1 %v7346_v48  ;;  %v3205_v43 = vpack.c.bf16 %v3204_v56, %v3204_v56 }
 0x434   : > { %v6835_v50 = vpop.f32.mrf.mxu1  ;;  %7082 = vmatprep.subr.bf16.mxu0 %v10018_v57  ;;  %7092 = vmatprep.subr.bf16.mxu1 %v10018_v57 }
 0x435   : > { %v7375_v50 = vld [vmem:[%s9989_s5 + $0x110] sm:$0xff]  }
 0x437   : > { %7083 = vmatpush3.bf16.msra.mxu0 %v7347_v54  ;;  %7093 = vmatpush3.bf16.msra.mxu1 %v7348_v30  ;;  %v7374_v54 = vld [vmem:[%s9989_s5 + $0x118] sm:$0xff]  }
 0x438   : > { %7094 = vmatprep.subr.bf16.mxu1 %v10018_v57  ;;  %7100 = vmatprep.subr.bf16.mxu0 %v10018_v57 }
 0x43a   : > { %7085 = vmatmul.mubr.msk.bf16.vlgmr.msra.gmra.mxu0 %vm2309_vm5, %v2298_v58 }
 0x43b   : > { %7095 = vmatpush3.bf16.msra.mxu1 %v7349_v49  ;;  %7101 = vmatpush3.bf16.msra.mxu0 %v7350_v22  ;;  %v7376_v49 = vld [vmem:[%s9989_s5 + $0x108] sm:$0xff]   ;;  %v7377_v22 = vld [vmem:[%s9989_s5 + $0x100] sm:$0xff]  }
 0x43c   : > { %7102 = vmatprep.subr.bf16.mxu0 %v10018_v57  ;;  %7112 = vmatprep.subr.bf16.mxu1 %v10018_v57 }
 0x43d   : > { %7108 = vmatprep.mubr.msk.bf16.mxu0 %vm7576_vm1, %v10018_v57 }
 0x43e   : > { %7097 = vmatmul.mubr.msk.bf16.vlgmr.msra.gmra.mxu1 %vm2309_vm5, %v2513_v37 }
 0x43f   : > { %7103 = vmatpush3.bf16.msra.mxu0 %v7351_v6  ;;  %7113 = vmatpush3.bf16.msra.mxu1 %v7352_v63 }
 0x440   : > { %7104 = vmatprep.subr.bf16.mxu0 %v10018_v57  ;;  %7114 = vmatprep.subr.bf16.mxu1 %v10018_v57 }
 0x441   : > { %7120 = vmatprep.mubr.msk.bf16.mxu1 %vm7576_vm1, %v10018_v57 }
 0x443   : > { %7105 = vmatpush3.bf16.msra.mxu0 %v7353_v31  ;;  %7115 = vmatpush3.bf16.msra.mxu1 %v7354_v16 }
 0x444   : > { %7106 = vmatprep.subr.bf16.mxu0 %v10018_v57  ;;  %7116 = vmatprep.subr.bf16.mxu1 %v10018_v57 }
 0x447   : > { %7107 = vmatpush3.bf16.msra.mxu0 %v7355_v60  ;;  %7117 = vmatpush3.bf16.msra.mxu1 %v7356_v9 }
 0x448   : > { %7118 = vmatprep.subr.bf16.mxu1 %v10018_v57  ;;  %7124 = vmatprep.subr.bf16.mxu0 %v10018_v57 }
 0x44a   : > { %v9553_v46 = vpop.f32.mrf.mxu0  ;;  %7109 = vmatmul.mubr.msk.bf16.vlgmr.msra.gmra.mxu0 %vm2309_vm5, %v2679_v15 }
 0x44b   : > { %7119 = vmatpush3.bf16.msra.mxu1 %v7357_v21  ;;  %7125 = vmatpush3.bf16.msra.mxu0 %v7358_v39  ;;  %v3246_v25 = vadd.f32 %v9204_v38, %v9553_v46 }
 0x44c   : > { %v6854_v62 = vpop.f32.mrf.mxu0  ;;  %7126 = vmatprep.subr.bf16.mxu0 %v10018_v57  ;;  %7136 = vmatprep.subr.bf16.mxu1 %v10018_v57 }
 0x44d   : > { %7132 = vmatprep.mubr.msk.bf16.mxu0 %vm7576_vm1, %v10018_v57 }
 0x44e   : > { %v3243_v42 = vpop.f32.mrf.mxu0  ;;  %v3281_v34 = vpop.f32.mrf.mxu1  ;;  %7121 = vmatmul.mubr.msk.bf16.vlgmr.msra.gmra.mxu1 %vm2309_vm5, %v2849_v53 }
 0x44f   : > { %7127 = vmatpush3.bf16.msra.mxu0 %v7359_v1  ;;  %7137 = vmatpush3.bf16.msra.mxu1 %v7360_v26  ;;  %v3287_v32 = vadd.f32 %v3281_v34, %v3246_v25  ;;  %v7378_v25 = vld [vmem:[%s9991_s7 + $0x60] ss:$16 sps:$4 sm:$0xff]  }
 0x450   : > { %v6855_v14 = vpop.f32.mrf.mxu0  ;;  %v6874_v23 = vpop.f32.mrf.mxu1  ;;  %7128 = vmatprep.subr.bf16.mxu0 %v10018_v57  ;;  %7138 = vmatprep.subr.bf16.mxu1 %v10018_v57 }
 0x451   : > { %7144 = vmatprep.mubr.msk.bf16.mxu1 %vm7576_vm1, %v10018_v57 }
 0x452   : > { %v3284_v51 = vpop.f32.mrf.mxu1 }
 0x453   : > { %7129 = vmatpush3.bf16.msra.mxu0 %v7361_v13  ;;  %7139 = vmatpush3.bf16.msra.mxu1 %v7362_v3 }
 0x454   : > { %v6875_v0 = vpop.f32.mrf.mxu1  ;;  %7130 = vmatprep.subr.bf16.mxu0 %v10018_v57  ;;  %7140 = vmatprep.subr.bf16.mxu1 %v10018_v57 }
 0x457   : > { %7131 = vmatpush3.bf16.msra.mxu0 %v7363_v61  ;;  %7141 = vmatpush3.bf16.msra.mxu1 %v7364_v29 }
 0x458   : > { %7142 = vmatprep.subr.bf16.mxu1 %v10018_v57  ;;  %7148 = vmatprep.subr.bf16.mxu0 %v10018_v57 }
 0x45a   : > { %7133 = vmatmul.mubr.msk.bf16.vlgmr.msra.gmra.mxu0 %vm2309_vm5, %v3039_v8 }
 0x45b   : > { %7143 = vmatpush3.bf16.msra.mxu1 %v7365_v45  ;;  %7149 = vmatpush3.bf16.msra.mxu0 %v7366_v52 }
 0x45c   : > { %7150 = vmatprep.subr.bf16.mxu0 %v10018_v57  ;;  %7156 = vmatprep.mubr.msk.bf16.mxu0 %vm7576_vm1, %v10018_v57 }
 0x45d   : > { %7160 = vmatprep.subr.bf16.mxu1 %v10018_v57 }
 0x45e   : > { %7145 = vmatmul.mubr.msk.bf16.vlgmr.msra.gmra.mxu1 %vm2309_vm5, %v3205_v43 }
 0x45f   : > { %7151 = vmatpush3.bf16.msra.mxu0 %v7367_v4  ;;  %7161 = vmatpush3.bf16.msra.mxu1 %v7370_v55 }
 0x460   : > { %7152 = vmatprep.subr.bf16.mxu0 %v10018_v57  ;;  %7162 = vmatprep.subr.bf16.mxu1 %v10018_v57 }
 0x461   : > { %7168 = vmatprep.mubr.msk.bf16.mxu1 %vm7576_vm1, %v10018_v57 }
 0x463   : > { %7153 = vmatpush3.bf16.msra.mxu0 %v7368_v28  ;;  %7163 = vmatpush3.bf16.msra.mxu1 %v7371_v33 }
 0x464   : > { %7154 = vmatprep.subr.bf16.mxu0 %v10018_v57  ;;  %7164 = vmatprep.subr.bf16.mxu1 %v10018_v57 }
 0x467   : > { %7155 = vmatpush3.bf16.msra.mxu0 %v7369_v12  ;;  %7165 = vmatpush3.bf16.msra.mxu1 %v7372_v11 }
 0x468   : > { %7166 = vmatprep.subr.bf16.mxu1 %v10018_v57  ;;  %7172 = vmatprep.subr.bf16.mxu0 %v10018_v57 }
 0x46a   : > { %v3324_v36 = vpop.f32.mrf.mxu0 }
 0x46b   : > { %7167 = vmatpush3.bf16.msra.mxu1 %v7373_v40  ;;  %v3330_v19 = vadd.f32 %v3324_v36, %v3287_v32  ;;  %v5497_v40 = vld [vmem:[%s9990_s6] ss:$0 sm:$0xff]  ;;  %v7380_v36 = vld [vmem:[%s9991_s7 + $0x64] ss:$16 sps:$4 sm:$0xff]   ;;  %v7381_v32 = vld [vmem:[%s9991_s7 + $0x68] ss:$16 sps:$4 sm:$0xff]  }
 0x46c   : > { %v6894_v5 = vpop.f32.mrf.mxu0  ;;  %4555 = vmatprep.subr.bf16.mxu1 %v7380_v36 }
 0x46e   : > { %v3327_v44 = vpop.f32.mrf.mxu0  ;;  %v3367_v41 = vpop.f32.mrf.mxu1 }
 0x46f   : > { %v3373_v20 = vadd.f32 %v3367_v41, %v3330_v19  ;;  %v7383_v19 = vld [vmem:[%s9991_s7 + $0x6c] ss:$16 sps:$4 sm:$0xff]   ;;  %v7386_v44 = vld [vmem:[%s9991_s7 + $0x44] ss:$16 sps:$4 sm:$0xff]  }
 0x470   : > { %v6895_v48 = vpop.f32.mrf.mxu0  ;;  %v6914_v59 = vpop.f32.mrf.mxu1 }
 0x471   : > { %v3374_v24 = vmax.f32 %v3373_v20, 0.0  ;;  %v7389_v20 = vld [vmem:[%s9991_s7 + $0x4c] ss:$16 sps:$4 sm:$0xff]  }
 0x472   : > { %v3370_v2 = vpop.f32.mrf.mxu1 }
 0x473   : > { %v3375_v30 = vpack.c.bf16 %v3374_v24, %v3374_v24  ;;  %v7384_v24 = vld [vmem:[%s9991_s7 + $0x40] ss:$16 sps:$4 sm:$0xff]  }
 0x474   : > { %v6915_v7 = vpop.f32.mrf.mxu1 }
 0x475   : > { %7157 = vmatmul.mubr.msk.bf16.vlgmr.msra.gmra.mxu0 %vm2309_vm5, %v3375_v30  ;;  %v7392_v30 = vld [vmem:[%s9991_s7 + $0x24] ss:$16 sps:$4 sm:$0xff]  }
 0x476   : > { %7173 = vmatpush3.bf16.msra.mxu0 %v7374_v54  ;;  %7180 = vmatprep.mubr.msk.bf16.mxu0 %vm7576_vm1, %v10018_v57  ;;  %v7387_v54 = vld [vmem:[%s9991_s7 + $0x48] ss:$16 sps:$4 sm:$0xff]  }
 0x477   : > { %7174 = vmatprep.subr.bf16.mxu0 %v10018_v57 }
 0x47a   : > { %7175 = vmatpush3.bf16.msra.mxu0 %v7375_v50 }
 0x47b   : > { %7176 = vmatprep.subr.bf16.mxu0 %v10018_v57 }
 0x47e   : > { %7177 = vmatpush3.bf16.msra.mxu0 %v7376_v49  ;;  %v7395_v49 = vld [vmem:[%s9991_s7 + $0x2c] ss:$16 sps:$4 sm:$0xff]  }
 0x47f   : > { %7178 = vmatprep.subr.bf16.mxu0 %v10018_v57 }
 0x482   : > { %7179 = vmatpush3.bf16.msra.mxu0 %v7377_v22 }
 0x483   : > { %4596 = vmatprep.subr.bf16.mxu0 %v7383_v19 }
 0x48a   : > { %v3410_v58 = vpop.f32.mrf.mxu0 }
 0x48b   : > { %v3416_v9 = vadd.f32 %v9204_v38, %v3410_v58  ;;  %v7390_v58 = vld [vmem:[%s9991_s7 + $0x20] ss:$16 sps:$4 sm:$0xff]  }
 0x48c   : > { %v6934_v35 = vpop.f32.mrf.mxu0 }
 0x48d   : > { %v7393_v35 = vld [vmem:[%s9991_s7 + $0x28] ss:$16 sps:$4 sm:$0xff]  }
 0x48e   : > { %v3413_v6 = vpop.f32.mrf.mxu0  ;;  %v3451_v63 = vpop.f32.mrf.mxu1 }
 0x48f   : > { %v3457_v21 = vadd.f32 %v3451_v63, %v3416_v9 }
 0x490   : > { %v6935_v37 = vpop.f32.mrf.mxu0  ;;  %v6954_v31 = vpop.f32.mrf.mxu1 }
 0x492   : > { %v3454_v16 = vpop.f32.mrf.mxu1 }
 0x494   : > { %v6955_v60 = vpop.f32.mrf.mxu1 }
 0x4aa   : > { %v3504_v27 = vpop.f32.mrf.mxu0 }
 0x4ab   : > { %v3510_v15 = vadd.f32 %v3504_v27, %v3457_v21 }
 0x4ac   : > { %v6974_v39 = vpop.f32.mrf.mxu0 }
 0x4ae   : > { %v3507_v17 = vpop.f32.mrf.mxu0  ;;  %v3557_v46 = vpop.f32.mrf.mxu1 }
 0x4af   : > { %v3563_v1 = vadd.f32 %v3557_v46, %v3510_v15 }
 0x4b0   : > { %v6975_v26 = vpop.f32.mrf.mxu0  ;;  %v6994_v57 = vpop.f32.mrf.mxu1 }
 0x4b1   : > { %v3564_v53 = vmax.f32 %v3563_v1, 0.0 }
 0x4b2   : > { %v3560_v62 = vpop.f32.mrf.mxu1 }
 0x4b3   : > { %v3565_v42 = vpack.c.bf16 %v3564_v53, %v3564_v53 }
 0x4b4   : > { %v6995_v34 = vpop.f32.mrf.mxu1 }
 0x4b5   : > { %7169 = vmatmul.mubr.msk.bf16.vlgmr.msra.gmra.mxu1 %vm2309_vm5, %v3565_v42 }
 0x4b6   : > { %4556 = vmatpush1.bf16.msra.mxu1 %v7378_v25  ;;  %v7405_v25 = vld [vmem:[%s9993_s9 + $0x170] ss:$8 sps:$4 sm:$0xff]  }
 0x4b7   : > { %4557 = vmatprep.subr.bf16.mxu1 %v7386_v44  ;;  %v7408_v44 = vld [vmem:[%s9993_s9 + $0x60] ss:$8 sps:$4 sm:$0xff]  }
 0x4ba   : > { %4558 = vmatpush1.bf16.msra.mxu1 %v7384_v24  ;;  %v7417_v24 = vld [vmem:[%s9993_s9 + $0x150] ss:$8 sps:$4 sm:$0xff]  }
 0x4bb   : > { %4559 = vmatprep.subr.bf16.mxu1 %v7392_v30  ;;  %v7420_v30 = vld [vmem:[%s9993_s9 + $0x40] ss:$8 sps:$4 sm:$0xff]  }
 0x4be   : > { %4560 = vmatpush1.bf16.msra.mxu1 %v7390_v58  ;;  %v7429_v58 = vld [vmem:[%s9993_s9 + $0x130] ss:$8 sps:$4 sm:$0xff]  }
 0x4ca   : > { %v3600_v13 = vpop.f32.mrf.mxu0 }
 0x4cb   : > { %v3606_v18 = vadd.f32 %v9204_v38, %v3600_v13 }
 0x4cc   : > { %v7014_v3 = vpop.f32.mrf.mxu0 }
 0x4ce   : > { %v3603_v14 = vpop.f32.mrf.mxu0  ;;  %v3641_v23 = vpop.f32.mrf.mxu1 }
 0x4cf   : > { %v3647_v0 = vadd.f32 %v3641_v23, %v3606_v18  ;;  %v7398_v23 = vld [vmem:[%s9991_s7 + $0x4] ss:$16 sps:$4 sm:$0xff]  }
 0x4d0   : > { %v7015_v47 = vpop.f32.mrf.mxu0  ;;  %v7034_v51 = vpop.f32.mrf.mxu1  ;;  %4561 = vmatprep.subr.bf16.mxu1 %v7398_v23  ;;  %v7470_v23 = vld [vmem:[%s9993_s9 + $0xc4] ss:$8 sps:$4 sm:$0xff]  }
 0x4d1   : > { %v7401_v47 = vld [vmem:[%s9991_s7 + $0xc] ss:$16 sps:$4 sm:$0xff]  }
 0x4d2   : > { %v3644_v61 = vpop.f32.mrf.mxu1 }
 0x4d3   : > { %v7396_v61 = vld [vmem:[%s9991_s7] ss:$16 sps:$4 sm:$0xff]  }
 0x4d4   : > { %v7035_v29 = vpop.f32.mrf.mxu1  ;;  %4562 = vmatpush1.bf16.msra.mxu1 %v7396_v61  ;;  %v7471_v61 = vld [vmem:[%s9993_s9 + $0x1c0] ss:$8 sps:$4 sm:$0xff]  }
 0x4d5   : > { %v7399_v29 = vld [vmem:[%s9991_s7 + $0x8] ss:$16 sps:$4 sm:$0xff]  }
 0x4ea   : > { %v3682_v10 = vpop.f32.mrf.mxu0 }
 0x4eb   : > { %v3688_v52 = vadd.f32 %v3682_v10, %v3647_v0  ;;  %v7579_v0 = vmov 0  }
 0x4ec   : > { %v7054_v45 = vpop.f32.mrf.mxu0  ;;  %4579 = vmatprep.mubr.bf16.mxu1 %v7579_v0 }
 0x4ed   : > { %v7404_v45 = vld [vmem:[%s9993_s9 + $0x74] ss:$8 sps:$4 sm:$0xff]  }
 0x4ee   : > { %v3685_v8 = vpop.f32.mrf.mxu0  ;;  %v3723_v56 = vpop.f32.mrf.mxu1  ;;  %5037 = vmatprep.subr.bf16.mxu1 %v7404_v45  ;;  %v7482_v45 = vld [vmem:[%s9993_s9 + $0xa4] ss:$8 sps:$4 sm:$0xff]  }
 0x4ef   : > { %v3729_v4 = vadd.f32 %v3723_v56, %v3688_v52  ;;  %v7407_v52 = vld [vmem:[%s9993_s9 + $0x174] ss:$8 sps:$4 sm:$0xff]  }
 0x4f0   : > { %v7055_v55 = vpop.f32.mrf.mxu0  ;;  %v7074_v43 = vpop.f32.mrf.mxu1 }
 0x4f1   : > { %v3730_v28 = vmax.f32 %v3729_v4, 0.0 }
 0x4f2   : > { %v3726_v33 = vpop.f32.mrf.mxu1 }
 0x4f3   : > { %v3731_v12 = vpack.c.bf16 %v3730_v28, %v3730_v28 }
 0x4f4   : > { %v7075_v11 = vpop.f32.mrf.mxu1 }
 0x4f5   : > { %7181 = vmatmul.mubr.msk.bf16.vlgmr.msra.gmra.mxu0 %vm2309_vm5, %v3731_v12 }
 0x4f6   : > { %4597 = vmatpush1.bf16.msra.mxu0 %v7381_v32  ;;  %4620 = vmatprep.mubr.bf16.mxu0 %v7579_v0  ;;  %v7410_v32 = vld [vmem:[%s9993_s9 + $0x64] ss:$8 sps:$4 sm:$0xff]   ;;  %v7477_v0 = vld [vmem:[%s9993_s9 + $0x1b0] ss:$8 sps:$4 sm:$0xff]  }
 0x4f7   : > { %4598 = vmatprep.subr.bf16.mxu0 %v7389_v20  ;;  %v7416_v20 = vld [vmem:[%s9993_s9 + $0x54] ss:$8 sps:$4 sm:$0xff]  }
 0x4fa   : > { %v3809_v38 = vpop.f32.mrf.mxu0  ;;  %4599 = vmatpush1.bf16.msra.mxu0 %v7387_v54  ;;  %v7425_v54 = vld [vmem:[%s9993_s9 + $0x144] ss:$8 sps:$4 sm:$0xff]  }
 0x4fb   : > { %v3815_v41 = vadd.f32 %v5497_v40, %v3809_v38  ;;  %4600 = vmatprep.subr.bf16.mxu0 %v7395_v49  ;;  %v7402_v38 = vld [vmem:[%s9993_s9 + $0x70] ss:$8 sps:$4 sm:$0xff]   ;;  %v7431_v49 = vld [vmem:[%s9993_s9 + $0x134] ss:$8 sps:$4 sm:$0xff]  }
 0x4fc   : > { %v7086_v5 = vpop.f32.mrf.mxu0 }
 0x4fd   : > { %v7413_v5 = vld [vmem:[%s9993_s9 + $0x164] ss:$8 sps:$4 sm:$0xff]  }
 0x4fe   : > { %v3812_v48 = vpop.f32.mrf.mxu0  ;;  %v3885_v59 = vpop.f32.mrf.mxu1  ;;  %4601 = vmatpush1.bf16.msra.mxu0 %v7393_v35  ;;  %v7434_v35 = vld [vmem:[%s9993_s9 + $0x24] ss:$8 sps:$4 sm:$0xff]  }
 0x4ff   : > { %v3891_v2 = vadd.f32 %v3885_v59, %v3815_v41  ;;  %4602 = vmatprep.subr.bf16.mxu0 %v7401_v47  ;;  %v7411_v41 = vld [vmem:[%s9993_s9 + $0x160] ss:$8 sps:$4 sm:$0xff]   ;;  %v7419_v48 = vld [vmem:[%s9993_s9 + $0x154] ss:$8 sps:$4 sm:$0xff]   ;;  %v7414_v59 = vld [vmem:[%s9993_s9 + $0x50] ss:$8 sps:$4 sm:$0xff]  }
 0x500   : > { %v7087_v7 = vpop.f32.mrf.mxu0  ;;  %v7098_v50 = vpop.f32.mrf.mxu1  ;;  %v7473_v47 = vld [vmem:[%s9993_s9 + $0x1c4] ss:$8 sps:$4 sm:$0xff]  }
 0x501   : > { %v7423_v7 = vld [vmem:[%s9993_s9 + $0x140] ss:$8 sps:$4 sm:$0xff]   ;;  %v7428_v50 = vld [vmem:[%s9993_s9 + $0x34] ss:$8 sps:$4 sm:$0xff]  }
 0x502   : > { %v3888_v22 = vpop.f32.mrf.mxu1  ;;  %4603 = vmatpush1.bf16.msra.mxu0 %v7399_v29  ;;  %v7476_v29 = vld [vmem:[%s9993_s9 + $0xb4] ss:$8 sps:$4 sm:$0xff]  }
 0x503   : > { %5078 = vmatprep.subr.bf16.mxu0 %v7407_v52  ;;  %v7426_v22 = vld [vmem:[%s9993_s9 + $0x30] ss:$8 sps:$4 sm:$0xff]   ;;  %v7485_v52 = vld [vmem:[%s9993_s9 + $0x1a4] ss:$8 sps:$4 sm:$0xff]  }
 0x504   : > { %v7099_v6 = vpop.f32.mrf.mxu1 }
 0x505   : > { %v7437_v6 = vld [vmem:[%s9993_s9 + $0x124] ss:$8 sps:$4 sm:$0xff]  }
 0x50a   : > { %v3961_v63 = vpop.f32.mrf.mxu0 }
 0x50b   : > { %v3967_v37 = vadd.f32 %v3961_v63, %v3891_v2  ;;  %v7422_v2 = vld [vmem:[%s9993_s9 + $0x44] ss:$8 sps:$4 sm:$0xff]   ;;  %v7432_v63 = vld [vmem:[%s9993_s9 + $0x20] ss:$8 sps:$4 sm:$0xff]  }
 0x50c   : > { %v7110_v31 = vpop.f32.mrf.mxu0 }
 0x50d   : > { %v7440_v31 = vld [vmem:[%s9993_s9 + $0x14] ss:$8 sps:$4 sm:$0xff]  }
 0x50e   : > { %v3964_v16 = vpop.f32.mrf.mxu0  ;;  %v4037_v60 = vpop.f32.mrf.mxu1 }
 0x50f   : > { %v4043_v9 = vadd.f32 %v4037_v60, %v3967_v37  ;;  %v7435_v37 = vld [vmem:[%s9993_s9 + $0x120] ss:$8 sps:$4 sm:$0xff]   ;;  %v7443_v16 = vld [vmem:[%s9993_s9 + $0x114] ss:$8 sps:$4 sm:$0xff]   ;;  %v7438_v60 = vld [vmem:[%s9993_s9 + $0x10] ss:$8 sps:$4 sm:$0xff]  }
 0x510   : > { %v7111_v27 = vpop.f32.mrf.mxu0  ;;  %v7122_v21 = vpop.f32.mrf.mxu1 }
 0x511   : > { %v7446_v27 = vld [vmem:[%s9993_s9 + $0x4] ss:$8 sps:$4 sm:$0xff]  }
 0x512   : > { %v4040_v39 = vpop.f32.mrf.mxu1  ;;  %v7449_v21 = vld [vmem:[%s9993_s9 + $0x104] ss:$8 sps:$4 sm:$0xff]  }
 0x513   : > { %v7444_v39 = vld [vmem:[%s9993_s9] ss:$8 sps:$4 sm:$0xff]  }
 0x514   : > { %v7123_v15 = vpop.f32.mrf.mxu1 }
 0x515   : > { %v7447_v15 = vld [vmem:[%s9993_s9 + $0x100] ss:$8 sps:$4 sm:$0xff]  }
 0x51a   : > { %v4113_v17 = vpop.f32.mrf.mxu0 }
 0x51b   : > { %v4119_v46 = vadd.f32 %v4113_v17, %v4043_v9  ;;  %v7441_v9 = vld [vmem:[%s9993_s9 + $0x110] ss:$8 sps:$4 sm:$0xff]   ;;  %v7452_v17 = vld [vmem:[%s9993_s9 + $0xf4] ss:$8 sps:$4 sm:$0xff]  }
 0x51c   : > { %v7134_v1 = vpop.f32.mrf.mxu0 }
 0x51d   : > { %v7450_v1 = vld [vmem:[%s9993_s9 + $0xf0] ss:$8 sps:$4 sm:$0xff]  }
 0x51e   : > { %v4116_v26 = vpop.f32.mrf.mxu0  ;;  %v4189_v57 = vpop.f32.mrf.mxu1 }
 0x51f   : > { %v4195_v53 = vadd.f32 %v4189_v57, %v4119_v46  ;;  %v7455_v46 = vld [vmem:[%s9993_s9 + $0x1f4] ss:$8 sps:$4 sm:$0xff]   ;;  %v7453_v26 = vld [vmem:[%s9993_s9 + $0x1f0] ss:$8 sps:$4 sm:$0xff]   ;;  %v7458_v57 = vld [vmem:[%s9993_s9 + $0xe4] ss:$8 sps:$4 sm:$0xff]  }
 0x520   : > { %v7135_v62 = vpop.f32.mrf.mxu0  ;;  %v7146_v42 = vpop.f32.mrf.mxu1 }
 0x521   : > { %v7456_v62 = vld [vmem:[%s9993_s9 + $0xe0] ss:$8 sps:$4 sm:$0xff]  }
 0x522   : > { %v4192_v34 = vpop.f32.mrf.mxu1  ;;  %v7459_v42 = vld [vmem:[%s9993_s9 + $0x1e0] ss:$8 sps:$4 sm:$0xff]  }
 0x523   : > { %v7464_v34 = vld [vmem:[%s9993_s9 + $0xd4] ss:$8 sps:$4 sm:$0xff]  }
 0x524   : > { %v7147_v13 = vpop.f32.mrf.mxu1 }
 0x525   : > { %v7467_v13 = vld [vmem:[%s9993_s9 + $0x1d4] ss:$8 sps:$4 sm:$0xff]  }
 0x535   : > { %v4265_v3 = vpop.f32.mrf.mxu0 }
 0x536   : > { %v4271_v14 = vadd.f32 %v4265_v3, %v4195_v53  ;;  %v7461_v53 = vld [vmem:[%s9993_s9 + $0x1e4] ss:$8 sps:$4 sm:$0xff]   ;;  %v7462_v3 = vld [vmem:[%s9993_s9 + $0xd0] ss:$8 sps:$4 sm:$0xff]  }
 0x537   : > { %v7158_v51 = vpop.f32.mrf.mxu0 }
 0x538   : > { %v7468_v51 = vld [vmem:[%s9993_s9 + $0xc0] ss:$8 sps:$4 sm:$0xff]  }
 0x539   : > { %v4268_v18 = vpop.f32.mrf.mxu0 }
 0x53a   : > { %v7479_v18 = vld [vmem:[%s9993_s9 + $0x1b4] ss:$8 sps:$4 sm:$0xff]  }
 0x53b   : > { %v7159_v10 = vpop.f32.mrf.mxu0 }
 0x53c   : > { %v7474_v10 = vld [vmem:[%s9993_s9 + $0xb0] ss:$8 sps:$4 sm:$0xff]  }
 0x575   : > { %v4341_v8 = vpop.f32.mrf.mxu1 }
 0x576   : > { %v4347_v43 = vadd.f32 %v4341_v8, %v4271_v14  ;;  %v7465_v14 = vld [vmem:[%s9993_s9 + $0x1d0] ss:$8 sps:$4 sm:$0xff]   ;;  %v7480_v8 = vld [vmem:[%s9993_s9 + $0xa0] ss:$8 sps:$4 sm:$0xff]  }
 0x577   : > { %v7170_v56 = vpop.f32.mrf.mxu1 }
 0x578   : > { %v7483_v56 = vld [vmem:[%s9993_s9 + $0x1a0] ss:$8 sps:$4 sm:$0xff]  }
 0x579   : > { %v4344_v4 = vpop.f32.mrf.mxu1 }
 0x57a   : > { %v7488_v4 = vld [vmem:[%s9993_s9 + $0x94] ss:$8 sps:$4 sm:$0xff]  }
 0x57b   : > { %v7171_v55 = vpop.f32.mrf.mxu1 }
 0x57c   : > { %v7491_v55 = vld [vmem:[%s9993_s9 + $0x194] ss:$8 sps:$4 sm:$0xff]  }
 0x5b5   : > { %v4417_v28 = vpop.f32.mrf.mxu0 }
 0x5b6   : > { %v4423_v33 = vadd.f32 %v4417_v28, %v4347_v43  ;;  %v7486_v43 = vld [vmem:[%s9993_s9 + $0x90] ss:$8 sps:$4 sm:$0xff]  }
 0x5b7   : > { %v7182_v12 = vpop.f32.mrf.mxu0  ;;  %v7489_v28 = vld [vmem:[%s9993_s9 + $0x190] ss:$8 sps:$4 sm:$0xff]  }
 0x5b8   : > { %v4424_v11 = vmax.f32 %v4423_v33, 0.0  ;;  %v7494_v33 = vld [vmem:[%s9993_s9 + $0x84] ss:$8 sps:$4 sm:$0xff]  }
 0x5b9   : > { %v4420_v40 = vpop.f32.mrf.mxu0  ;;  %v7497_v12 = vld [vmem:[%s9993_s9 + $0x184] ss:$8 sps:$4 sm:$0xff]  }
 0x5ba   : > { %v4425_v36 = vpack.c.bf16 %v4424_v11, %v4424_v11  ;;  %v7492_v11 = vld [vmem:[%s9993_s9 + $0x80] ss:$8 sps:$4 sm:$0xff]  }
 0x5bb   : > { %v7183_v19 = vpop.f32.mrf.mxu0  ;;  %v7495_v40 = vld [vmem:[%s9993_s9 + $0x180] ss:$8 sps:$4 sm:$0xff]  }
 0x5bc   : > { %5559 = vmatmul.mubr.msk.bf16.vlgmr.msra.gmra.mxu1 %vm2309_vm5, %v4425_v36  ;;  %5560 = vmatmul.mubr.msk.bf16.vlgmr.msra.gmra.mxu0 %vm2309_vm5, %v4425_v36  ;;  %v4426_v19 = vld [vmem:[%s9992_s8] sm:$0xf] }
 0x5bd   : > { %5038 = vmatpush1.bf16.msra.mxu1 %v7402_v38  ;;  %5079 = vmatpush1.bf16.msra.mxu0 %v7405_v25  ;;  %v7498_v38 = vld [vmem:[%s9995_s11 + $0x78] sm:$0xff]   ;;  %v4428_v25 = vlaneseq }
 0x5be   : > { %5039 = vmatprep.subr.bf16.mxu1 %v7410_v32  ;;  %5080 = vmatprep.subr.bf16.mxu0 %v7413_v5 }
 0x5bf   : > { %v9904_v36 = vshrl.u32 %v4428_v25, 7 }
 0x5c1   : > { %5040 = vmatpush1.bf16.msra.mxu1 %v7408_v44  ;;  %5081 = vmatpush1.bf16.msra.mxu0 %v7411_v41  ;;  %v9907_v32 = vsub.s32 0, %v9904_v36  ;;  %v4438_v5 = vsub.s32 2, %v9904_v36  ;;  %v4434_v44 = vsub.s32 1, %v9904_v36  ;;  %v4442_v41 = vsub.s32 3, %v9904_v36 }
 0x5c2   : > { %5041 = vmatprep.subr.bf16.mxu1 %v7416_v20  ;;  %5082 = vmatprep.subr.bf16.mxu0 %v7419_v48 }
 0x5c3   : > { %v4431_v20 = vrot.slane %v4426_v19, %v9907_v32  ;;  %v4439_v48 = vrot.slane %v4426_v19, %v4438_v5  ;;  %v5625_v5 = vld [vmem:[%s9996_s12] ss:$0 sm:$0xff] }
 0x5c5   : > { %5042 = vmatpush1.bf16.msra.mxu1 %v7414_v59  ;;  %5083 = vmatpush1.bf16.msra.mxu0 %v7417_v24  ;;  %v4435_v59 = vrot.slane %v4426_v19, %v4434_v44  ;;  %v4443_v24 = vrot.slane %v4426_v19, %v4442_v41 }
 0x5c6   : > { %5043 = vmatprep.subr.bf16.mxu1 %v7422_v2  ;;  %5084 = vmatprep.subr.bf16.mxu0 %v7425_v54 }
 0x5c9   : > { %5044 = vmatpush1.bf16.msra.mxu1 %v7420_v30  ;;  %5085 = vmatpush1.bf16.msra.mxu0 %v7423_v7 }
 0x5ca   : > { %5045 = vmatprep.subr.bf16.mxu1 %v7428_v50  ;;  %5086 = vmatprep.subr.bf16.mxu0 %v7431_v49 }
 0x5cd   : > { %5046 = vmatpush1.bf16.msra.mxu1 %v7426_v22  ;;  %5087 = vmatpush1.bf16.msra.mxu0 %v7429_v58 }
 0x5ce   : > { %5047 = vmatprep.subr.bf16.mxu1 %v7434_v35  ;;  %5088 = vmatprep.subr.bf16.mxu0 %v7437_v6 }
 0x5d1   : > { %5048 = vmatpush1.bf16.msra.mxu1 %v7432_v63  ;;  %5089 = vmatpush1.bf16.msra.mxu0 %v7435_v37 }
 0x5d2   : > { %5049 = vmatprep.subr.bf16.mxu1 %v7440_v31  ;;  %5090 = vmatprep.subr.bf16.mxu0 %v7443_v16 }
 0x5d5   : > { %5050 = vmatpush1.bf16.msra.mxu1 %v7438_v60  ;;  %5091 = vmatpush1.bf16.msra.mxu0 %v7441_v9 }
 0x5d6   : > { %5051 = vmatprep.subr.bf16.mxu1 %v7446_v27  ;;  %5092 = vmatprep.subr.bf16.mxu0 %v7449_v21 }
 0x5d9   : > { %5052 = vmatpush1.bf16.msra.mxu1 %v7444_v39  ;;  %5093 = vmatpush1.bf16.msra.mxu0 %v7447_v15  ;;  %v7499_v39 = vld [vmem:[%s9995_s11 + $0x38] sm:$0xff]  }
 0x5da   : > { %5053 = vmatprep.subr.bf16.mxu1 %v7452_v17  ;;  %5094 = vmatprep.subr.bf16.mxu0 %v7455_v46  ;;  %v7500_v46 = vld [vmem:[%s9995_s11 + $0x70] sm:$0xff]  }
 0x5dd   : > { %5054 = vmatpush2.bf16.msra.mxu1 %v7450_v1  ;;  %5095 = vmatpush2.bf16.msra.mxu0 %v7453_v26  ;;  %v7501_v1 = vld [vmem:[%s9995_s11 + $0x30] sm:$0xff]   ;;  %v7502_v26 = vld [vmem:[%s9995_s11 + $0x68] sm:$0xff]  }
 0x5de   : > { %5055 = vmatprep.subr.bf16.mxu1 %v7458_v57  ;;  %5096 = vmatprep.subr.bf16.mxu0 %v7461_v53  ;;  %v7503_v57 = vld [vmem:[%s9995_s11 + $0x28] sm:$0xff]   ;;  %v7504_v53 = vld [vmem:[%s9995_s11 + $0x60] sm:$0xff]  }
 0x5e1   : > { %5056 = vmatpush2.bf16.msra.mxu1 %v7456_v62  ;;  %5097 = vmatpush2.bf16.msra.mxu0 %v7459_v42  ;;  %v7505_v62 = vld [vmem:[%s9995_s11 + $0x20] sm:$0xff]   ;;  %v7506_v42 = vld [vmem:[%s9995_s11 + $0x58] sm:$0xff]  }
 0x5e2   : > { %5057 = vmatprep.subr.bf16.mxu1 %v7464_v34  ;;  %5098 = vmatprep.subr.bf16.mxu0 %v7467_v13  ;;  %v7507_v34 = vld [vmem:[%s9995_s11 + $0x18] sm:$0xff]   ;;  %v7508_v13 = vld [vmem:[%s9995_s11 + $0x50] sm:$0xff]  }
 0x5e5   : > { %5058 = vmatpush2.bf16.msra.mxu1 %v7462_v3  ;;  %5099 = vmatpush2.bf16.msra.mxu0 %v7465_v14  ;;  %v7509_v3 = vld [vmem:[%s9995_s11 + $0x10] sm:$0xff]   ;;  %v7510_v14 = vld [vmem:[%s9995_s11 + $0x48] sm:$0xff]  }
 0x5e6   : > { %5059 = vmatprep.subr.bf16.mxu1 %v7470_v23  ;;  %5100 = vmatprep.subr.bf16.mxu0 %v7473_v47  ;;  %v7511_v23 = vld [vmem:[%s9995_s11 + $0x8] sm:$0xff]   ;;  %v7512_v47 = vld [vmem:[%s9995_s11 + $0x40] sm:$0xff]  }
 0x5e9   : > { %5060 = vmatpush2.bf16.msra.mxu1 %v7468_v51  ;;  %5101 = vmatpush2.bf16.msra.mxu0 %v7471_v61  ;;  %v7513_v51 = vld [vmem:[%s9995_s11] sm:$0xff]  }
 0x5ea   : > { %5061 = vmatprep.subr.bf16.mxu1 %v7476_v29  ;;  %5102 = vmatprep.subr.bf16.mxu0 %v7479_v18  ;;  %v4705_v61 = vld [vmem:[%s9994_s10] sm:$0x3] }
 0x5eb   : > { %v4710_v29 = vrot.slane %v4705_v61, %v9907_v32  ;;  %v4714_v18 = vrot.slane %v4705_v61, %v4434_v44 }
 0x5ed   : > { %5062 = vmatpush2.bf16.msra.mxu1 %v7474_v10  ;;  %5103 = vmatpush2.bf16.msra.mxu0 %v7477_v0 }
 0x5ee   : > { %5063 = vmatprep.subr.bf16.mxu1 %v7482_v45  ;;  %5104 = vmatprep.subr.bf16.mxu0 %v7485_v52 }
 0x5f1   : > { %5064 = vmatpush2.bf16.msra.mxu1 %v7480_v8  ;;  %5105 = vmatpush2.bf16.msra.mxu0 %v7483_v56 }
 0x5f2   : > { %5065 = vmatprep.subr.bf16.mxu1 %v7488_v4  ;;  %5106 = vmatprep.subr.bf16.mxu0 %v7491_v55 }
 0x5f5   : > { %5066 = vmatpush2.bf16.msra.mxu1 %v7486_v43  ;;  %5107 = vmatpush2.bf16.msra.mxu0 %v7489_v28 }
 0x5f6   : > { %5067 = vmatprep.subr.bf16.mxu1 %v7494_v33  ;;  %5108 = vmatprep.subr.bf16.mxu0 %v7497_v12 }
 0x5f9   : > { %5068 = vmatpush2.bf16.msra.mxu1 %v7492_v11  ;;  %5109 = vmatpush2.bf16.msra.mxu0 %v7495_v40 }
 0x5fa   : > { %6334 = vmatprep.subr.bf16.mxu1 %v7498_v38 }
 0x67c   : > { %v4581_v2 = vpop.f32.mrf.mxu1  ;;  %v4622_v54 = vpop.f32.mrf.mxu0 }
 0x67d   : > { %v4629_v30 = vadd.f32 %v4581_v2, %v4431_v20  ;;  %v4631_v7 = vadd.f32 %v4622_v54, %v4439_v48  ;;  %v5298_v48 = vld [vmem:[%s9997_s13] sm:$0x1] }
 0x67e   : > { %v4583_v50 = vpop.f32.mrf.mxu1  ;;  %v4624_v49 = vpop.f32.mrf.mxu0 }
 0x67f   : > { %v4630_v22 = vadd.f32 %v4583_v50, %v4435_v59  ;;  %v4632_v58 = vadd.f32 %v4624_v49, %v4443_v24  ;;  %v4633_v35 = vmax.f32 %v4629_v30, 0.0  ;;  %v4635_v6 = vmax.f32 %v4631_v7, 0.0  ;;  %v5299_v59 = vld [vmem:[%s9998_s14] sm:$0x1] }
 0x680   : > { %v4585_v63 = vpop.f32.mrf.mxu1  ;;  %v4626_v37 = vpop.f32.mrf.mxu0  ;;  %v5300_v2 = vsub.f32 %v5298_v48, %v5299_v59  ;;  %v5310_v54 = vadd.f32 %v5299_v59, %v5298_v48 }
 0x681   : > { %v4634_v31 = vmax.f32 %v4630_v22, 0.0  ;;  %v4636_v16 = vmax.f32 %v4632_v58, 0.0  ;;  %v4637_v15 = vpack.c.bf16 %v4633_v35, %v4633_v35  ;;  %v4639_v17 = vpack.c.bf16 %v4635_v6, %v4635_v6 }
 0x682   : > { %v4586_v60 = vpop.f32.mrf.mxu1  ;;  %v4627_v9 = vpop.f32.mrf.mxu0  ;;  %v5301_v30 = vmul.f32 0.5, %v5300_v2  ;;  %v5311_v7 = vmul.f32 0.5, %v5310_v54 }
 0x683   : > { %v4638_v27 = vpack.c.bf16 %v4634_v31, %v4634_v31  ;;  %v4640_v21 = vpack.c.bf16 %v4636_v16, %v4636_v16 }
 0x684   : > { %v5307_v50 = vrot.slane %v5301_v30, %v9907_v32  ;;  %v5316_v49 = vrot.slane %v5311_v7, %v9907_v32 }
 0x685   : > { %5069 = vmatprep.mubr.bf16.mxu1 %v4638_v27  ;;  %5110 = vmatprep.mubr.bf16.mxu0 %v4640_v21 }
 0x686   : > { %5070 = vmatmul.mubr.bf16.vlgmr.msra.gmra.mxu1 %v4637_v15  ;;  %5111 = vmatmul.mubr.bf16.vlgmr.msra.gmra.mxu0 %v4639_v17 }
 0x687   : > { %6335 = vmatpush3.bf16.msra.mxu1 %v7499_v39 }
 0x688   : > { %6336 = vmatprep.subr.bf16.mxu1 %v7500_v46 }
 0x68b   : > { %6337 = vmatpush3.bf16.msra.mxu1 %v7501_v1 }
 0x68c   : > { %6338 = vmatprep.subr.bf16.mxu1 %v7502_v26 }
 0x68f   : > { %6339 = vmatpush3.bf16.msra.mxu1 %v7503_v57 }
 0x690   : > { %6340 = vmatprep.subr.bf16.mxu1 %v7504_v53 }
 0x693   : > { %6341 = vmatpush3.bf16.msra.mxu1 %v7505_v62 }
 0x694   : > { %6342 = vmatprep.subr.bf16.mxu1 %v7506_v42 }
 0x697   : > { %6343 = vmatpush3.bf16.msra.mxu1 %v7507_v34 }
 0x698   : > { %6344 = vmatprep.subr.bf16.mxu1 %v7508_v13 }
 0x69b   : > { %6345 = vmatpush3.bf16.msra.mxu1 %v7509_v3 }
 0x69c   : > { %6346 = vmatprep.subr.bf16.mxu1 %v7510_v14 }
 0x69f   : > { %6347 = vmatpush3.bf16.msra.mxu1 %v7511_v23 }
 0x6a0   : > { %6348 = vmatprep.subr.bf16.mxu1 %v7512_v47 }
 0x6a3   : > { %6349 = vmatpush3.bf16.msra.mxu1 %v7513_v51 }
 0x746   : > { %v5071_v10 = vpop.f32.mrf.mxu1  ;;  %v5112_v0 = vpop.f32.mrf.mxu0 }
 0x747   : > { %v5072_v45 = vadd.f32 %v5071_v10, %v4710_v29 }
 0x748   : > { %v5073_v52 = vpop.f32.mrf.mxu1  ;;  %v5114_v8 = vpop.f32.mrf.mxu0 }
 0x749   : > { %v5113_v56 = vadd.f32 %v5112_v0, %v5072_v45  ;;  %v5074_v4 = vadd.f32 %v5073_v52, %v4714_v18 }
 0x74a   : > { %v5075_v55 = vpop.f32.mrf.mxu1  ;;  %v5116_v43 = vpop.f32.mrf.mxu0 }
 0x74b   : > { %v5115_v28 = vadd.f32 %v5114_v8, %v5074_v4  ;;  %v5119_v33 = vmax.f32 %v5113_v56, 0.0 }
 0x74c   : > { %v5076_v12 = vpop.f32.mrf.mxu1  ;;  %v5117_v11 = vpop.f32.mrf.mxu0 }
 0x74d   : > { %v5120_v40 = vmax.f32 %v5115_v28, 0.0  ;;  %v5121_v25 = vpack.c.bf16 %v5119_v33, %v5119_v33 }
 0x74f   : > { %v5122_v38 = vpack.c.bf16 %v5120_v40, %v5120_v40 }
 0x751   : > { %5290 = vmatprep.mubr.bf16.mxu1 %v5122_v38 }
 0x752   : > { %5291 = vmatmul.mubr.bf16.vlgmr.msra.gmra.mxu1 %v5121_v25 }
 0x812   : > { %v6350_v36 = vpop.f32.mrf.mxu1 }
 0x814   : > { %v6351_v19 = vpop.f32.mrf.mxu1 }
 0x815   : > { %v6352_v44 = vadd.f32 %v6351_v19, %v6350_v36 }
 0x816   : > { %v6353_v41 = vpop.f32.mrf.mxu1 }
 0x817   : > { %v5293_v20 = vadd.f32 %v6352_v44, %v5625_v5 }
 0x818   : > { %v6354_v24 = vpop.f32.mrf.mxu1 }
 0x819   : > { %7514 = vtanh.f32 %v5293_v20 }
 0x826   : > { %v7515_v22 = vpop.eup %7514 }
 0x827   : > { %v5309_v58 = vmul.f32 %v7515_v22, %v5307_v50 }
 0x829   : > { %v5318_v35 = vadd.f32 %v5316_v49, %v5309_v58 }
 0x82b   : > { %5320 = vst.msk [vmem:[%s497_s27] sm:$0xff] %vm5319_vm6, %v5318_v35 }
 0x82c PF: > { %s25_s18 = sadd.s32 1, %s7572_s18  }
 0x82d   : > { %p22_p5 = scmp.ge.s32.totalorder %s25_s18, 4  }
 0x82f   :  { %24 = sbr.rel (!%p22_p5) target bundleno = 1 (0x1), region = 110 }

</bundles_post_ra>
